<compile_context>
chip_gen: v6e
topology: v6e:2x2x1
jax: 0.10.0
libtpu: 0.0.40
codegen_flags: <defaults>
</compile_context>

<pallas_src>
import functools

import jax
import jax.numpy as jnp
from jax import lax
from jax.experimental import pallas as pl
from jax.experimental.pallas import tpu as pltpu


def _round_up(x, m):
    return (x + m - 1) // m * m


# ----------------------------------------------------------------------------
# Pallas kernel: LSTM recurrence over one time tile for a chunk of contexts.
#   grid = (context_chunks, n_time_tiles); axis 0 'parallel', axis 1 'arbitrary'
# ----------------------------------------------------------------------------
def _lstm_last_kernel(xg_ref,    # (t_tile, B, 4Hp)  precomputed x@W_ih + b, time-major
                      lens_ref,  # (B, 1)            int32 sequence lengths
                      h0_ref,    # (Cc, B, Hp)       initial hidden/cell state (f32)
                      whh_ref,   # (Hp, 4Hp)         packed hidden->gate weights (i,f,g,o)
                      out_ref,   # (Cc, B, Hp)       output: h at step len-1 per row
                      h_scr,     # VMEM (Cc, B, Hp)  f32 hidden state
                      c_scr,     # VMEM (Cc, B, Hp)  f32 cell state
                      *, t_total, guard_tail, unroll):
    t_tile = xg_ref.shape[0]
    c_chunk, _, hp = h0_ref.shape
    tb = pl.program_id(1)
    t_base = tb * t_tile

    @pl.when(tb == 0)
    def _init():
        h_scr[...] = h0_ref[...]
        c_scr[...] = h0_ref[...]

    # Hoisted out of the hot loop (resident across the tile).
    whh = whh_ref[...]            # (Hp, 4Hp), bf16 or f32
    lens = lens_ref[...]          # (B, 1) int32

    def step(i, carry):
        def body():
            t = t_base + i
            xg = xg_ref[i].astype(jnp.float32)            # (B, 4Hp)
            # Rows are 'active' while t <= len-1; afterwards h is frozen, so the
            # final h_scr *is* the hidden state at step len-1 (no latch scratch).
            active = lens > t                              # (B, 1) bool
            for c in range(c_chunk):                       # static, small C
                h_prev = h_scr[c]                          # (B, Hp) f32
                # One fused MXU matmul per context per step; bf16 in, f32 acc.
                gates = xg + jnp.dot(h_prev.astype(whh.dtype), whh,
                                     preferred_element_type=jnp.float32)
                i_g = jax.nn.sigmoid(gates[:, 0 * hp:1 * hp])
                f_g = jax.nn.sigmoid(gates[:, 1 * hp:2 * hp])
                g_g = jnp.tanh(gates[:, 2 * hp:3 * hp])
                o_g = jax.nn.sigmoid(gates[:, 3 * hp:4 * hp])
                c_new = f_g * c_scr[c] + i_g * g_g
                h_new = o_g * jnp.tanh(c_new)
                c_scr[c] = c_new
                h_scr[c] = jnp.where(active, h_new, h_prev)

        if guard_tail:
            # Skip the zero-padded timesteps of the last (partial) time tile.
            @pl.when(t_base + i < t_total)
            def _():
                body()
        else:
            body()
        return carry

    # Serial recurrence; partial unroll lets the LLO scheduler overlap the MXU
    # push of step t+1 with the VPU/EUP gate math of step t without blowing up
    # vreg pressure / compile time.
    lax.fori_loop(0, t_tile, step, 0, unroll=unroll)

    @pl.when(tb == pl.num_programs(1) - 1)
    def _finalize():
        out_ref[...] = h_scr[...].astype(out_ref.dtype)


# ----------------------------------------------------------------------------
# Wrapper: embedding lookup, hoisted input projection, gate-group padding,
# time tiling and pallas_call.
# ----------------------------------------------------------------------------
def language_encoder_forward(padded_tokens, init_feats, params, padding_idx=0,
                             t_tile=32, context_chunks=1,
                             stream_dtype=jnp.bfloat16, unroll=8):
    """Returns a list of `context_size` arrays of shape (B, n_hidden).

    context_chunks: set to a divisor of the context count (e.g. 2) on v7x to
    shard the 'parallel' grid axis across both TensorCores.  Keep 1 on
    single-core v5e/v6e to avoid re-streaming x_gates per chunk.
    """
    emb_table = params["embedding"]          # (vocab, E), row padding_idx is zero
    w_ih = params["w_ih"]                    # (4H, E)  PyTorch layout, gates i,f,g,o
    w_hh = params["w_hh"]                    # (4H, H)
    b_ih = params["b_ih"]                    # (4H,)
    b_hh = params["b_hh"]                    # (4H,)

    B, T = padded_tokens.shape
    C = init_feats.shape[1]
    E = emb_table.shape[1]
    H = w_hh.shape[1]

    # Pad each gate group to a 128-lane boundary so per-step gate slices inside
    # the kernel are lane-aligned.
    Hp = _round_up(H, 128)
    G = 4 * Hp

    if context_chunks < 1 or C % context_chunks != 0:
        context_chunks = 1
    C_chunk = C // context_chunks

    # --- glue: embedding lookup + length computation -------------------------
    # TODO(synk): dropout is identity in eval mode; training-mode dropout is
    # not implemented here.
    w_emb = jnp.take(emb_table, padded_tokens, axis=0).astype(jnp.float32)    # (B,T,E)
    lens = jnp.sum((padded_tokens != padding_idx).astype(jnp.int32), axis=1)  # (B,)

    def _pad_gate_cols(w):
        # (..., 4H) -> (..., 4Hp): zero-pad each gate block (i,f,g,o) to Hp lanes.
        if Hp == H:
            return w
        lead = w.shape[:-1]
        w = w.reshape(lead + (4, H))
        w = jnp.pad(w, [(0, 0)] * len(lead) + [(0, 0), (0, Hp - H)])
        return w.reshape(lead + (4 * Hp,))

    W_ih = _pad_gate_cols(w_ih.astype(jnp.float32).T)             # (E, 4Hp)
    bias = _pad_gate_cols((b_ih + b_hh).astype(jnp.float32))      # (4Hp,)
    W_hh = _pad_gate_cols(w_hh.astype(jnp.float32).T)             # (H, 4Hp)
    if Hp != H:
        W_hh = jnp.pad(W_hh, ((0, Hp - H), (0, 0)))               # (Hp, 4Hp), zero rows
    W_hh = W_hh.astype(stream_dtype)

    # Hoisted input projection: one (B*T, E) x (E, 4Hp) matmul + bias, shared by
    # every context.  Streamed in stream_dtype (bf16 default) to halve HBM
    # traffic; gate math stays f32 inside the kernel.
    xg = (w_emb.reshape(B * T, E) @ W_ih + bias).reshape(B, T, G)
    xg = jnp.transpose(xg, (1, 0, 2))                             # (T, B, 4Hp)

    # Time-tile sizing: large enough to amortize per-grid-step overhead, capped
    # so the double-buffered xg stream stays under ~24 MiB (v7x: 64 MiB VMEM).
    itemsize = jnp.dtype(stream_dtype).itemsize
    bytes_per_step = B * G * itemsize
    max_t_tile = max(1, int((24 << 20) // (2 * bytes_per_step)))
    t_tile = max(1, min(t_tile, T, max_t_tile))
    n_tb = -(-T // t_tile)
    T_pad = n_tb * t_tile
    if T_pad != T:
        xg = jnp.pad(xg, ((0, T_pad - T), (0, 0), (0, 0)))
    xg = xg.astype(stream_dtype)

    h0 = jnp.transpose(init_feats, (1, 0, 2)).astype(jnp.float32)  # (C, B, H)
    if Hp != H:
        h0 = jnp.pad(h0, ((0, 0), (0, 0), (0, Hp - H)))            # (C, B, Hp)
    lens2 = lens.reshape(B, 1).astype(jnp.int32)

    # Explicit VMEM budget (v5e scoped default is only 16 MiB): double-buffered
    # xg + residents + out + scratch, with headroom.
    f32b = 4
    blk_bytes = (2 * t_tile * B * G * itemsize          # xg double buffer
                 + 2 * Hp * G * itemsize                # W_hh
                 + 2 * C_chunk * B * Hp * f32b          # h0
                 + 2 * C_chunk * B * Hp * f32b          # out
                 + 2 * C_chunk * B * Hp * f32b          # h/c scratch
                 + 2 * 8 * 128 * 4)                     # lens (one padded tile)
    vmem_limit = int(min(max(32 << 20, 2 * blk_bytes), 96 << 20))

    kernel = functools.partial(_lstm_last_kernel, t_total=T,
                               guard_tail=(T_pad != T),
                               unroll=max(1, min(int(unroll), t_tile)))

    out = pl.pallas_call(
        kernel,
        out_shape=jax.ShapeDtypeStruct((C, B, Hp), jnp.float32),
        grid_spec=pltpu.PrefetchScalarGridSpec(
            num_scalar_prefetch=0,
            grid=(context_chunks, n_tb),
            in_specs=[
                pl.BlockSpec((t_tile, B, G), lambda p, k: (k, 0, 0)),     # xg (streamed)
                pl.BlockSpec((B, 1), lambda p, k: (0, 0)),                # lens (resident)
                pl.BlockSpec((C_chunk, B, Hp), lambda p, k: (p, 0, 0)),   # h0
                pl.BlockSpec((Hp, G), lambda p, k: (0, 0)),               # W_hh (resident)
            ],
            out_specs=pl.BlockSpec((C_chunk, B, Hp), lambda p, k: (p, 0, 0)),
            scratch_shapes=[
                pltpu.VMEM((C_chunk, B, Hp), jnp.float32),   # h state
                pltpu.VMEM((C_chunk, B, Hp), jnp.float32),   # c state
            ],
        ),
        compiler_params=pltpu.CompilerParams(
            dimension_semantics=("parallel", "arbitrary"),
            vmem_limit_bytes=vmem_limit),
    )(xg, lens2, h0, W_hh)

    out = out[:, :, :H]     # strip gate-group padding
    # TODO(synk): rows with lens == 0 return init_feats here (h never updates);
    # PyTorch's pack_padded_sequence does not support zero-length rows at all.
    return [out[i] for i in range(C)]


# ----------------------------------------------------------------------------
# Pure-JAX reference (PyTorch LSTM semantics) for a correctness check.
# ----------------------------------------------------------------------------
def language_encoder_reference(padded_tokens, init_feats, params, padding_idx=0):
    emb_table = params["embedding"]
    w_ih, w_hh = params["w_ih"], params["w_hh"]
    b_ih, b_hh = params["b_ih"], params["b_hh"]

    B, T = padded_tokens.shape
    H = w_hh.shape[1]
    C = init_feats.shape[1]

    w_emb = jnp.take(emb_table, padded_tokens, axis=0)
    lens = jnp.sum((padded_tokens != padding_idx).astype(jnp.int32), axis=1)

    res = []
    for i in range(C):
        h = init_feats[:, i, :].astype(jnp.float32)
        c = init_feats[:, i, :].astype(jnp.float32)
        hs = []
        for t in range(T):
            x_t = w_emb[:, t, :].astype(jnp.float32)
            gates = x_t @ w_ih.T + b_ih + h @ w_hh.T + b_hh
            i_g = jax.nn.sigmoid(gates[:, 0 * H:1 * H])
            f_g = jax.nn.sigmoid(gates[:, 1 * H:2 * H])
            g_g = jnp.tanh(gates[:, 2 * H:3 * H])
            o_g = jax.nn.sigmoid(gates[:, 3 * H:4 * H])
            c = f_g * c + i_g * g_g
            h = o_g * jnp.tanh(c)
            hs.append(h)
        hs = jnp.stack(hs, axis=1)                      # (B, T, H)
        res.append(hs[jnp.arange(B), lens - 1])
    return res


# ----------------------------------------------------------------------------
# Deterministic parameter init + test.
# ----------------------------------------------------------------------------
def init_params(key, vocab_size, embedding_dim, n_hidden, padding_idx=0):
    k_emb, k_wih, k_whh, k_bih, k_bhh = jax.random.split(key, 5)
    emb = 0.1 * jax.random.normal(k_emb, (vocab_size, embedding_dim), jnp.float32)
    emb = emb.at[padding_idx].set(0.0)                   # padding_idx row is zero
    scale = 1.0 / jnp.sqrt(n_hidden)
    w_ih = scale * jax.random.normal(k_wih, (4 * n_hidden, embedding_dim), jnp.float32)
    w_hh = scale * jax.random.normal(k_whh, (4 * n_hidden, n_hidden), jnp.float32)
    b_ih = scale * jax.random.normal(k_bih, (4 * n_hidden,), jnp.float32)
    b_hh = scale * jax.random.normal(k_bhh, (4 * n_hidden,), jnp.float32)
    return {"embedding": emb, "w_ih": w_ih, "w_hh": w_hh, "b_ih": b_ih, "b_hh": b_hh}


if __name__ == "__main__":
    # Small shapes: batch=2, seq=8, embedding=32, hidden=32, contexts=2, vocab=20
    B, T, E, H, C, V = 2, 8, 32, 32, 2, 20
    PAD = 0

    key = jax.random.PRNGKey(0)
    k_par, k_tok, k_init = jax.random.split(key, 3)

    params = init_params(k_par, V, E, H, padding_idx=PAD)

    # Tokens: valid ids in [1, V), trailing padding (id 0) per row.
    tokens = jax.random.randint(k_tok, (B, T), 1, V, dtype=jnp.int32)
    seq_lens = jnp.array([5, 7], dtype=jnp.int32)          # per-row valid lengths
    pos = jnp.arange(T)[None, :]
    tokens = jnp.where(pos < seq_lens[:, None], tokens, PAD)

    init_feats = jax.random.normal(k_init, (B, C, H), jnp.float32)

    ref = language_encoder_reference(tokens, init_feats, params, padding_idx=PAD)

    # 1) f32 streaming, single parallel chunk: bit-close check vs. f32 reference.
    out_f32 = language_encoder_forward(tokens, init_feats, params, padding_idx=PAD,
                                       stream_dtype=jnp.float32, context_chunks=1)
    out_f32 = [jax.block_until_ready(o) for o in out_f32]
    for o, r in zip(out_f32, ref):
        assert o.shape == (B, H)
        assert jnp.max(jnp.abs(o - r)) < 1e-4, "f32 kernel mismatch vs. reference"

    # 2) bf16 streaming + 2-way 'parallel' context axis (v7x megacore path).
    out_bf16 = language_encoder_forward(tokens, init_feats, params, padding_idx=PAD,
                                        stream_dtype=jnp.bfloat16, context_chunks=2)
    out_bf16 = [jax.block_until_ready(o) for o in out_bf16]
    for o, r in zip(out_bf16, ref):
        assert o.shape == (B, H)
        assert jnp.max(jnp.abs(o - r)) < 5e-2, "bf16 kernel mismatch vs. reference"

    print("KERNEL_OK")
</pallas_src>

<mosaic_0001>
module attributes {stable_mosaic.version = 11 : i64} {
  func.func @_lstm_last_kernel(%arg0: i32, %arg1: i32, %arg2: memref<8x2x512xf32, #tpu.memory_space<vmem>>, %arg3: memref<2x1xi32, #tpu.memory_space<vmem>>, %arg4: memref<2x2x128xf32, #tpu.memory_space<vmem>>, %arg5: memref<128x512xf32, #tpu.memory_space<vmem>>, %arg6: memref<2x2x128xf32, #tpu.memory_space<vmem>>, %arg7: memref<2x2x128xf32, #tpu.memory_space<vmem>>, %arg8: memref<2x2x128xf32, #tpu.memory_space<vmem>>) attributes {dimension_semantics = [#tpu.dimension_semantics<parallel>, #tpu.dimension_semantics<arbitrary>], iteration_bounds = array<i64: 1, 1>, scalar_prefetch = 0 : i64, scratch_operands = 2 : i64, tpu.core_type = #tpu.core_type<tc>, window_params = [{transform_indices = @transform_0, window_bounds = array<i64: 8, 2, 512>}, {pipeline_mode = #tpu.pipeline_mode<synchronous>, transform_indices = @transform_1, window_bounds = array<i64: 2, 1>}, {transform_indices = @transform_2, window_bounds = array<i64: 2, 2, 128>}, {pipeline_mode = #tpu.pipeline_mode<synchronous>, transform_indices = @transform_3, window_bounds = array<i64: 128, 512>}, {transform_indices = @transform_4, window_bounds = array<i64: 2, 2, 128>}]} {
    %c8_i32 = arith.constant 8 : i32
    %0 = arith.muli %arg1, %c8_i32 : i32
    %c0_i32 = arith.constant 0 : i32
    %1 = arith.cmpi eq, %arg1, %c0_i32 : i32
    %2 = arith.extui %1 : i1 to i32
    %c0_i32_0 = arith.constant 0 : i32
    %3 = arith.cmpi ne, %2, %c0_i32_0 : i32
    scf.if %3 {
      %c0_278 = arith.constant 0 : index
      %c0_279 = arith.constant 0 : index
      %c0_280 = arith.constant 0 : index
      %697 = vector.load %arg4[%c0_278, %c0_279, %c0_280] : memref<2x2x128xf32, #tpu.memory_space<vmem>>, vector<2x2x128xf32>
      %c0_281 = arith.constant 0 : index
      %c0_282 = arith.constant 0 : index
      %c0_283 = arith.constant 0 : index
      %698 = vector.load %arg7[%c0_281, %c0_282, %c0_283] : memref<2x2x128xf32, #tpu.memory_space<vmem>>, vector<2x2x128xf32>
      tpu.vector_store %arg7[%c0_281, %c0_282, %c0_283], %697 {strides = array<i32>} : memref<2x2x128xf32, #tpu.memory_space<vmem>>, vector<2x2x128xf32>,
      %c0_284 = arith.constant 0 : index
      %c0_285 = arith.constant 0 : index
      %c0_286 = arith.constant 0 : index
      %699 = vector.load %arg4[%c0_284, %c0_285, %c0_286] : memref<2x2x128xf32, #tpu.memory_space<vmem>>, vector<2x2x128xf32>
      %c0_287 = arith.constant 0 : index
      %c0_288 = arith.constant 0 : index
      %c0_289 = arith.constant 0 : index
      %700 = vector.load %arg8[%c0_287, %c0_288, %c0_289] : memref<2x2x128xf32, #tpu.memory_space<vmem>>, vector<2x2x128xf32>
      tpu.vector_store %arg8[%c0_287, %c0_288, %c0_289], %699 {strides = array<i32>} : memref<2x2x128xf32, #tpu.memory_space<vmem>>, vector<2x2x128xf32>,
    } else {
    }
    %c0 = arith.constant 0 : index
    %c0_1 = arith.constant 0 : index
    %4 = vector.load %arg5[%c0, %c0_1] : memref<128x512xf32, #tpu.memory_space<vmem>>, vector<128x512xf32>
    %c0_2 = arith.constant 0 : index
    %c0_3 = arith.constant 0 : index
    %5 = vector.load %arg3[%c0_2, %c0_3] : memref<2x1xi32, #tpu.memory_space<vmem>>, vector<2x1xi32>
    %c0_i32_4 = arith.constant 0 : i32
    %6 = arith.addi %0, %c0_i32_4 : i32
    %7 = arith.index_cast %c0_i32_4 : i32 to index
    %c0_5 = arith.constant 0 : index
    %c0_6 = arith.constant 0 : index
    %8 = vector.load %arg2[%7, %c0_5, %c0_6] : memref<8x2x512xf32, #tpu.memory_space<vmem>>, vector<1x2x512xf32>
    %9 = vector.shape_cast %8 : vector<1x2x512xf32> to vector<2x512xf32>
    %10 = vector.broadcast %6 : i32 to vector<2x1xi32>
    %11 = arith.cmpi sgt, %5, %10 : vector<2x1xi32>
    %c0_7 = arith.constant 0 : index
    %c0_8 = arith.constant 0 : index
    %c0_9 = arith.constant 0 : index
    %12 = vector.load %arg7[%c0_7, %c0_8, %c0_9] : memref<2x2x128xf32, #tpu.memory_space<vmem>>, vector<1x2x128xf32>
    %13 = vector.shape_cast %12 : vector<1x2x128xf32> to vector<2x128xf32>
    %cst = arith.constant dense<0.000000e+00> : vector<2x512xf32>
    %14 = tpu.matmul %13, %4, %cst {dimension_numbers = #tpu.dot_dimension_numbers<[1], [0], [0], [1], [0, 0, 1, 1], [], []>} : vector<2x128xf32>, vector<128x512xf32>, vector<2x512xf32> -> vector<2x512xf32>
    %15 = arith.addf %9, %14 : vector<2x512xf32>
    %16 = vector.extract_strided_slice %15 {offsets = [0, 0], sizes = [2, 128], strides = [1, 1]} : vector<2x512xf32> to vector<2x128xf32>
    %17 = arith.negf %16 : vector<2x128xf32>
    %18 = math.exp %17 : vector<2x128xf32>
    %cst_10 = arith.constant 1.000000e+00 : f32
    %19 = vector.broadcast %cst_10 : f32 to vector<2x128xf32>
    %20 = arith.addf %19, %18 : vector<2x128xf32>
    %21 = arith.divf %19, %20 : vector<2x128xf32>
    %22 = vector.extract_strided_slice %15 {offsets = [0, 128], sizes = [2, 128], strides = [1, 1]} : vector<2x512xf32> to vector<2x128xf32>
    %23 = arith.negf %22 : vector<2x128xf32>
    %24 = math.exp %23 : vector<2x128xf32>
    %cst_11 = arith.constant 1.000000e+00 : f32
    %25 = vector.broadcast %cst_11 : f32 to vector<2x128xf32>
    %26 = arith.addf %25, %24 : vector<2x128xf32>
    %27 = arith.divf %25, %26 : vector<2x128xf32>
    %28 = vector.extract_strided_slice %15 {offsets = [0, 256], sizes = [2, 128], strides = [1, 1]} : vector<2x512xf32> to vector<2x128xf32>
    %29 = math.tanh %28 : vector<2x128xf32>
    %30 = vector.extract_strided_slice %15 {offsets = [0, 384], sizes = [2, 128], strides = [1, 1]} : vector<2x512xf32> to vector<2x128xf32>
    %31 = arith.negf %30 : vector<2x128xf32>
    %32 = math.exp %31 : vector<2x128xf32>
    %cst_12 = arith.constant 1.000000e+00 : f32
    %33 = vector.broadcast %cst_12 : f32 to vector<2x128xf32>
    %34 = arith.addf %33, %32 : vector<2x128xf32>
    %35 = arith.divf %33, %34 : vector<2x128xf32>
    %c0_13 = arith.constant 0 : index
    %c0_14 = arith.constant 0 : index
    %c0_15 = arith.constant 0 : index
    %36 = vector.load %arg8[%c0_13, %c0_14, %c0_15] : memref<2x2x128xf32, #tpu.memory_space<vmem>>, vector<1x2x128xf32>
    %37 = vector.shape_cast %36 : vector<1x2x128xf32> to vector<2x128xf32>
    %38 = arith.mulf %27, %37 : vector<2x128xf32>
    %39 = arith.mulf %21, %29 : vector<2x128xf32>
    %40 = arith.addf %38, %39 : vector<2x128xf32>
    %41 = math.tanh %40 : vector<2x128xf32>
    %42 = arith.mulf %35, %41 : vector<2x128xf32>
    %c0_16 = arith.constant 0 : index
    %c0_17 = arith.constant 0 : index
    %c0_18 = arith.constant 0 : index
    %43 = vector.load %arg8[%c0_16, %c0_17, %c0_18] : memref<2x2x128xf32, #tpu.memory_space<vmem>>, vector<1x2x128xf32>
    %44 = vector.shape_cast %43 : vector<1x2x128xf32> to vector<2x128xf32>
    %45 = vector.shape_cast %40 : vector<2x128xf32> to vector<1x2x128xf32>
    tpu.vector_store %arg8[%c0_16, %c0_17, %c0_18], %45 {strides = array<i32>} : memref<2x2x128xf32, #tpu.memory_space<vmem>>, vector<1x2x128xf32>,
    %46 = vector.shape_cast %11 : vector<2x1xi1> to vector<2x1xi1>
    %47 = vector.broadcast %46 : vector<2x1xi1> to vector<2x128xi1>
    %48 = arith.select %47, %42, %13 : vector<2x128xi1>, vector<2x128xf32>
    %c0_19 = arith.constant 0 : index
    %c0_20 = arith.constant 0 : index
    %c0_21 = arith.constant 0 : index
    %49 = vector.load %arg7[%c0_19, %c0_20, %c0_21] : memref<2x2x128xf32, #tpu.memory_space<vmem>>, vector<1x2x128xf32>
    %50 = vector.shape_cast %49 : vector<1x2x128xf32> to vector<2x128xf32>
    %51 = vector.shape_cast %48 : vector<2x128xf32> to vector<1x2x128xf32>
    tpu.vector_store %arg7[%c0_19, %c0_20, %c0_21], %51 {strides = array<i32>} : memref<2x2x128xf32, #tpu.memory_space<vmem>>, vector<1x2x128xf32>,
    %c1 = arith.constant 1 : index
    %c0_22 = arith.constant 0 : index
    %c0_23 = arith.constant 0 : index
    %52 = vector.load %arg7[%c1, %c0_22, %c0_23] : memref<2x2x128xf32, #tpu.memory_space<vmem>>, vector<1x2x128xf32>
    %53 = vector.shape_cast %52 : vector<1x2x128xf32> to vector<2x128xf32>
    %cst_24 = arith.constant dense<0.000000e+00> : vector<2x512xf32>
    %54 = tpu.matmul %53, %4, %cst_24 {dimension_numbers = #tpu.dot_dimension_numbers<[1], [0], [0], [1], [0, 0, 1, 1], [], []>} : vector<2x128xf32>, vector<128x512xf32>, vector<2x512xf32> -> vector<2x512xf32>
    %55 = arith.addf %9, %54 : vector<2x512xf32>
    %56 = vector.extract_strided_slice %55 {offsets = [0, 0], sizes = [2, 128], strides = [1, 1]} : vector<2x512xf32> to vector<2x128xf32>
    %57 = arith.negf %56 : vector<2x128xf32>
    %58 = math.exp %57 : vector<2x128xf32>
    %cst_25 = arith.constant 1.000000e+00 : f32
    %59 = vector.broadcast %cst_25 : f32 to vector<2x128xf32>
    %60 = arith.addf %59, %58 : vector<2x128xf32>
    %61 = arith.divf %59, %60 : vector<2x128xf32>
    %62 = vector.extract_strided_slice %55 {offsets = [0, 128], sizes = [2, 128], strides = [1, 1]} : vector<2x512xf32> to vector<2x128xf32>
    %63 = arith.negf %62 : vector<2x128xf32>
    %64 = math.exp %63 : vector<2x128xf32>
    %cst_26 = arith.constant 1.000000e+00 : f32
    %65 = vector.broadcast %cst_26 : f32 to vector<2x128xf32>
    %66 = arith.addf %65, %64 : vector<2x128xf32>
    %67 = arith.divf %65, %66 : vector<2x128xf32>
    %68 = vector.extract_strided_slice %55 {offsets = [0, 256], sizes = [2, 128], strides = [1, 1]} : vector<2x512xf32> to vector<2x128xf32>
    %69 = math.tanh %68 : vector<2x128xf32>
    %70 = vector.extract_strided_slice %55 {offsets = [0, 384], sizes = [2, 128], strides = [1, 1]} : vector<2x512xf32> to vector<2x128xf32>
    %71 = arith.negf %70 : vector<2x128xf32>
    %72 = math.exp %71 : vector<2x128xf32>
    %cst_27 = arith.constant 1.000000e+00 : f32
    %73 = vector.broadcast %cst_27 : f32 to vector<2x128xf32>
    %74 = arith.addf %73, %72 : vector<2x128xf32>
    %75 = arith.divf %73, %74 : vector<2x128xf32>
    %c1_28 = arith.constant 1 : index
    %c0_29 = arith.constant 0 : index
    %c0_30 = arith.constant 0 : index
    %76 = vector.load %arg8[%c1_28, %c0_29, %c0_30] : memref<2x2x128xf32, #tpu.memory_space<vmem>>, vector<1x2x128xf32>
    %77 = vector.shape_cast %76 : vector<1x2x128xf32> to vector<2x128xf32>
    %78 = arith.mulf %67, %77 : vector<2x128xf32>
    %79 = arith.mulf %61, %69 : vector<2x128xf32>
    %80 = arith.addf %78, %79 : vector<2x128xf32>
    %81 = math.tanh %80 : vector<2x128xf32>
    %82 = arith.mulf %75, %81 : vector<2x128xf32>
    %c1_31 = arith.constant 1 : index
    %c0_32 = arith.constant 0 : index
    %c0_33 = arith.constant 0 : index
    %83 = vector.load %arg8[%c1_31, %c0_32, %c0_33] : memref<2x2x128xf32, #tpu.memory_space<vmem>>, vector<1x2x128xf32>
    %84 = vector.shape_cast %83 : vector<1x2x128xf32> to vector<2x128xf32>
    %85 = vector.shape_cast %80 : vector<2x128xf32> to vector<1x2x128xf32>
    tpu.vector_store %arg8[%c1_31, %c0_32, %c0_33], %85 {strides = array<i32>} : memref<2x2x128xf32, #tpu.memory_space<vmem>>, vector<1x2x128xf32>,
    %86 = vector.shape_cast %11 : vector<2x1xi1> to vector<2x1xi1>
    %87 = vector.broadcast %86 : vector<2x1xi1> to vector<2x128xi1>
    %88 = arith.select %87, %82, %53 : vector<2x128xi1>, vector<2x128xf32>
    %c1_34 = arith.constant 1 : index
    %c0_35 = arith.constant 0 : index
    %c0_36 = arith.constant 0 : index
    %89 = vector.load %arg7[%c1_34, %c0_35, %c0_36] : memref<2x2x128xf32, #tpu.memory_space<vmem>>, vector<1x2x128xf32>
    %90 = vector.shape_cast %89 : vector<1x2x128xf32> to vector<2x128xf32>
    %91 = vector.shape_cast %88 : vector<2x128xf32> to vector<1x2x128xf32>
    tpu.vector_store %arg7[%c1_34, %c0_35, %c0_36], %91 {strides = array<i32>} : memref<2x2x128xf32, #tpu.memory_space<vmem>>, vector<1x2x128xf32>,
    %c1_i32 = arith.constant 1 : i32
    %92 = arith.addi %0, %c1_i32 : i32
    %93 = arith.index_cast %c1_i32 : i32 to index
    %c0_37 = arith.constant 0 : index
    %c0_38 = arith.constant 0 : index
    %94 = vector.load %arg2[%93, %c0_37, %c0_38] : memref<8x2x512xf32, #tpu.memory_space<vmem>>, vector<1x2x512xf32>
    %95 = vector.shape_cast %94 : vector<1x2x512xf32> to vector<2x512xf32>
    %96 = vector.broadcast %92 : i32 to vector<2x1xi32>
    %97 = arith.cmpi sgt, %5, %96 : vector<2x1xi32>
    %c0_39 = arith.constant 0 : index
    %c0_40 = arith.constant 0 : index
    %c0_41 = arith.constant 0 : index
    %98 = vector.load %arg7[%c0_39, %c0_40, %c0_41] : memref<2x2x128xf32, #tpu.memory_space<vmem>>, vector<1x2x128xf32>
    %99 = vector.shape_cast %98 : vector<1x2x128xf32> to vector<2x128xf32>
    %cst_42 = arith.constant dense<0.000000e+00> : vector<2x512xf32>
    %100 = tpu.matmul %99, %4, %cst_42 {dimension_numbers = #tpu.dot_dimension_numbers<[1], [0], [0], [1], [0, 0, 1, 1], [], []>} : vector<2x128xf32>, vector<128x512xf32>, vector<2x512xf32> -> vector<2x512xf32>
    %101 = arith.addf %95, %100 : vector<2x512xf32>
    %102 = vector.extract_strided_slice %101 {offsets = [0, 0], sizes = [2, 128], strides = [1, 1]} : vector<2x512xf32> to vector<2x128xf32>
    %103 = arith.negf %102 : vector<2x128xf32>
    %104 = math.exp %103 : vector<2x128xf32>
    %cst_43 = arith.constant 1.000000e+00 : f32
    %105 = vector.broadcast %cst_43 : f32 to vector<2x128xf32>
    %106 = arith.addf %105, %104 : vector<2x128xf32>
    %107 = arith.divf %105, %106 : vector<2x128xf32>
    %108 = vector.extract_strided_slice %101 {offsets = [0, 128], sizes = [2, 128], strides = [1, 1]} : vector<2x512xf32> to vector<2x128xf32>
    %109 = arith.negf %108 : vector<2x128xf32>
    %110 = math.exp %109 : vector<2x128xf32>
    %cst_44 = arith.constant 1.000000e+00 : f32
    %111 = vector.broadcast %cst_44 : f32 to vector<2x128xf32>
    %112 = arith.addf %111, %110 : vector<2x128xf32>
    %113 = arith.divf %111, %112 : vector<2x128xf32>
    %114 = vector.extract_strided_slice %101 {offsets = [0, 256], sizes = [2, 128], strides = [1, 1]} : vector<2x512xf32> to vector<2x128xf32>
    %115 = math.tanh %114 : vector<2x128xf32>
    %116 = vector.extract_strided_slice %101 {offsets = [0, 384], sizes = [2, 128], strides = [1, 1]} : vector<2x512xf32> to vector<2x128xf32>
    %117 = arith.negf %116 : vector<2x128xf32>
    %118 = math.exp %117 : vector<2x128xf32>
    %cst_45 = arith.constant 1.000000e+00 : f32
    %119 = vector.broadcast %cst_45 : f32 to vector<2x128xf32>
    %120 = arith.addf %119, %118 : vector<2x128xf32>
    %121 = arith.divf %119, %120 : vector<2x128xf32>
    %c0_46 = arith.constant 0 : index
    %c0_47 = arith.constant 0 : index
    %c0_48 = arith.constant 0 : index
    %122 = vector.load %arg8[%c0_46, %c0_47, %c0_48] : memref<2x2x128xf32, #tpu.memory_space<vmem>>, vector<1x2x128xf32>
    %123 = vector.shape_cast %122 : vector<1x2x128xf32> to vector<2x128xf32>
    %124 = arith.mulf %113, %123 : vector<2x128xf32>
    %125 = arith.mulf %107, %115 : vector<2x128xf32>
    %126 = arith.addf %124, %125 : vector<2x128xf32>
    %127 = math.tanh %126 : vector<2x128xf32>
    %128 = arith.mulf %121, %127 : vector<2x128xf32>
    %c0_49 = arith.constant 0 : index
    %c0_50 = arith.constant 0 : index
    %c0_51 = arith.constant 0 : index
    %129 = vector.load %arg8[%c0_49, %c0_50, %c0_51] : memref<2x2x128xf32, #tpu.memory_space<vmem>>, vector<1x2x128xf32>
    %130 = vector.shape_cast %129 : vector<1x2x128xf32> to vector<2x128xf32>
    %131 = vector.shape_cast %126 : vector<2x128xf32> to vector<1x2x128xf32>
    tpu.vector_store %arg8[%c0_49, %c0_50, %c0_51], %131 {strides = array<i32>} : memref<2x2x128xf32, #tpu.memory_space<vmem>>, vector<1x2x128xf32>,
    %132 = vector.shape_cast %97 : vector<2x1xi1> to vector<2x1xi1>
    %133 = vector.broadcast %132 : vector<2x1xi1> to vector<2x128xi1>
    %134 = arith.select %133, %128, %99 : vector<2x128xi1>, vector<2x128xf32>
    %c0_52 = arith.constant 0 : index
    %c0_53 = arith.constant 0 : index
    %c0_54 = arith.constant 0 : index
    %135 = vector.load %arg7[%c0_52, %c0_53, %c0_54] : memref<2x2x128xf32, #tpu.memory_space<vmem>>, vector<1x2x128xf32>
    %136 = vector.shape_cast %135 : vector<1x2x128xf32> to vector<2x128xf32>
    %137 = vector.shape_cast %134 : vector<2x128xf32> to vector<1x2x128xf32>
    tpu.vector_store %arg7[%c0_52, %c0_53, %c0_54], %137 {strides = array<i32>} : memref<2x2x128xf32, #tpu.memory_space<vmem>>, vector<1x2x128xf32>,
    %c1_55 = arith.constant 1 : index
    %c0_56 = arith.constant 0 : index
    %c0_57 = arith.constant 0 : index
    %138 = vector.load %arg7[%c1_55, %c0_56, %c0_57] : memref<2x2x128xf32, #tpu.memory_space<vmem>>, vector<1x2x128xf32>
    %139 = vector.shape_cast %138 : vector<1x2x128xf32> to vector<2x128xf32>
    %cst_58 = arith.constant dense<0.000000e+00> : vector<2x512xf32>
    %140 = tpu.matmul %139, %4, %cst_58 {dimension_numbers = #tpu.dot_dimension_numbers<[1], [0], [0], [1], [0, 0, 1, 1], [], []>} : vector<2x128xf32>, vector<128x512xf32>, vector<2x512xf32> -> vector<2x512xf32>
    %141 = arith.addf %95, %140 : vector<2x512xf32>
    %142 = vector.extract_strided_slice %141 {offsets = [0, 0], sizes = [2, 128], strides = [1, 1]} : vector<2x512xf32> to vector<2x128xf32>
    %143 = arith.negf %142 : vector<2x128xf32>
    %144 = math.exp %143 : vector<2x128xf32>
    %cst_59 = arith.constant 1.000000e+00 : f32
    %145 = vector.broadcast %cst_59 : f32 to vector<2x128xf32>
    %146 = arith.addf %145, %144 : vector<2x128xf32>
    %147 = arith.divf %145, %146 : vector<2x128xf32>
    %148 = vector.extract_strided_slice %141 {offsets = [0, 128], sizes = [2, 128], strides = [1, 1]} : vector<2x512xf32> to vector<2x128xf32>
    %149 = arith.negf %148 : vector<2x128xf32>
    %150 = math.exp %149 : vector<2x128xf32>
    %cst_60 = arith.constant 1.000000e+00 : f32
    %151 = vector.broadcast %cst_60 : f32 to vector<2x128xf32>
    %152 = arith.addf %151, %150 : vector<2x128xf32>
    %153 = arith.divf %151, %152 : vector<2x128xf32>
    %154 = vector.extract_strided_slice %141 {offsets = [0, 256], sizes = [2, 128], strides = [1, 1]} : vector<2x512xf32> to vector<2x128xf32>
    %155 = math.tanh %154 : vector<2x128xf32>
    %156 = vector.extract_strided_slice %141 {offsets = [0, 384], sizes = [2, 128], strides = [1, 1]} : vector<2x512xf32> to vector<2x128xf32>
    %157 = arith.negf %156 : vector<2x128xf32>
    %158 = math.exp %157 : vector<2x128xf32>
    %cst_61 = arith.constant 1.000000e+00 : f32
    %159 = vector.broadcast %cst_61 : f32 to vector<2x128xf32>
    %160 = arith.addf %159, %158 : vector<2x128xf32>
    %161 = arith.divf %159, %160 : vector<2x128xf32>
    %c1_62 = arith.constant 1 : index
    %c0_63 = arith.constant 0 : index
    %c0_64 = arith.constant 0 : index
    %162 = vector.load %arg8[%c1_62, %c0_63, %c0_64] : memref<2x2x128xf32, #tpu.memory_space<vmem>>, vector<1x2x128xf32>
    %163 = vector.shape_cast %162 : vector<1x2x128xf32> to vector<2x128xf32>
    %164 = arith.mulf %153, %163 : vector<2x128xf32>
    %165 = arith.mulf %147, %155 : vector<2x128xf32>
    %166 = arith.addf %164, %165 : vector<2x128xf32>
    %167 = math.tanh %166 : vector<2x128xf32>
    %168 = arith.mulf %161, %167 : vector<2x128xf32>
    %c1_65 = arith.constant 1 : index
    %c0_66 = arith.constant 0 : index
    %c0_67 = arith.constant 0 : index
    %169 = vector.load %arg8[%c1_65, %c0_66, %c0_67] : memref<2x2x128xf32, #tpu.memory_space<vmem>>, vector<1x2x128xf32>
    %170 = vector.shape_cast %169 : vector<1x2x128xf32> to vector<2x128xf32>
    %171 = vector.shape_cast %166 : vector<2x128xf32> to vector<1x2x128xf32>
    tpu.vector_store %arg8[%c1_65, %c0_66, %c0_67], %171 {strides = array<i32>} : memref<2x2x128xf32, #tpu.memory_space<vmem>>, vector<1x2x128xf32>,
    %172 = vector.shape_cast %97 : vector<2x1xi1> to vector<2x1xi1>
    %173 = vector.broadcast %172 : vector<2x1xi1> to vector<2x128xi1>
    %174 = arith.select %173, %168, %139 : vector<2x128xi1>, vector<2x128xf32>
    %c1_68 = arith.constant 1 : index
    %c0_69 = arith.constant 0 : index
    %c0_70 = arith.constant 0 : index
    %175 = vector.load %arg7[%c1_68, %c0_69, %c0_70] : memref<2x2x128xf32, #tpu.memory_space<vmem>>, vector<1x2x128xf32>
    %176 = vector.shape_cast %175 : vector<1x2x128xf32> to vector<2x128xf32>
    %177 = vector.shape_cast %174 : vector<2x128xf32> to vector<1x2x128xf32>
    tpu.vector_store %arg7[%c1_68, %c0_69, %c0_70], %177 {strides = array<i32>} : memref<2x2x128xf32, #tpu.memory_space<vmem>>, vector<1x2x128xf32>,
    %c2_i32 = arith.constant 2 : i32
    %178 = arith.addi %0, %c2_i32 : i32
    %179 = arith.index_cast %c2_i32 : i32 to index
    %c0_71 = arith.constant 0 : index
    %c0_72 = arith.constant 0 : index
    %180 = vector.load %arg2[%179, %c0_71, %c0_72] : memref<8x2x512xf32, #tpu.memory_space<vmem>>, vector<1x2x512xf32>
    %181 = vector.shape_cast %180 : vector<1x2x512xf32> to vector<2x512xf32>
    %182 = vector.broadcast %178 : i32 to vector<2x1xi32>
    %183 = arith.cmpi sgt, %5, %182 : vector<2x1xi32>
    %c0_73 = arith.constant 0 : index
    %c0_74 = arith.constant 0 : index
    %c0_75 = arith.constant 0 : index
    %184 = vector.load %arg7[%c0_73, %c0_74, %c0_75] : memref<2x2x128xf32, #tpu.memory_space<vmem>>, vector<1x2x128xf32>
    %185 = vector.shape_cast %184 : vector<1x2x128xf32> to vector<2x128xf32>
    %cst_76 = arith.constant dense<0.000000e+00> : vector<2x512xf32>
    %186 = tpu.matmul %185, %4, %cst_76 {dimension_numbers = #tpu.dot_dimension_numbers<[1], [0], [0], [1], [0, 0, 1, 1], [], []>} : vector<2x128xf32>, vector<128x512xf32>, vector<2x512xf32> -> vector<2x512xf32>
    %187 = arith.addf %181, %186 : vector<2x512xf32>
    %188 = vector.extract_strided_slice %187 {offsets = [0, 0], sizes = [2, 128], strides = [1, 1]} : vector<2x512xf32> to vector<2x128xf32>
    %189 = arith.negf %188 : vector<2x128xf32>
    %190 = math.exp %189 : vector<2x128xf32>
    %cst_77 = arith.constant 1.000000e+00 : f32
    %191 = vector.broadcast %cst_77 : f32 to vector<2x128xf32>
    %192 = arith.addf %191, %190 : vector<2x128xf32>
    %193 = arith.divf %191, %192 : vector<2x128xf32>
    %194 = vector.extract_strided_slice %187 {offsets = [0, 128], sizes = [2, 128], strides = [1, 1]} : vector<2x512xf32> to vector<2x128xf32>
    %195 = arith.negf %194 : vector<2x128xf32>
    %196 = math.exp %195 : vector<2x128xf32>
    %cst_78 = arith.constant 1.000000e+00 : f32
    %197 = vector.broadcast %cst_78 : f32 to vector<2x128xf32>
    %198 = arith.addf %197, %196 : vector<2x128xf32>
    %199 = arith.divf %197, %198 : vector<2x128xf32>
    %200 = vector.extract_strided_slice %187 {offsets = [0, 256], sizes = [2, 128], strides = [1, 1]} : vector<2x512xf32> to vector<2x128xf32>
    %201 = math.tanh %200 : vector<2x128xf32>
    %202 = vector.extract_strided_slice %187 {offsets = [0, 384], sizes = [2, 128], strides = [1, 1]} : vector<2x512xf32> to vector<2x128xf32>
    %203 = arith.negf %202 : vector<2x128xf32>
    %204 = math.exp %203 : vector<2x128xf32>
    %cst_79 = arith.constant 1.000000e+00 : f32
    %205 = vector.broadcast %cst_79 : f32 to vector<2x128xf32>
    %206 = arith.addf %205, %204 : vector<2x128xf32>
    %207 = arith.divf %205, %206 : vector<2x128xf32>
    %c0_80 = arith.constant 0 : index
    %c0_81 = arith.constant 0 : index
    %c0_82 = arith.constant 0 : index
    %208 = vector.load %arg8[%c0_80, %c0_81, %c0_82] : memref<2x2x128xf32, #tpu.memory_space<vmem>>, vector<1x2x128xf32>
    %209 = vector.shape_cast %208 : vector<1x2x128xf32> to vector<2x128xf32>
    %210 = arith.mulf %199, %209 : vector<2x128xf32>
    %211 = arith.mulf %193, %201 : vector<2x128xf32>
    %212 = arith.addf %210, %211 : vector<2x128xf32>
    %213 = math.tanh %212 : vector<2x128xf32>
    %214 = arith.mulf %207, %213 : vector<2x128xf32>
    %c0_83 = arith.constant 0 : index
    %c0_84 = arith.constant 0 : index
    %c0_85 = arith.constant 0 : index
    %215 = vector.load %arg8[%c0_83, %c0_84, %c0_85] : memref<2x2x128xf32, #tpu.memory_space<vmem>>, vector<1x2x128xf32>
    %216 = vector.shape_cast %215 : vector<1x2x128xf32> to vector<2x128xf32>
    %217 = vector.shape_cast %212 : vector<2x128xf32> to vector<1x2x128xf32>
    tpu.vector_store %arg8[%c0_83, %c0_84, %c0_85], %217 {strides = array<i32>} : memref<2x2x128xf32, #tpu.memory_space<vmem>>, vector<1x2x128xf32>,
    %218 = vector.shape_cast %183 : vector<2x1xi1> to vector<2x1xi1>
    %219 = vector.broadcast %218 : vector<2x1xi1> to vector<2x128xi1>
    %220 = arith.select %219, %214, %185 : vector<2x128xi1>, vector<2x128xf32>
    %c0_86 = arith.constant 0 : index
    %c0_87 = arith.constant 0 : index
    %c0_88 = arith.constant 0 : index
    %221 = vector.load %arg7[%c0_86, %c0_87, %c0_88] : memref<2x2x128xf32, #tpu.memory_space<vmem>>, vector<1x2x128xf32>
    %222 = vector.shape_cast %221 : vector<1x2x128xf32> to vector<2x128xf32>
    %223 = vector.shape_cast %220 : vector<2x128xf32> to vector<1x2x128xf32>
    tpu.vector_store %arg7[%c0_86, %c0_87, %c0_88], %223 {strides = array<i32>} : memref<2x2x128xf32, #tpu.memory_space<vmem>>, vector<1x2x128xf32>,
    %c1_89 = arith.constant 1 : index
    %c0_90 = arith.constant 0 : index
    %c0_91 = arith.constant 0 : index
    %224 = vector.load %arg7[%c1_89, %c0_90, %c0_91] : memref<2x2x128xf32, #tpu.memory_space<vmem>>, vector<1x2x128xf32>
    %225 = vector.shape_cast %224 : vector<1x2x128xf32> to vector<2x128xf32>
    %cst_92 = arith.constant dense<0.000000e+00> : vector<2x512xf32>
    %226 = tpu.matmul %225, %4, %cst_92 {dimension_numbers = #tpu.dot_dimension_numbers<[1], [0], [0], [1], [0, 0, 1, 1], [], []>} : vector<2x128xf32>, vector<128x512xf32>, vector<2x512xf32> -> vector<2x512xf32>
    %227 = arith.addf %181, %226 : vector<2x512xf32>
    %228 = vector.extract_strided_slice %227 {offsets = [0, 0], sizes = [2, 128], strides = [1, 1]} : vector<2x512xf32> to vector<2x128xf32>
    %229 = arith.negf %228 : vector<2x128xf32>
    %230 = math.exp %229 : vector<2x128xf32>
    %cst_93 = arith.constant 1.000000e+00 : f32
    %231 = vector.broadcast %cst_93 : f32 to vector<2x128xf32>
    %232 = arith.addf %231, %230 : vector<2x128xf32>
    %233 = arith.divf %231, %232 : vector<2x128xf32>
    %234 = vector.extract_strided_slice %227 {offsets = [0, 128], sizes = [2, 128], strides = [1, 1]} : vector<2x512xf32> to vector<2x128xf32>
    %235 = arith.negf %234 : vector<2x128xf32>
    %236 = math.exp %235 : vector<2x128xf32>
    %cst_94 = arith.constant 1.000000e+00 : f32
    %237 = vector.broadcast %cst_94 : f32 to vector<2x128xf32>
    %238 = arith.addf %237, %236 : vector<2x128xf32>
    %239 = arith.divf %237, %238 : vector<2x128xf32>
    %240 = vector.extract_strided_slice %227 {offsets = [0, 256], sizes = [2, 128], strides = [1, 1]} : vector<2x512xf32> to vector<2x128xf32>
    %241 = math.tanh %240 : vector<2x128xf32>
    %242 = vector.extract_strided_slice %227 {offsets = [0, 384], sizes = [2, 128], strides = [1, 1]} : vector<2x512xf32> to vector<2x128xf32>
    %243 = arith.negf %242 : vector<2x128xf32>
    %244 = math.exp %243 : vector<2x128xf32>
    %cst_95 = arith.constant 1.000000e+00 : f32
    %245 = vector.broadcast %cst_95 : f32 to vector<2x128xf32>
    %246 = arith.addf %245, %244 : vector<2x128xf32>
    %247 = arith.divf %245, %246 : vector<2x128xf32>
    %c1_96 = arith.constant 1 : index
    %c0_97 = arith.constant 0 : index
    %c0_98 = arith.constant 0 : index
    %248 = vector.load %arg8[%c1_96, %c0_97, %c0_98] : memref<2x2x128xf32, #tpu.memory_space<vmem>>, vector<1x2x128xf32>
    %249 = vector.shape_cast %248 : vector<1x2x128xf32> to vector<2x128xf32>
    %250 = arith.mulf %239, %249 : vector<2x128xf32>
    %251 = arith.mulf %233, %241 : vector<2x128xf32>
    %252 = arith.addf %250, %251 : vector<2x128xf32>
    %253 = math.tanh %252 : vector<2x128xf32>
    %254 = arith.mulf %247, %253 : vector<2x128xf32>
    %c1_99 = arith.constant 1 : index
    %c0_100 = arith.constant 0 : index
    %c0_101 = arith.constant 0 : index
    %255 = vector.load %arg8[%c1_99, %c0_100, %c0_101] : memref<2x2x128xf32, #tpu.memory_space<vmem>>, vector<1x2x128xf32>
    %256 = vector.shape_cast %255 : vector<1x2x128xf32> to vector<2x128xf32>
    %257 = vector.shape_cast %252 : vector<2x128xf32> to vector<1x2x128xf32>
    tpu.vector_store %arg8[%c1_99, %c0_100, %c0_101], %257 {strides = array<i32>} : memref<2x2x128xf32, #tpu.memory_space<vmem>>, vector<1x2x128xf32>,
    %258 = vector.shape_cast %183 : vector<2x1xi1> to vector<2x1xi1>
    %259 = vector.broadcast %258 : vector<2x1xi1> to vector<2x128xi1>
    %260 = arith.select %259, %254, %225 : vector<2x128xi1>, vector<2x128xf32>
    %c1_102 = arith.constant 1 : index
    %c0_103 = arith.constant 0 : index
    %c0_104 = arith.constant 0 : index
    %261 = vector.load %arg7[%c1_102, %c0_103, %c0_104] : memref<2x2x128xf32, #tpu.memory_space<vmem>>, vector<1x2x128xf32>
    %262 = vector.shape_cast %261 : vector<1x2x128xf32> to vector<2x128xf32>
    %263 = vector.shape_cast %260 : vector<2x128xf32> to vector<1x2x128xf32>
    tpu.vector_store %arg7[%c1_102, %c0_103, %c0_104], %263 {strides = array<i32>} : memref<2x2x128xf32, #tpu.memory_space<vmem>>, vector<1x2x128xf32>,
    %c3_i32 = arith.constant 3 : i32
    %264 = arith.addi %0, %c3_i32 : i32
    %265 = arith.index_cast %c3_i32 : i32 to index
    %c0_105 = arith.constant 0 : index
    %c0_106 = arith.constant 0 : index
    %266 = vector.load %arg2[%265, %c0_105, %c0_106] : memref<8x2x512xf32, #tpu.memory_space<vmem>>, vector<1x2x512xf32>
    %267 = vector.shape_cast %266 : vector<1x2x512xf32> to vector<2x512xf32>
    %268 = vector.broadcast %264 : i32 to vector<2x1xi32>
    %269 = arith.cmpi sgt, %5, %268 : vector<2x1xi32>
    %c0_107 = arith.constant 0 : index
    %c0_108 = arith.constant 0 : index
    %c0_109 = arith.constant 0 : index
    %270 = vector.load %arg7[%c0_107, %c0_108, %c0_109] : memref<2x2x128xf32, #tpu.memory_space<vmem>>, vector<1x2x128xf32>
    %271 = vector.shape_cast %270 : vector<1x2x128xf32> to vector<2x128xf32>
    %cst_110 = arith.constant dense<0.000000e+00> : vector<2x512xf32>
    %272 = tpu.matmul %271, %4, %cst_110 {dimension_numbers = #tpu.dot_dimension_numbers<[1], [0], [0], [1], [0, 0, 1, 1], [], []>} : vector<2x128xf32>, vector<128x512xf32>, vector<2x512xf32> -> vector<2x512xf32>
    %273 = arith.addf %267, %272 : vector<2x512xf32>
    %274 = vector.extract_strided_slice %273 {offsets = [0, 0], sizes = [2, 128], strides = [1, 1]} : vector<2x512xf32> to vector<2x128xf32>
    %275 = arith.negf %274 : vector<2x128xf32>
    %276 = math.exp %275 : vector<2x128xf32>
    %cst_111 = arith.constant 1.000000e+00 : f32
    %277 = vector.broadcast %cst_111 : f32 to vector<2x128xf32>
    %278 = arith.addf %277, %276 : vector<2x128xf32>
    %279 = arith.divf %277, %278 : vector<2x128xf32>
    %280 = vector.extract_strided_slice %273 {offsets = [0, 128], sizes = [2, 128], strides = [1, 1]} : vector<2x512xf32> to vector<2x128xf32>
    %281 = arith.negf %280 : vector<2x128xf32>
    %282 = math.exp %281 : vector<2x128xf32>
    %cst_112 = arith.constant 1.000000e+00 : f32
    %283 = vector.broadcast %cst_112 : f32 to vector<2x128xf32>
    %284 = arith.addf %283, %282 : vector<2x128xf32>
    %285 = arith.divf %283, %284 : vector<2x128xf32>
    %286 = vector.extract_strided_slice %273 {offsets = [0, 256], sizes = [2, 128], strides = [1, 1]} : vector<2x512xf32> to vector<2x128xf32>
    %287 = math.tanh %286 : vector<2x128xf32>
    %288 = vector.extract_strided_slice %273 {offsets = [0, 384], sizes = [2, 128], strides = [1, 1]} : vector<2x512xf32> to vector<2x128xf32>
    %289 = arith.negf %288 : vector<2x128xf32>
    %290 = math.exp %289 : vector<2x128xf32>
    %cst_113 = arith.constant 1.000000e+00 : f32
    %291 = vector.broadcast %cst_113 : f32 to vector<2x128xf32>
    %292 = arith.addf %291, %290 : vector<2x128xf32>
    %293 = arith.divf %291, %292 : vector<2x128xf32>
    %c0_114 = arith.constant 0 : index
    %c0_115 = arith.constant 0 : index
    %c0_116 = arith.constant 0 : index
    %294 = vector.load %arg8[%c0_114, %c0_115, %c0_116] : memref<2x2x128xf32, #tpu.memory_space<vmem>>, vector<1x2x128xf32>
    %295 = vector.shape_cast %294 : vector<1x2x128xf32> to vector<2x128xf32>
    %296 = arith.mulf %285, %295 : vector<2x128xf32>
    %297 = arith.mulf %279, %287 : vector<2x128xf32>
    %298 = arith.addf %296, %297 : vector<2x128xf32>
    %299 = math.tanh %298 : vector<2x128xf32>
    %300 = arith.mulf %293, %299 : vector<2x128xf32>
    %c0_117 = arith.constant 0 : index
    %c0_118 = arith.constant 0 : index
    %c0_119 = arith.constant 0 : index
    %301 = vector.load %arg8[%c0_117, %c0_118, %c0_119] : memref<2x2x128xf32, #tpu.memory_space<vmem>>, vector<1x2x128xf32>
    %302 = vector.shape_cast %301 : vector<1x2x128xf32> to vector<2x128xf32>
    %303 = vector.shape_cast %298 : vector<2x128xf32> to vector<1x2x128xf32>
    tpu.vector_store %arg8[%c0_117, %c0_118, %c0_119], %303 {strides = array<i32>} : memref<2x2x128xf32, #tpu.memory_space<vmem>>, vector<1x2x128xf32>,
    %304 = vector.shape_cast %269 : vector<2x1xi1> to vector<2x1xi1>
    %305 = vector.broadcast %304 : vector<2x1xi1> to vector<2x128xi1>
    %306 = arith.select %305, %300, %271 : vector<2x128xi1>, vector<2x128xf32>
    %c0_120 = arith.constant 0 : index
    %c0_121 = arith.constant 0 : index
    %c0_122 = arith.constant 0 : index
    %307 = vector.load %arg7[%c0_120, %c0_121, %c0_122] : memref<2x2x128xf32, #tpu.memory_space<vmem>>, vector<1x2x128xf32>
    %308 = vector.shape_cast %307 : vector<1x2x128xf32> to vector<2x128xf32>
    %309 = vector.shape_cast %306 : vector<2x128xf32> to vector<1x2x128xf32>
    tpu.vector_store %arg7[%c0_120, %c0_121, %c0_122], %309 {strides = array<i32>} : memref<2x2x128xf32, #tpu.memory_space<vmem>>, vector<1x2x128xf32>,
    %c1_123 = arith.constant 1 : index
    %c0_124 = arith.constant 0 : index
    %c0_125 = arith.constant 0 : index
    %310 = vector.load %arg7[%c1_123, %c0_124, %c0_125] : memref<2x2x128xf32, #tpu.memory_space<vmem>>, vector<1x2x128xf32>
    %311 = vector.shape_cast %310 : vector<1x2x128xf32> to vector<2x128xf32>
    %cst_126 = arith.constant dense<0.000000e+00> : vector<2x512xf32>
    %312 = tpu.matmul %311, %4, %cst_126 {dimension_numbers = #tpu.dot_dimension_numbers<[1], [0], [0], [1], [0, 0, 1, 1], [], []>} : vector<2x128xf32>, vector<128x512xf32>, vector<2x512xf32> -> vector<2x512xf32>
    %313 = arith.addf %267, %312 : vector<2x512xf32>
    %314 = vector.extract_strided_slice %313 {offsets = [0, 0], sizes = [2, 128], strides = [1, 1]} : vector<2x512xf32> to vector<2x128xf32>
    %315 = arith.negf %314 : vector<2x128xf32>
    %316 = math.exp %315 : vector<2x128xf32>
    %cst_127 = arith.constant 1.000000e+00 : f32
    %317 = vector.broadcast %cst_127 : f32 to vector<2x128xf32>
    %318 = arith.addf %317, %316 : vector<2x128xf32>
    %319 = arith.divf %317, %318 : vector<2x128xf32>
    %320 = vector.extract_strided_slice %313 {offsets = [0, 128], sizes = [2, 128], strides = [1, 1]} : vector<2x512xf32> to vector<2x128xf32>
    %321 = arith.negf %320 : vector<2x128xf32>
    %322 = math.exp %321 : vector<2x128xf32>
    %cst_128 = arith.constant 1.000000e+00 : f32
    %323 = vector.broadcast %cst_128 : f32 to vector<2x128xf32>
    %324 = arith.addf %323, %322 : vector<2x128xf32>
    %325 = arith.divf %323, %324 : vector<2x128xf32>
    %326 = vector.extract_strided_slice %313 {offsets = [0, 256], sizes = [2, 128], strides = [1, 1]} : vector<2x512xf32> to vector<2x128xf32>
    %327 = math.tanh %326 : vector<2x128xf32>
    %328 = vector.extract_strided_slice %313 {offsets = [0, 384], sizes = [2, 128], strides = [1, 1]} : vector<2x512xf32> to vector<2x128xf32>
    %329 = arith.negf %328 : vector<2x128xf32>
    %330 = math.exp %329 : vector<2x128xf32>
    %cst_129 = arith.constant 1.000000e+00 : f32
    %331 = vector.broadcast %cst_129 : f32 to vector<2x128xf32>
    %332 = arith.addf %331, %330 : vector<2x128xf32>
    %333 = arith.divf %331, %332 : vector<2x128xf32>
    %c1_130 = arith.constant 1 : index
    %c0_131 = arith.constant 0 : index
    %c0_132 = arith.constant 0 : index
    %334 = vector.load %arg8[%c1_130, %c0_131, %c0_132] : memref<2x2x128xf32, #tpu.memory_space<vmem>>, vector<1x2x128xf32>
    %335 = vector.shape_cast %334 : vector<1x2x128xf32> to vector<2x128xf32>
    %336 = arith.mulf %325, %335 : vector<2x128xf32>
    %337 = arith.mulf %319, %327 : vector<2x128xf32>
    %338 = arith.addf %336, %337 : vector<2x128xf32>
    %339 = math.tanh %338 : vector<2x128xf32>
    %340 = arith.mulf %333, %339 : vector<2x128xf32>
    %c1_133 = arith.constant 1 : index
    %c0_134 = arith.constant 0 : index
    %c0_135 = arith.constant 0 : index
    %341 = vector.load %arg8[%c1_133, %c0_134, %c0_135] : memref<2x2x128xf32, #tpu.memory_space<vmem>>, vector<1x2x128xf32>
    %342 = vector.shape_cast %341 : vector<1x2x128xf32> to vector<2x128xf32>
    %343 = vector.shape_cast %338 : vector<2x128xf32> to vector<1x2x128xf32>
    tpu.vector_store %arg8[%c1_133, %c0_134, %c0_135], %343 {strides = array<i32>} : memref<2x2x128xf32, #tpu.memory_space<vmem>>, vector<1x2x128xf32>,
    %344 = vector.shape_cast %269 : vector<2x1xi1> to vector<2x1xi1>
    %345 = vector.broadcast %344 : vector<2x1xi1> to vector<2x128xi1>
    %346 = arith.select %345, %340, %311 : vector<2x128xi1>, vector<2x128xf32>
    %c1_136 = arith.constant 1 : index
    %c0_137 = arith.constant 0 : index
    %c0_138 = arith.constant 0 : index
    %347 = vector.load %arg7[%c1_136, %c0_137, %c0_138] : memref<2x2x128xf32, #tpu.memory_space<vmem>>, vector<1x2x128xf32>
    %348 = vector.shape_cast %347 : vector<1x2x128xf32> to vector<2x128xf32>
    %349 = vector.shape_cast %346 : vector<2x128xf32> to vector<1x2x128xf32>
    tpu.vector_store %arg7[%c1_136, %c0_137, %c0_138], %349 {strides = array<i32>} : memref<2x2x128xf32, #tpu.memory_space<vmem>>, vector<1x2x128xf32>,
    %c4_i32 = arith.constant 4 : i32
    %350 = arith.addi %0, %c4_i32 : i32
    %351 = arith.index_cast %c4_i32 : i32 to index
    %c0_139 = arith.constant 0 : index
    %c0_140 = arith.constant 0 : index
    %352 = vector.load %arg2[%351, %c0_139, %c0_140] : memref<8x2x512xf32, #tpu.memory_space<vmem>>, vector<1x2x512xf32>
    %353 = vector.shape_cast %352 : vector<1x2x512xf32> to vector<2x512xf32>
    %354 = vector.broadcast %350 : i32 to vector<2x1xi32>
    %355 = arith.cmpi sgt, %5, %354 : vector<2x1xi32>
    %c0_141 = arith.constant 0 : index
    %c0_142 = arith.constant 0 : index
    %c0_143 = arith.constant 0 : index
    %356 = vector.load %arg7[%c0_141, %c0_142, %c0_143] : memref<2x2x128xf32, #tpu.memory_space<vmem>>, vector<1x2x128xf32>
    %357 = vector.shape_cast %356 : vector<1x2x128xf32> to vector<2x128xf32>
    %cst_144 = arith.constant dense<0.000000e+00> : vector<2x512xf32>
    %358 = tpu.matmul %357, %4, %cst_144 {dimension_numbers = #tpu.dot_dimension_numbers<[1], [0], [0], [1], [0, 0, 1, 1], [], []>} : vector<2x128xf32>, vector<128x512xf32>, vector<2x512xf32> -> vector<2x512xf32>
    %359 = arith.addf %353, %358 : vector<2x512xf32>
    %360 = vector.extract_strided_slice %359 {offsets = [0, 0], sizes = [2, 128], strides = [1, 1]} : vector<2x512xf32> to vector<2x128xf32>
    %361 = arith.negf %360 : vector<2x128xf32>
    %362 = math.exp %361 : vector<2x128xf32>
    %cst_145 = arith.constant 1.000000e+00 : f32
    %363 = vector.broadcast %cst_145 : f32 to vector<2x128xf32>
    %364 = arith.addf %363, %362 : vector<2x128xf32>
    %365 = arith.divf %363, %364 : vector<2x128xf32>
    %366 = vector.extract_strided_slice %359 {offsets = [0, 128], sizes = [2, 128], strides = [1, 1]} : vector<2x512xf32> to vector<2x128xf32>
    %367 = arith.negf %366 : vector<2x128xf32>
    %368 = math.exp %367 : vector<2x128xf32>
    %cst_146 = arith.constant 1.000000e+00 : f32
    %369 = vector.broadcast %cst_146 : f32 to vector<2x128xf32>
    %370 = arith.addf %369, %368 : vector<2x128xf32>
    %371 = arith.divf %369, %370 : vector<2x128xf32>
    %372 = vector.extract_strided_slice %359 {offsets = [0, 256], sizes = [2, 128], strides = [1, 1]} : vector<2x512xf32> to vector<2x128xf32>
    %373 = math.tanh %372 : vector<2x128xf32>
    %374 = vector.extract_strided_slice %359 {offsets = [0, 384], sizes = [2, 128], strides = [1, 1]} : vector<2x512xf32> to vector<2x128xf32>
    %375 = arith.negf %374 : vector<2x128xf32>
    %376 = math.exp %375 : vector<2x128xf32>
    %cst_147 = arith.constant 1.000000e+00 : f32
    %377 = vector.broadcast %cst_147 : f32 to vector<2x128xf32>
    %378 = arith.addf %377, %376 : vector<2x128xf32>
    %379 = arith.divf %377, %378 : vector<2x128xf32>
    %c0_148 = arith.constant 0 : index
    %c0_149 = arith.constant 0 : index
    %c0_150 = arith.constant 0 : index
    %380 = vector.load %arg8[%c0_148, %c0_149, %c0_150] : memref<2x2x128xf32, #tpu.memory_space<vmem>>, vector<1x2x128xf32>
    %381 = vector.shape_cast %380 : vector<1x2x128xf32> to vector<2x128xf32>
    %382 = arith.mulf %371, %381 : vector<2x128xf32>
    %383 = arith.mulf %365, %373 : vector<2x128xf32>
    %384 = arith.addf %382, %383 : vector<2x128xf32>
    %385 = math.tanh %384 : vector<2x128xf32>
    %386 = arith.mulf %379, %385 : vector<2x128xf32>
    %c0_151 = arith.constant 0 : index
    %c0_152 = arith.constant 0 : index
    %c0_153 = arith.constant 0 : index
    %387 = vector.load %arg8[%c0_151, %c0_152, %c0_153] : memref<2x2x128xf32, #tpu.memory_space<vmem>>, vector<1x2x128xf32>
    %388 = vector.shape_cast %387 : vector<1x2x128xf32> to vector<2x128xf32>
    %389 = vector.shape_cast %384 : vector<2x128xf32> to vector<1x2x128xf32>
    tpu.vector_store %arg8[%c0_151, %c0_152, %c0_153], %389 {strides = array<i32>} : memref<2x2x128xf32, #tpu.memory_space<vmem>>, vector<1x2x128xf32>,
    %390 = vector.shape_cast %355 : vector<2x1xi1> to vector<2x1xi1>
    %391 = vector.broadcast %390 : vector<2x1xi1> to vector<2x128xi1>
    %392 = arith.select %391, %386, %357 : vector<2x128xi1>, vector<2x128xf32>
    %c0_154 = arith.constant 0 : index
    %c0_155 = arith.constant 0 : index
    %c0_156 = arith.constant 0 : index
    %393 = vector.load %arg7[%c0_154, %c0_155, %c0_156] : memref<2x2x128xf32, #tpu.memory_space<vmem>>, vector<1x2x128xf32>
    %394 = vector.shape_cast %393 : vector<1x2x128xf32> to vector<2x128xf32>
    %395 = vector.shape_cast %392 : vector<2x128xf32> to vector<1x2x128xf32>
    tpu.vector_store %arg7[%c0_154, %c0_155, %c0_156], %395 {strides = array<i32>} : memref<2x2x128xf32, #tpu.memory_space<vmem>>, vector<1x2x128xf32>,
    %c1_157 = arith.constant 1 : index
    %c0_158 = arith.constant 0 : index
    %c0_159 = arith.constant 0 : index
    %396 = vector.load %arg7[%c1_157, %c0_158, %c0_159] : memref<2x2x128xf32, #tpu.memory_space<vmem>>, vector<1x2x128xf32>
    %397 = vector.shape_cast %396 : vector<1x2x128xf32> to vector<2x128xf32>
    %cst_160 = arith.constant dense<0.000000e+00> : vector<2x512xf32>
    %398 = tpu.matmul %397, %4, %cst_160 {dimension_numbers = #tpu.dot_dimension_numbers<[1], [0], [0], [1], [0, 0, 1, 1], [], []>} : vector<2x128xf32>, vector<128x512xf32>, vector<2x512xf32> -> vector<2x512xf32>
    %399 = arith.addf %353, %398 : vector<2x512xf32>
    %400 = vector.extract_strided_slice %399 {offsets = [0, 0], sizes = [2, 128], strides = [1, 1]} : vector<2x512xf32> to vector<2x128xf32>
    %401 = arith.negf %400 : vector<2x128xf32>
    %402 = math.exp %401 : vector<2x128xf32>
    %cst_161 = arith.constant 1.000000e+00 : f32
    %403 = vector.broadcast %cst_161 : f32 to vector<2x128xf32>
    %404 = arith.addf %403, %402 : vector<2x128xf32>
    %405 = arith.divf %403, %404 : vector<2x128xf32>
    %406 = vector.extract_strided_slice %399 {offsets = [0, 128], sizes = [2, 128], strides = [1, 1]} : vector<2x512xf32> to vector<2x128xf32>
    %407 = arith.negf %406 : vector<2x128xf32>
    %408 = math.exp %407 : vector<2x128xf32>
    %cst_162 = arith.constant 1.000000e+00 : f32
    %409 = vector.broadcast %cst_162 : f32 to vector<2x128xf32>
    %410 = arith.addf %409, %408 : vector<2x128xf32>
    %411 = arith.divf %409, %410 : vector<2x128xf32>
    %412 = vector.extract_strided_slice %399 {offsets = [0, 256], sizes = [2, 128], strides = [1, 1]} : vector<2x512xf32> to vector<2x128xf32>
    %413 = math.tanh %412 : vector<2x128xf32>
    %414 = vector.extract_strided_slice %399 {offsets = [0, 384], sizes = [2, 128], strides = [1, 1]} : vector<2x512xf32> to vector<2x128xf32>
    %415 = arith.negf %414 : vector<2x128xf32>
    %416 = math.exp %415 : vector<2x128xf32>
    %cst_163 = arith.constant 1.000000e+00 : f32
    %417 = vector.broadcast %cst_163 : f32 to vector<2x128xf32>
    %418 = arith.addf %417, %416 : vector<2x128xf32>
    %419 = arith.divf %417, %418 : vector<2x128xf32>
    %c1_164 = arith.constant 1 : index
    %c0_165 = arith.constant 0 : index
    %c0_166 = arith.constant 0 : index
    %420 = vector.load %arg8[%c1_164, %c0_165, %c0_166] : memref<2x2x128xf32, #tpu.memory_space<vmem>>, vector<1x2x128xf32>
    %421 = vector.shape_cast %420 : vector<1x2x128xf32> to vector<2x128xf32>
    %422 = arith.mulf %411, %421 : vector<2x128xf32>
    %423 = arith.mulf %405, %413 : vector<2x128xf32>
    %424 = arith.addf %422, %423 : vector<2x128xf32>
    %425 = math.tanh %424 : vector<2x128xf32>
    %426 = arith.mulf %419, %425 : vector<2x128xf32>
    %c1_167 = arith.constant 1 : index
    %c0_168 = arith.constant 0 : index
    %c0_169 = arith.constant 0 : index
    %427 = vector.load %arg8[%c1_167, %c0_168, %c0_169] : memref<2x2x128xf32, #tpu.memory_space<vmem>>, vector<1x2x128xf32>
    %428 = vector.shape_cast %427 : vector<1x2x128xf32> to vector<2x128xf32>
    %429 = vector.shape_cast %424 : vector<2x128xf32> to vector<1x2x128xf32>
    tpu.vector_store %arg8[%c1_167, %c0_168, %c0_169], %429 {strides = array<i32>} : memref<2x2x128xf32, #tpu.memory_space<vmem>>, vector<1x2x128xf32>,
    %430 = vector.shape_cast %355 : vector<2x1xi1> to vector<2x1xi1>
    %431 = vector.broadcast %430 : vector<2x1xi1> to vector<2x128xi1>
    %432 = arith.select %431, %426, %397 : vector<2x128xi1>, vector<2x128xf32>
    %c1_170 = arith.constant 1 : index
    %c0_171 = arith.constant 0 : index
    %c0_172 = arith.constant 0 : index
    %433 = vector.load %arg7[%c1_170, %c0_171, %c0_172] : memref<2x2x128xf32, #tpu.memory_space<vmem>>, vector<1x2x128xf32>
    %434 = vector.shape_cast %433 : vector<1x2x128xf32> to vector<2x128xf32>
    %435 = vector.shape_cast %432 : vector<2x128xf32> to vector<1x2x128xf32>
    tpu.vector_store %arg7[%c1_170, %c0_171, %c0_172], %435 {strides = array<i32>} : memref<2x2x128xf32, #tpu.memory_space<vmem>>, vector<1x2x128xf32>,
    %c5_i32 = arith.constant 5 : i32
    %436 = arith.addi %0, %c5_i32 : i32
    %437 = arith.index_cast %c5_i32 : i32 to index
    %c0_173 = arith.constant 0 : index
    %c0_174 = arith.constant 0 : index
    %438 = vector.load %arg2[%437, %c0_173, %c0_174] : memref<8x2x512xf32, #tpu.memory_space<vmem>>, vector<1x2x512xf32>
    %439 = vector.shape_cast %438 : vector<1x2x512xf32> to vector<2x512xf32>
    %440 = vector.broadcast %436 : i32 to vector<2x1xi32>
    %441 = arith.cmpi sgt, %5, %440 : vector<2x1xi32>
    %c0_175 = arith.constant 0 : index
    %c0_176 = arith.constant 0 : index
    %c0_177 = arith.constant 0 : index
    %442 = vector.load %arg7[%c0_175, %c0_176, %c0_177] : memref<2x2x128xf32, #tpu.memory_space<vmem>>, vector<1x2x128xf32>
    %443 = vector.shape_cast %442 : vector<1x2x128xf32> to vector<2x128xf32>
    %cst_178 = arith.constant dense<0.000000e+00> : vector<2x512xf32>
    %444 = tpu.matmul %443, %4, %cst_178 {dimension_numbers = #tpu.dot_dimension_numbers<[1], [0], [0], [1], [0, 0, 1, 1], [], []>} : vector<2x128xf32>, vector<128x512xf32>, vector<2x512xf32> -> vector<2x512xf32>
    %445 = arith.addf %439, %444 : vector<2x512xf32>
    %446 = vector.extract_strided_slice %445 {offsets = [0, 0], sizes = [2, 128], strides = [1, 1]} : vector<2x512xf32> to vector<2x128xf32>
    %447 = arith.negf %446 : vector<2x128xf32>
    %448 = math.exp %447 : vector<2x128xf32>
    %cst_179 = arith.constant 1.000000e+00 : f32
    %449 = vector.broadcast %cst_179 : f32 to vector<2x128xf32>
    %450 = arith.addf %449, %448 : vector<2x128xf32>
    %451 = arith.divf %449, %450 : vector<2x128xf32>
    %452 = vector.extract_strided_slice %445 {offsets = [0, 128], sizes = [2, 128], strides = [1, 1]} : vector<2x512xf32> to vector<2x128xf32>
    %453 = arith.negf %452 : vector<2x128xf32>
    %454 = math.exp %453 : vector<2x128xf32>
    %cst_180 = arith.constant 1.000000e+00 : f32
    %455 = vector.broadcast %cst_180 : f32 to vector<2x128xf32>
    %456 = arith.addf %455, %454 : vector<2x128xf32>
    %457 = arith.divf %455, %456 : vector<2x128xf32>
    %458 = vector.extract_strided_slice %445 {offsets = [0, 256], sizes = [2, 128], strides = [1, 1]} : vector<2x512xf32> to vector<2x128xf32>
    %459 = math.tanh %458 : vector<2x128xf32>
    %460 = vector.extract_strided_slice %445 {offsets = [0, 384], sizes = [2, 128], strides = [1, 1]} : vector<2x512xf32> to vector<2x128xf32>
    %461 = arith.negf %460 : vector<2x128xf32>
    %462 = math.exp %461 : vector<2x128xf32>
    %cst_181 = arith.constant 1.000000e+00 : f32
    %463 = vector.broadcast %cst_181 : f32 to vector<2x128xf32>
    %464 = arith.addf %463, %462 : vector<2x128xf32>
    %465 = arith.divf %463, %464 : vector<2x128xf32>
    %c0_182 = arith.constant 0 : index
    %c0_183 = arith.constant 0 : index
    %c0_184 = arith.constant 0 : index
    %466 = vector.load %arg8[%c0_182, %c0_183, %c0_184] : memref<2x2x128xf32, #tpu.memory_space<vmem>>, vector<1x2x128xf32>
    %467 = vector.shape_cast %466 : vector<1x2x128xf32> to vector<2x128xf32>
    %468 = arith.mulf %457, %467 : vector<2x128xf32>
    %469 = arith.mulf %451, %459 : vector<2x128xf32>
    %470 = arith.addf %468, %469 : vector<2x128xf32>
    %471 = math.tanh %470 : vector<2x128xf32>
    %472 = arith.mulf %465, %471 : vector<2x128xf32>
    %c0_185 = arith.constant 0 : index
    %c0_186 = arith.constant 0 : index
    %c0_187 = arith.constant 0 : index
    %473 = vector.load %arg8[%c0_185, %c0_186, %c0_187] : memref<2x2x128xf32, #tpu.memory_space<vmem>>, vector<1x2x128xf32>
    %474 = vector.shape_cast %473 : vector<1x2x128xf32> to vector<2x128xf32>
    %475 = vector.shape_cast %470 : vector<2x128xf32> to vector<1x2x128xf32>
    tpu.vector_store %arg8[%c0_185, %c0_186, %c0_187], %475 {strides = array<i32>} : memref<2x2x128xf32, #tpu.memory_space<vmem>>, vector<1x2x128xf32>,
    %476 = vector.shape_cast %441 : vector<2x1xi1> to vector<2x1xi1>
    %477 = vector.broadcast %476 : vector<2x1xi1> to vector<2x128xi1>
    %478 = arith.select %477, %472, %443 : vector<2x128xi1>, vector<2x128xf32>
    %c0_188 = arith.constant 0 : index
    %c0_189 = arith.constant 0 : index
    %c0_190 = arith.constant 0 : index
    %479 = vector.load %arg7[%c0_188, %c0_189, %c0_190] : memref<2x2x128xf32, #tpu.memory_space<vmem>>, vector<1x2x128xf32>
    %480 = vector.shape_cast %479 : vector<1x2x128xf32> to vector<2x128xf32>
    %481 = vector.shape_cast %478 : vector<2x128xf32> to vector<1x2x128xf32>
    tpu.vector_store %arg7[%c0_188, %c0_189, %c0_190], %481 {strides = array<i32>} : memref<2x2x128xf32, #tpu.memory_space<vmem>>, vector<1x2x128xf32>,
    %c1_191 = arith.constant 1 : index
    %c0_192 = arith.constant 0 : index
    %c0_193 = arith.constant 0 : index
    %482 = vector.load %arg7[%c1_191, %c0_192, %c0_193] : memref<2x2x128xf32, #tpu.memory_space<vmem>>, vector<1x2x128xf32>
    %483 = vector.shape_cast %482 : vector<1x2x128xf32> to vector<2x128xf32>
    %cst_194 = arith.constant dense<0.000000e+00> : vector<2x512xf32>
    %484 = tpu.matmul %483, %4, %cst_194 {dimension_numbers = #tpu.dot_dimension_numbers<[1], [0], [0], [1], [0, 0, 1, 1], [], []>} : vector<2x128xf32>, vector<128x512xf32>, vector<2x512xf32> -> vector<2x512xf32>
    %485 = arith.addf %439, %484 : vector<2x512xf32>
    %486 = vector.extract_strided_slice %485 {offsets = [0, 0], sizes = [2, 128], strides = [1, 1]} : vector<2x512xf32> to vector<2x128xf32>
    %487 = arith.negf %486 : vector<2x128xf32>
    %488 = math.exp %487 : vector<2x128xf32>
    %cst_195 = arith.constant 1.000000e+00 : f32
    %489 = vector.broadcast %cst_195 : f32 to vector<2x128xf32>
    %490 = arith.addf %489, %488 : vector<2x128xf32>
    %491 = arith.divf %489, %490 : vector<2x128xf32>
    %492 = vector.extract_strided_slice %485 {offsets = [0, 128], sizes = [2, 128], strides = [1, 1]} : vector<2x512xf32> to vector<2x128xf32>
    %493 = arith.negf %492 : vector<2x128xf32>
    %494 = math.exp %493 : vector<2x128xf32>
    %cst_196 = arith.constant 1.000000e+00 : f32
    %495 = vector.broadcast %cst_196 : f32 to vector<2x128xf32>
    %496 = arith.addf %495, %494 : vector<2x128xf32>
    %497 = arith.divf %495, %496 : vector<2x128xf32>
    %498 = vector.extract_strided_slice %485 {offsets = [0, 256], sizes = [2, 128], strides = [1, 1]} : vector<2x512xf32> to vector<2x128xf32>
    %499 = math.tanh %498 : vector<2x128xf32>
    %500 = vector.extract_strided_slice %485 {offsets = [0, 384], sizes = [2, 128], strides = [1, 1]} : vector<2x512xf32> to vector<2x128xf32>
    %501 = arith.negf %500 : vector<2x128xf32>
    %502 = math.exp %501 : vector<2x128xf32>
    %cst_197 = arith.constant 1.000000e+00 : f32
    %503 = vector.broadcast %cst_197 : f32 to vector<2x128xf32>
    %504 = arith.addf %503, %502 : vector<2x128xf32>
    %505 = arith.divf %503, %504 : vector<2x128xf32>
    %c1_198 = arith.constant 1 : index
    %c0_199 = arith.constant 0 : index
    %c0_200 = arith.constant 0 : index
    %506 = vector.load %arg8[%c1_198, %c0_199, %c0_200] : memref<2x2x128xf32, #tpu.memory_space<vmem>>, vector<1x2x128xf32>
    %507 = vector.shape_cast %506 : vector<1x2x128xf32> to vector<2x128xf32>
    %508 = arith.mulf %497, %507 : vector<2x128xf32>
    %509 = arith.mulf %491, %499 : vector<2x128xf32>
    %510 = arith.addf %508, %509 : vector<2x128xf32>
    %511 = math.tanh %510 : vector<2x128xf32>
    %512 = arith.mulf %505, %511 : vector<2x128xf32>
    %c1_201 = arith.constant 1 : index
    %c0_202 = arith.constant 0 : index
    %c0_203 = arith.constant 0 : index
    %513 = vector.load %arg8[%c1_201, %c0_202, %c0_203] : memref<2x2x128xf32, #tpu.memory_space<vmem>>, vector<1x2x128xf32>
    %514 = vector.shape_cast %513 : vector<1x2x128xf32> to vector<2x128xf32>
    %515 = vector.shape_cast %510 : vector<2x128xf32> to vector<1x2x128xf32>
    tpu.vector_store %arg8[%c1_201, %c0_202, %c0_203], %515 {strides = array<i32>} : memref<2x2x128xf32, #tpu.memory_space<vmem>>, vector<1x2x128xf32>,
    %516 = vector.shape_cast %441 : vector<2x1xi1> to vector<2x1xi1>
    %517 = vector.broadcast %516 : vector<2x1xi1> to vector<2x128xi1>
    %518 = arith.select %517, %512, %483 : vector<2x128xi1>, vector<2x128xf32>
    %c1_204 = arith.constant 1 : index
    %c0_205 = arith.constant 0 : index
    %c0_206 = arith.constant 0 : index
    %519 = vector.load %arg7[%c1_204, %c0_205, %c0_206] : memref<2x2x128xf32, #tpu.memory_space<vmem>>, vector<1x2x128xf32>
    %520 = vector.shape_cast %519 : vector<1x2x128xf32> to vector<2x128xf32>
    %521 = vector.shape_cast %518 : vector<2x128xf32> to vector<1x2x128xf32>
    tpu.vector_store %arg7[%c1_204, %c0_205, %c0_206], %521 {strides = array<i32>} : memref<2x2x128xf32, #tpu.memory_space<vmem>>, vector<1x2x128xf32>,
    %c6_i32 = arith.constant 6 : i32
    %522 = arith.addi %0, %c6_i32 : i32
    %523 = arith.index_cast %c6_i32 : i32 to index
    %c0_207 = arith.constant 0 : index
    %c0_208 = arith.constant 0 : index
    %524 = vector.load %arg2[%523, %c0_207, %c0_208] : memref<8x2x512xf32, #tpu.memory_space<vmem>>, vector<1x2x512xf32>
    %525 = vector.shape_cast %524 : vector<1x2x512xf32> to vector<2x512xf32>
    %526 = vector.broadcast %522 : i32 to vector<2x1xi32>
    %527 = arith.cmpi sgt, %5, %526 : vector<2x1xi32>
    %c0_209 = arith.constant 0 : index
    %c0_210 = arith.constant 0 : index
    %c0_211 = arith.constant 0 : index
    %528 = vector.load %arg7[%c0_209, %c0_210, %c0_211] : memref<2x2x128xf32, #tpu.memory_space<vmem>>, vector<1x2x128xf32>
    %529 = vector.shape_cast %528 : vector<1x2x128xf32> to vector<2x128xf32>
    %cst_212 = arith.constant dense<0.000000e+00> : vector<2x512xf32>
    %530 = tpu.matmul %529, %4, %cst_212 {dimension_numbers = #tpu.dot_dimension_numbers<[1], [0], [0], [1], [0, 0, 1, 1], [], []>} : vector<2x128xf32>, vector<128x512xf32>, vector<2x512xf32> -> vector<2x512xf32>
    %531 = arith.addf %525, %530 : vector<2x512xf32>
    %532 = vector.extract_strided_slice %531 {offsets = [0, 0], sizes = [2, 128], strides = [1, 1]} : vector<2x512xf32> to vector<2x128xf32>
    %533 = arith.negf %532 : vector<2x128xf32>
    %534 = math.exp %533 : vector<2x128xf32>
    %cst_213 = arith.constant 1.000000e+00 : f32
    %535 = vector.broadcast %cst_213 : f32 to vector<2x128xf32>
    %536 = arith.addf %535, %534 : vector<2x128xf32>
    %537 = arith.divf %535, %536 : vector<2x128xf32>
    %538 = vector.extract_strided_slice %531 {offsets = [0, 128], sizes = [2, 128], strides = [1, 1]} : vector<2x512xf32> to vector<2x128xf32>
    %539 = arith.negf %538 : vector<2x128xf32>
    %540 = math.exp %539 : vector<2x128xf32>
    %cst_214 = arith.constant 1.000000e+00 : f32
    %541 = vector.broadcast %cst_214 : f32 to vector<2x128xf32>
    %542 = arith.addf %541, %540 : vector<2x128xf32>
    %543 = arith.divf %541, %542 : vector<2x128xf32>
    %544 = vector.extract_strided_slice %531 {offsets = [0, 256], sizes = [2, 128], strides = [1, 1]} : vector<2x512xf32> to vector<2x128xf32>
    %545 = math.tanh %544 : vector<2x128xf32>
    %546 = vector.extract_strided_slice %531 {offsets = [0, 384], sizes = [2, 128], strides = [1, 1]} : vector<2x512xf32> to vector<2x128xf32>
    %547 = arith.negf %546 : vector<2x128xf32>
    %548 = math.exp %547 : vector<2x128xf32>
    %cst_215 = arith.constant 1.000000e+00 : f32
    %549 = vector.broadcast %cst_215 : f32 to vector<2x128xf32>
    %550 = arith.addf %549, %548 : vector<2x128xf32>
    %551 = arith.divf %549, %550 : vector<2x128xf32>
    %c0_216 = arith.constant 0 : index
    %c0_217 = arith.constant 0 : index
    %c0_218 = arith.constant 0 : index
    %552 = vector.load %arg8[%c0_216, %c0_217, %c0_218] : memref<2x2x128xf32, #tpu.memory_space<vmem>>, vector<1x2x128xf32>
    %553 = vector.shape_cast %552 : vector<1x2x128xf32> to vector<2x128xf32>
    %554 = arith.mulf %543, %553 : vector<2x128xf32>
    %555 = arith.mulf %537, %545 : vector<2x128xf32>
    %556 = arith.addf %554, %555 : vector<2x128xf32>
    %557 = math.tanh %556 : vector<2x128xf32>
    %558 = arith.mulf %551, %557 : vector<2x128xf32>
    %c0_219 = arith.constant 0 : index
    %c0_220 = arith.constant 0 : index
    %c0_221 = arith.constant 0 : index
    %559 = vector.load %arg8[%c0_219, %c0_220, %c0_221] : memref<2x2x128xf32, #tpu.memory_space<vmem>>, vector<1x2x128xf32>
    %560 = vector.shape_cast %559 : vector<1x2x128xf32> to vector<2x128xf32>
    %561 = vector.shape_cast %556 : vector<2x128xf32> to vector<1x2x128xf32>
    tpu.vector_store %arg8[%c0_219, %c0_220, %c0_221], %561 {strides = array<i32>} : memref<2x2x128xf32, #tpu.memory_space<vmem>>, vector<1x2x128xf32>,
    %562 = vector.shape_cast %527 : vector<2x1xi1> to vector<2x1xi1>
    %563 = vector.broadcast %562 : vector<2x1xi1> to vector<2x128xi1>
    %564 = arith.select %563, %558, %529 : vector<2x128xi1>, vector<2x128xf32>
    %c0_222 = arith.constant 0 : index
    %c0_223 = arith.constant 0 : index
    %c0_224 = arith.constant 0 : index
    %565 = vector.load %arg7[%c0_222, %c0_223, %c0_224] : memref<2x2x128xf32, #tpu.memory_space<vmem>>, vector<1x2x128xf32>
    %566 = vector.shape_cast %565 : vector<1x2x128xf32> to vector<2x128xf32>
    %567 = vector.shape_cast %564 : vector<2x128xf32> to vector<1x2x128xf32>
    tpu.vector_store %arg7[%c0_222, %c0_223, %c0_224], %567 {strides = array<i32>} : memref<2x2x128xf32, #tpu.memory_space<vmem>>, vector<1x2x128xf32>,
    %c1_225 = arith.constant 1 : index
    %c0_226 = arith.constant 0 : index
    %c0_227 = arith.constant 0 : index
    %568 = vector.load %arg7[%c1_225, %c0_226, %c0_227] : memref<2x2x128xf32, #tpu.memory_space<vmem>>, vector<1x2x128xf32>
    %569 = vector.shape_cast %568 : vector<1x2x128xf32> to vector<2x128xf32>
    %cst_228 = arith.constant dense<0.000000e+00> : vector<2x512xf32>
    %570 = tpu.matmul %569, %4, %cst_228 {dimension_numbers = #tpu.dot_dimension_numbers<[1], [0], [0], [1], [0, 0, 1, 1], [], []>} : vector<2x128xf32>, vector<128x512xf32>, vector<2x512xf32> -> vector<2x512xf32>
    %571 = arith.addf %525, %570 : vector<2x512xf32>
    %572 = vector.extract_strided_slice %571 {offsets = [0, 0], sizes = [2, 128], strides = [1, 1]} : vector<2x512xf32> to vector<2x128xf32>
    %573 = arith.negf %572 : vector<2x128xf32>
    %574 = math.exp %573 : vector<2x128xf32>
    %cst_229 = arith.constant 1.000000e+00 : f32
    %575 = vector.broadcast %cst_229 : f32 to vector<2x128xf32>
    %576 = arith.addf %575, %574 : vector<2x128xf32>
    %577 = arith.divf %575, %576 : vector<2x128xf32>
    %578 = vector.extract_strided_slice %571 {offsets = [0, 128], sizes = [2, 128], strides = [1, 1]} : vector<2x512xf32> to vector<2x128xf32>
    %579 = arith.negf %578 : vector<2x128xf32>
    %580 = math.exp %579 : vector<2x128xf32>
    %cst_230 = arith.constant 1.000000e+00 : f32
    %581 = vector.broadcast %cst_230 : f32 to vector<2x128xf32>
    %582 = arith.addf %581, %580 : vector<2x128xf32>
    %583 = arith.divf %581, %582 : vector<2x128xf32>
    %584 = vector.extract_strided_slice %571 {offsets = [0, 256], sizes = [2, 128], strides = [1, 1]} : vector<2x512xf32> to vector<2x128xf32>
    %585 = math.tanh %584 : vector<2x128xf32>
    %586 = vector.extract_strided_slice %571 {offsets = [0, 384], sizes = [2, 128], strides = [1, 1]} : vector<2x512xf32> to vector<2x128xf32>
    %587 = arith.negf %586 : vector<2x128xf32>
    %588 = math.exp %587 : vector<2x128xf32>
    %cst_231 = arith.constant 1.000000e+00 : f32
    %589 = vector.broadcast %cst_231 : f32 to vector<2x128xf32>
    %590 = arith.addf %589, %588 : vector<2x128xf32>
    %591 = arith.divf %589, %590 : vector<2x128xf32>
    %c1_232 = arith.constant 1 : index
    %c0_233 = arith.constant 0 : index
    %c0_234 = arith.constant 0 : index
    %592 = vector.load %arg8[%c1_232, %c0_233, %c0_234] : memref<2x2x128xf32, #tpu.memory_space<vmem>>, vector<1x2x128xf32>
    %593 = vector.shape_cast %592 : vector<1x2x128xf32> to vector<2x128xf32>
    %594 = arith.mulf %583, %593 : vector<2x128xf32>
    %595 = arith.mulf %577, %585 : vector<2x128xf32>
    %596 = arith.addf %594, %595 : vector<2x128xf32>
    %597 = math.tanh %596 : vector<2x128xf32>
    %598 = arith.mulf %591, %597 : vector<2x128xf32>
    %c1_235 = arith.constant 1 : index
    %c0_236 = arith.constant 0 : index
    %c0_237 = arith.constant 0 : index
    %599 = vector.load %arg8[%c1_235, %c0_236, %c0_237] : memref<2x2x128xf32, #tpu.memory_space<vmem>>, vector<1x2x128xf32>
    %600 = vector.shape_cast %599 : vector<1x2x128xf32> to vector<2x128xf32>
    %601 = vector.shape_cast %596 : vector<2x128xf32> to vector<1x2x128xf32>
    tpu.vector_store %arg8[%c1_235, %c0_236, %c0_237], %601 {strides = array<i32>} : memref<2x2x128xf32, #tpu.memory_space<vmem>>, vector<1x2x128xf32>,
    %602 = vector.shape_cast %527 : vector<2x1xi1> to vector<2x1xi1>
    %603 = vector.broadcast %602 : vector<2x1xi1> to vector<2x128xi1>
    %604 = arith.select %603, %598, %569 : vector<2x128xi1>, vector<2x128xf32>
    %c1_238 = arith.constant 1 : index
    %c0_239 = arith.constant 0 : index
    %c0_240 = arith.constant 0 : index
    %605 = vector.load %arg7[%c1_238, %c0_239, %c0_240] : memref<2x2x128xf32, #tpu.memory_space<vmem>>, vector<1x2x128xf32>
    %606 = vector.shape_cast %605 : vector<1x2x128xf32> to vector<2x128xf32>
    %607 = vector.shape_cast %604 : vector<2x128xf32> to vector<1x2x128xf32>
    tpu.vector_store %arg7[%c1_238, %c0_239, %c0_240], %607 {strides = array<i32>} : memref<2x2x128xf32, #tpu.memory_space<vmem>>, vector<1x2x128xf32>,
    %c7_i32 = arith.constant 7 : i32
    %608 = arith.addi %0, %c7_i32 : i32
    %609 = arith.index_cast %c7_i32 : i32 to index
    %c0_241 = arith.constant 0 : index
    %c0_242 = arith.constant 0 : index
    %610 = vector.load %arg2[%609, %c0_241, %c0_242] : memref<8x2x512xf32, #tpu.memory_space<vmem>>, vector<1x2x512xf32>
    %611 = vector.shape_cast %610 : vector<1x2x512xf32> to vector<2x512xf32>
    %612 = vector.broadcast %608 : i32 to vector<2x1xi32>
    %613 = arith.cmpi sgt, %5, %612 : vector<2x1xi32>
    %c0_243 = arith.constant 0 : index
    %c0_244 = arith.constant 0 : index
    %c0_245 = arith.constant 0 : index
    %614 = vector.load %arg7[%c0_243, %c0_244, %c0_245] : memref<2x2x128xf32, #tpu.memory_space<vmem>>, vector<1x2x128xf32>
    %615 = vector.shape_cast %614 : vector<1x2x128xf32> to vector<2x128xf32>
    %cst_246 = arith.constant dense<0.000000e+00> : vector<2x512xf32>
    %616 = tpu.matmul %615, %4, %cst_246 {dimension_numbers = #tpu.dot_dimension_numbers<[1], [0], [0], [1], [0, 0, 1, 1], [], []>} : vector<2x128xf32>, vector<128x512xf32>, vector<2x512xf32> -> vector<2x512xf32>
    %617 = arith.addf %611, %616 : vector<2x512xf32>
    %618 = vector.extract_strided_slice %617 {offsets = [0, 0], sizes = [2, 128], strides = [1, 1]} : vector<2x512xf32> to vector<2x128xf32>
    %619 = arith.negf %618 : vector<2x128xf32>
    %620 = math.exp %619 : vector<2x128xf32>
    %cst_247 = arith.constant 1.000000e+00 : f32
    %621 = vector.broadcast %cst_247 : f32 to vector<2x128xf32>
    %622 = arith.addf %621, %620 : vector<2x128xf32>
    %623 = arith.divf %621, %622 : vector<2x128xf32>
    %624 = vector.extract_strided_slice %617 {offsets = [0, 128], sizes = [2, 128], strides = [1, 1]} : vector<2x512xf32> to vector<2x128xf32>
    %625 = arith.negf %624 : vector<2x128xf32>
    %626 = math.exp %625 : vector<2x128xf32>
    %cst_248 = arith.constant 1.000000e+00 : f32
    %627 = vector.broadcast %cst_248 : f32 to vector<2x128xf32>
    %628 = arith.addf %627, %626 : vector<2x128xf32>
    %629 = arith.divf %627, %628 : vector<2x128xf32>
    %630 = vector.extract_strided_slice %617 {offsets = [0, 256], sizes = [2, 128], strides = [1, 1]} : vector<2x512xf32> to vector<2x128xf32>
    %631 = math.tanh %630 : vector<2x128xf32>
    %632 = vector.extract_strided_slice %617 {offsets = [0, 384], sizes = [2, 128], strides = [1, 1]} : vector<2x512xf32> to vector<2x128xf32>
    %633 = arith.negf %632 : vector<2x128xf32>
    %634 = math.exp %633 : vector<2x128xf32>
    %cst_249 = arith.constant 1.000000e+00 : f32
    %635 = vector.broadcast %cst_249 : f32 to vector<2x128xf32>
    %636 = arith.addf %635, %634 : vector<2x128xf32>
    %637 = arith.divf %635, %636 : vector<2x128xf32>
    %c0_250 = arith.constant 0 : index
    %c0_251 = arith.constant 0 : index
    %c0_252 = arith.constant 0 : index
    %638 = vector.load %arg8[%c0_250, %c0_251, %c0_252] : memref<2x2x128xf32, #tpu.memory_space<vmem>>, vector<1x2x128xf32>
    %639 = vector.shape_cast %638 : vector<1x2x128xf32> to vector<2x128xf32>
    %640 = arith.mulf %629, %639 : vector<2x128xf32>
    %641 = arith.mulf %623, %631 : vector<2x128xf32>
    %642 = arith.addf %640, %641 : vector<2x128xf32>
    %643 = math.tanh %642 : vector<2x128xf32>
    %644 = arith.mulf %637, %643 : vector<2x128xf32>
    %c0_253 = arith.constant 0 : index
    %c0_254 = arith.constant 0 : index
    %c0_255 = arith.constant 0 : index
    %645 = vector.load %arg8[%c0_253, %c0_254, %c0_255] : memref<2x2x128xf32, #tpu.memory_space<vmem>>, vector<1x2x128xf32>
    %646 = vector.shape_cast %645 : vector<1x2x128xf32> to vector<2x128xf32>
    %647 = vector.shape_cast %642 : vector<2x128xf32> to vector<1x2x128xf32>
    tpu.vector_store %arg8[%c0_253, %c0_254, %c0_255], %647 {strides = array<i32>} : memref<2x2x128xf32, #tpu.memory_space<vmem>>, vector<1x2x128xf32>,
    %648 = vector.shape_cast %613 : vector<2x1xi1> to vector<2x1xi1>
    %649 = vector.broadcast %648 : vector<2x1xi1> to vector<2x128xi1>
    %650 = arith.select %649, %644, %615 : vector<2x128xi1>, vector<2x128xf32>
    %c0_256 = arith.constant 0 : index
    %c0_257 = arith.constant 0 : index
    %c0_258 = arith.constant 0 : index
    %651 = vector.load %arg7[%c0_256, %c0_257, %c0_258] : memref<2x2x128xf32, #tpu.memory_space<vmem>>, vector<1x2x128xf32>
    %652 = vector.shape_cast %651 : vector<1x2x128xf32> to vector<2x128xf32>
    %653 = vector.shape_cast %650 : vector<2x128xf32> to vector<1x2x128xf32>
    tpu.vector_store %arg7[%c0_256, %c0_257, %c0_258], %653 {strides = array<i32>} : memref<2x2x128xf32, #tpu.memory_space<vmem>>, vector<1x2x128xf32>,
    %c1_259 = arith.constant 1 : index
    %c0_260 = arith.constant 0 : index
    %c0_261 = arith.constant 0 : index
    %654 = vector.load %arg7[%c1_259, %c0_260, %c0_261] : memref<2x2x128xf32, #tpu.memory_space<vmem>>, vector<1x2x128xf32>
    %655 = vector.shape_cast %654 : vector<1x2x128xf32> to vector<2x128xf32>
    %cst_262 = arith.constant dense<0.000000e+00> : vector<2x512xf32>
    %656 = tpu.matmul %655, %4, %cst_262 {dimension_numbers = #tpu.dot_dimension_numbers<[1], [0], [0], [1], [0, 0, 1, 1], [], []>} : vector<2x128xf32>, vector<128x512xf32>, vector<2x512xf32> -> vector<2x512xf32>
    %657 = arith.addf %611, %656 : vector<2x512xf32>
    %658 = vector.extract_strided_slice %657 {offsets = [0, 0], sizes = [2, 128], strides = [1, 1]} : vector<2x512xf32> to vector<2x128xf32>
    %659 = arith.negf %658 : vector<2x128xf32>
    %660 = math.exp %659 : vector<2x128xf32>
    %cst_263 = arith.constant 1.000000e+00 : f32
    %661 = vector.broadcast %cst_263 : f32 to vector<2x128xf32>
    %662 = arith.addf %661, %660 : vector<2x128xf32>
    %663 = arith.divf %661, %662 : vector<2x128xf32>
    %664 = vector.extract_strided_slice %657 {offsets = [0, 128], sizes = [2, 128], strides = [1, 1]} : vector<2x512xf32> to vector<2x128xf32>
    %665 = arith.negf %664 : vector<2x128xf32>
    %666 = math.exp %665 : vector<2x128xf32>
    %cst_264 = arith.constant 1.000000e+00 : f32
    %667 = vector.broadcast %cst_264 : f32 to vector<2x128xf32>
    %668 = arith.addf %667, %666 : vector<2x128xf32>
    %669 = arith.divf %667, %668 : vector<2x128xf32>
    %670 = vector.extract_strided_slice %657 {offsets = [0, 256], sizes = [2, 128], strides = [1, 1]} : vector<2x512xf32> to vector<2x128xf32>
    %671 = math.tanh %670 : vector<2x128xf32>
    %672 = vector.extract_strided_slice %657 {offsets = [0, 384], sizes = [2, 128], strides = [1, 1]} : vector<2x512xf32> to vector<2x128xf32>
    %673 = arith.negf %672 : vector<2x128xf32>
    %674 = math.exp %673 : vector<2x128xf32>
    %cst_265 = arith.constant 1.000000e+00 : f32
    %675 = vector.broadcast %cst_265 : f32 to vector<2x128xf32>
    %676 = arith.addf %675, %674 : vector<2x128xf32>
    %677 = arith.divf %675, %676 : vector<2x128xf32>
    %c1_266 = arith.constant 1 : index
    %c0_267 = arith.constant 0 : index
    %c0_268 = arith.constant 0 : index
    %678 = vector.load %arg8[%c1_266, %c0_267, %c0_268] : memref<2x2x128xf32, #tpu.memory_space<vmem>>, vector<1x2x128xf32>
    %679 = vector.shape_cast %678 : vector<1x2x128xf32> to vector<2x128xf32>
    %680 = arith.mulf %669, %679 : vector<2x128xf32>
    %681 = arith.mulf %663, %671 : vector<2x128xf32>
    %682 = arith.addf %680, %681 : vector<2x128xf32>
    %683 = math.tanh %682 : vector<2x128xf32>
    %684 = arith.mulf %677, %683 : vector<2x128xf32>
    %c1_269 = arith.constant 1 : index
    %c0_270 = arith.constant 0 : index
    %c0_271 = arith.constant 0 : index
    %685 = vector.load %arg8[%c1_269, %c0_270, %c0_271] : memref<2x2x128xf32, #tpu.memory_space<vmem>>, vector<1x2x128xf32>
    %686 = vector.shape_cast %685 : vector<1x2x128xf32> to vector<2x128xf32>
    %687 = vector.shape_cast %682 : vector<2x128xf32> to vector<1x2x128xf32>
    tpu.vector_store %arg8[%c1_269, %c0_270, %c0_271], %687 {strides = array<i32>} : memref<2x2x128xf32, #tpu.memory_space<vmem>>, vector<1x2x128xf32>,
    %688 = vector.shape_cast %613 : vector<2x1xi1> to vector<2x1xi1>
    %689 = vector.broadcast %688 : vector<2x1xi1> to vector<2x128xi1>
    %690 = arith.select %689, %684, %655 : vector<2x128xi1>, vector<2x128xf32>
    %c1_272 = arith.constant 1 : index
    %c0_273 = arith.constant 0 : index
    %c0_274 = arith.constant 0 : index
    %691 = vector.load %arg7[%c1_272, %c0_273, %c0_274] : memref<2x2x128xf32, #tpu.memory_space<vmem>>, vector<1x2x128xf32>
    %692 = vector.shape_cast %691 : vector<1x2x128xf32> to vector<2x128xf32>
    %693 = vector.shape_cast %690 : vector<2x128xf32> to vector<1x2x128xf32>
    tpu.vector_store %arg7[%c1_272, %c0_273, %c0_274], %693 {strides = array<i32>} : memref<2x2x128xf32, #tpu.memory_space<vmem>>, vector<1x2x128xf32>,
    %c8_i32_275 = arith.constant 8 : i32
    %c0_i32_276 = arith.constant 0 : i32
    %694 = arith.cmpi eq, %arg1, %c0_i32_276 : i32
    %695 = arith.extui %694 : i1 to i32
    %c0_i32_277 = arith.constant 0 : i32
    %696 = arith.cmpi ne, %695, %c0_i32_277 : i32
    scf.if %696 {
      %c0_278 = arith.constant 0 : index
      %c0_279 = arith.constant 0 : index
      %c0_280 = arith.constant 0 : index
      %697 = vector.load %arg7[%c0_278, %c0_279, %c0_280] : memref<2x2x128xf32, #tpu.memory_space<vmem>>, vector<2x2x128xf32>
      %c0_281 = arith.constant 0 : index
      %c0_282 = arith.constant 0 : index
      %c0_283 = arith.constant 0 : index
      %698 = vector.load %arg6[%c0_281, %c0_282, %c0_283] : memref<2x2x128xf32, #tpu.memory_space<vmem>>, vector<2x2x128xf32>
      tpu.vector_store %arg6[%c0_281, %c0_282, %c0_283], %697 {strides = array<i32>} : memref<2x2x128xf32, #tpu.memory_space<vmem>>, vector<2x2x128xf32>,
    } else {
    }
    return
  }
  func.func @transform_0(%arg0: i32, %arg1: i32) -> (i32, i32, i32) {
    %c0_i32 = arith.constant 0 : i32
    %c0_i32_0 = arith.constant 0 : i32
    %c0_i32_1 = arith.constant 0 : i32
    return %arg1, %c0_i32, %c0_i32_0 : i32, i32, i32
  }
  func.func @transform_1(%arg0: i32, %arg1: i32) -> (i32, i32) {
    %c0_i32 = arith.constant 0 : i32
    %c0_i32_0 = arith.constant 0 : i32
    %c0_i32_1 = arith.constant 0 : i32
    return %c0_i32, %c0_i32_0 : i32, i32
  }
  func.func @transform_2(%arg0: i32, %arg1: i32) -> (i32, i32, i32) {
    %c0_i32 = arith.constant 0 : i32
    %c0_i32_0 = arith.constant 0 : i32
    %c0_i32_1 = arith.constant 0 : i32
    return %arg0, %c0_i32, %c0_i32_0 : i32, i32, i32
  }
  func.func @transform_3(%arg0: i32, %arg1: i32) -> (i32, i32) {
    %c0_i32 = arith.constant 0 : i32
    %c0_i32_0 = arith.constant 0 : i32
    %c0_i32_1 = arith.constant 0 : i32
    return %c0_i32, %c0_i32_0 : i32, i32
  }
  func.func @transform_4(%arg0: i32, %arg1: i32) -> (i32, i32, i32) {
    %c0_i32 = arith.constant 0 : i32
    %c0_i32_0 = arith.constant 0 : i32
    %c0_i32_1 = arith.constant 0 : i32
    return %arg0, %c0_i32, %c0_i32_0 : i32, i32, i32
  }
}

</mosaic_0001>

<bundles_post_ra>
// kernel: tpu_custom_call.1
= control target key start
LH: loop header
LB: loop body
LE: loop exit
PB: predicated region body
PF: predicated region fallthrough
CT: control target
= control target key end

     0   :  { %9 = vsyncpa [#allocation5], 0  ;;  %s5638_s0 = inlined_call_operand.hbm [shape: f32[8,2,512], index: 0, kind: input, shape index: {}]   ;;  %s5639_s1 = inlined_call_operand.vmem [shape: s32[2,1], index: 1, kind: input, shape index: {}]   ;;  %s5640_s2 = inlined_call_operand.vmem [shape: f32[2,2,128], index: 2, kind: input, shape index: {}]   ;;  %s5641_s3 = inlined_call_operand.hbm [shape: f32[128,512], index: 3, kind: input, shape index: {}]   ;;  %s5642_s4 = inlined_call_operand.hbm [shape: f32[2,2,128], index: 4, kind: output, shape index: {}]  }
   0x1   :  { %10 = vsyncpa [#allocation8], 0 }
   0x2   :  { %11 = vsyncpa [#allocation6], 0  ;;  %s4020_s15 = smov [#allocation4]  }
   0x3   :  { %s17_s16 = sshll.u32 %s4020_s15, 4  ;;  %s18_s16 = int_to_ptr.vmem [resolvable:$true] %s17_s16 }
   0x4   :  { %s3962_s17 = scalar_lea.vmem %s18_s16, 1024  ;;  %p3967_p1 = scmp.lt.s32.totalorder %s18_s16, %s18_s16 }
   0x5   :  { %p3963_p0 = scmp.ne.s32.totalorder %s18_s16, %s3962_s17  ;;  %p3968_p2 = scmp.lt.s32.totalorder %s3962_s17, %s3962_s17 }
   0x7   :  { %p3969_p3 = por %p3968_p2, %p3967_p1 }
   0x9   :  { %p3970_p4 = pnand %p3969_p3, %p3963_p0 }
   0xb   :  { %3973 = shalt.err (!%p3970_p4)
}
   0xc   :  { %s4021_s18 = smov 128   ;;  %s4022_s19 = smov 8  }
   0xd   :  { %23 = dma.hbm_to_vmem [thread:$0]  %s5638_s0, 1024, %s18_s16, [#allocation5], %s4021_s18, %s4021_s18, %s4022_s19  }
   0xe   :  { %s4023_s22 = smov [#allocation7]  }
   0xf   :  { %s33_s23 = sshll.u32 %s4023_s22, 4  ;;  %s34_s23 = int_to_ptr.vmem [resolvable:$true] %s33_s23 }
  0x10   :  { %s3982_s24 = scalar_lea.vmem %s34_s23, 8192  ;;  %p3987_p6 = scmp.lt.s32.totalorder %s34_s23, %s34_s23 }
  0x11   :  { %p3983_p5 = scmp.ne.s32.totalorder %s34_s23, %s3982_s24  ;;  %p3988_p7 = scmp.lt.s32.totalorder %s3982_s24, %s3982_s24 }
  0x13   :  { %p3989_p8 = por %p3988_p7, %p3987_p6 }
  0x15   :  { %p3990_p9 = pnand %p3989_p8, %p3983_p5 }
  0x17   :  { %3993 = shalt.err (!%p3990_p9)
}
  0x18   :  { %s4024_s25 = smov 512   ;;  %s4025_s26 = smov 32  }
  0x19   :  { %39 = dma.hbm_to_vmem [thread:$0]  %s5641_s3, 8192, %s34_s23, [#allocation8], %s4024_s25, %s4024_s25, %s4025_s26  }
  0x1a   :  { %4014 = dma.done.wait [#allocation5], 1024  }
  0x1b   :  { %4015 = vsyncadd [#allocation5], 4294966272 }
  0x1c   :  { %4016 = dma.done.wait [#allocation8], 8192  }
  0x1d   :  { %4017 = vsyncadd [#allocation8], 4294959104  ;;  %v5645_v0 = vmov 0.0   ;;  %v5643_v1 = vmov 0   ;;  %v4067_v2 = vld [vmem:[#allocation7 + $0x1e8] sm:$0xff]  ;;  %v4069_v3 = vld [vmem:[#allocation7 + $0x1f8] sm:$0xff] }
  0x1e   :  { %192 = vmatprep.mubr.f32.mxu0 %v5645_v0  ;;  %263 = vmatprep.mubr.f32.mxu1 %v5645_v0  ;;  %5851 = vst [vmem:[#allocation13_spill] sm:$0xff] %v4067_v2  ;;  %5852 = vst [vmem:[#allocation14_spill] sm:$0xff] %v4069_v3  ;;  %v4071_v4 = vld [vmem:[#allocation7 + $0x1e0] sm:$0xff]  ;;  %v4075_v5 = vld [vmem:[#allocation7 + $0x1f0] sm:$0xff] }
  0x1f   :  { %3504 = vset.pattern.permute.xlu0 %v5643_v1  ;;  %3505 = vset.pattern.permute.xlu1 %v5643_v1  ;;  %v4077_v6 = vld [vmem:[#allocation7 + $0x1c8] sm:$0xff]  ;;  %v4079_v7 = vld [vmem:[#allocation7 + $0x1d8] sm:$0xff]  ;;  %v4083_v8 = vld [vmem:[#allocation7 + $0x1c0] sm:$0xff] }
  0x20   :  { %128 = vmatprep.subr.mxu0 %v4067_v2  ;;  %199 = vmatprep.subr.mxu1 %v4069_v3  ;;  %v4085_v9 = vld [vmem:[#allocation7 + $0x1d0] sm:$0xff]  ;;  %v4087_v10 = vld [vmem:[#allocation7 + $0x1a8] sm:$0xff]  ;;  %v4091_v11 = vld [vmem:[#allocation7 + $0x1b8] sm:$0xff] }
  0x21   :  { %129 = vmatpush1.msra.mxu0 %v4071_v4  ;;  %200 = vmatpush1.msra.mxu1 %v4075_v5  ;;  %v4093_v12 = vld [vmem:[#allocation7 + $0x1a0] sm:$0xff]  ;;  %v4095_v13 = vld [vmem:[#allocation7 + $0x1b0] sm:$0xff]  ;;  %v4099_v14 = vld [vmem:[#allocation7 + $0x188] sm:$0xff] }
  0x22   :  { %130 = vmatprep.subr.mxu0 %v4077_v6  ;;  %201 = vmatprep.subr.mxu1 %v4079_v7  ;;  %v4101_v15 = vld [vmem:[#allocation7 + $0x198] sm:$0xff]  ;;  %v4105_v16 = vld [vmem:[#allocation7 + $0x180] sm:$0xff]  ;;  %v4107_v17 = vld [vmem:[#allocation7 + $0x190] sm:$0xff] }
  0x23   :  { %131 = vmatpush1.msra.mxu0 %v4083_v8  ;;  %202 = vmatpush1.msra.mxu1 %v4085_v9  ;;  %v4111_v18 = vld [vmem:[#allocation7 + $0x168] sm:$0xff]  ;;  %v4113_v19 = vld [vmem:[#allocation7 + $0x178] sm:$0xff]  ;;  %v4117_v20 = vld [vmem:[#allocation7 + $0x160] sm:$0xff] }
  0x24   :  { %132 = vmatprep.subr.mxu0 %v4087_v10  ;;  %203 = vmatprep.subr.mxu1 %v4091_v11  ;;  %v4119_v21 = vld [vmem:[#allocation7 + $0x170] sm:$0xff]  ;;  %v4123_v22 = vld [vmem:[#allocation7 + $0x148] sm:$0xff]  ;;  %v4125_v23 = vld [vmem:[#allocation7 + $0x158] sm:$0xff] }
  0x25   :  { %133 = vmatpush1.msra.mxu0 %v4093_v12  ;;  %204 = vmatpush1.msra.mxu1 %v4095_v13  ;;  %v4129_v24 = vld [vmem:[#allocation7 + $0x140] sm:$0xff]  ;;  %v4131_v25 = vld [vmem:[#allocation7 + $0x150] sm:$0xff]  ;;  %v4135_v26 = vld [vmem:[#allocation7 + $0x128] sm:$0xff] }
  0x26   :  { %134 = vmatprep.subr.mxu0 %v4099_v14  ;;  %205 = vmatprep.subr.mxu1 %v4101_v15  ;;  %v4137_v27 = vld [vmem:[#allocation7 + $0x138] sm:$0xff]  ;;  %v4141_v28 = vld [vmem:[#allocation7 + $0x120] sm:$0xff]  ;;  %v4143_v29 = vld [vmem:[#allocation7 + $0x130] sm:$0xff] }
  0x27   :  { %135 = vmatpush1.msra.mxu0 %v4105_v16  ;;  %206 = vmatpush1.msra.mxu1 %v4107_v17  ;;  %v4147_v30 = vld [vmem:[#allocation7 + $0x108] sm:$0xff]  ;;  %v4149_v31 = vld [vmem:[#allocation7 + $0x118] sm:$0xff]  ;;  %v4153_v32 = vld [vmem:[#allocation7 + $0x100] sm:$0xff] }
  0x28   :  { %136 = vmatprep.subr.mxu0 %v4111_v18  ;;  %207 = vmatprep.subr.mxu1 %v4113_v19  ;;  %v4155_v33 = vld [vmem:[#allocation7 + $0x110] sm:$0xff]  ;;  %v4159_v34 = vld [vmem:[#allocation7 + $0xe8] sm:$0xff]  ;;  %v4161_v35 = vld [vmem:[#allocation7 + $0xf8] sm:$0xff] }
  0x29   :  { %137 = vmatpush1.msra.mxu0 %v4117_v20  ;;  %208 = vmatpush1.msra.mxu1 %v4119_v21  ;;  %v4165_v36 = vld [vmem:[#allocation7 + $0xe0] sm:$0xff]  ;;  %v4167_v37 = vld [vmem:[#allocation7 + $0xf0] sm:$0xff]  ;;  %v4171_v38 = vld [vmem:[#allocation7 + $0xc8] sm:$0xff] }
  0x2a   :  { %138 = vmatprep.subr.mxu0 %v4123_v22  ;;  %209 = vmatprep.subr.mxu1 %v4125_v23  ;;  %v4173_v39 = vld [vmem:[#allocation7 + $0xd8] sm:$0xff]  ;;  %v4177_v40 = vld [vmem:[#allocation7 + $0xc0] sm:$0xff]  ;;  %v4179_v41 = vld [vmem:[#allocation7 + $0xd0] sm:$0xff] }
  0x2b   :  { %139 = vmatpush1.msra.mxu0 %v4129_v24  ;;  %210 = vmatpush1.msra.mxu1 %v4131_v25  ;;  %v4183_v42 = vld [vmem:[#allocation7 + $0xa8] sm:$0xff]  ;;  %v4185_v43 = vld [vmem:[#allocation7 + $0xb8] sm:$0xff]  ;;  %v4189_v44 = vld [vmem:[#allocation7 + $0xa0] sm:$0xff] }
  0x2c   :  { %140 = vmatprep.subr.mxu0 %v4135_v26  ;;  %211 = vmatprep.subr.mxu1 %v4137_v27  ;;  %v4191_v45 = vld [vmem:[#allocation7 + $0xb0] sm:$0xff]  ;;  %v4195_v46 = vld [vmem:[#allocation7 + $0x88] sm:$0xff]  ;;  %v4197_v47 = vld [vmem:[#allocation7 + $0x98] sm:$0xff] }
  0x2d   :  { %141 = vmatpush1.msra.mxu0 %v4141_v28  ;;  %212 = vmatpush1.msra.mxu1 %v4143_v29  ;;  %5853 = vst [vmem:[#allocation15_spill] sm:$0xff] %v4191_v45  ;;  %5854 = vst [vmem:[#allocation16_spill] sm:$0xff] %v4195_v46  ;;  %v4201_v48 = vld [vmem:[#allocation7 + $0x80] sm:$0xff]  ;;  %v4203_v49 = vld [vmem:[#allocation7 + $0x90] sm:$0xff] }
  0x2e   :  { %142 = vmatprep.subr.mxu0 %v4147_v30  ;;  %213 = vmatprep.subr.mxu1 %v4149_v31  ;;  %5855 = vst [vmem:[#allocation17_spill] sm:$0xff] %v4197_v47  ;;  %5856 = vst [vmem:[#allocation18_spill] sm:$0xff] %v4201_v48  ;;  %v51_v50 = vld [vmem:[%s5640_s2] sm:$0xf]   ;;  %v4210_v51 = vld [vmem:[#allocation7 + $0x68] sm:$0xff] }
  0x2f   :  { %143 = vmatpush1.msra.mxu0 %v4153_v32  ;;  %214 = vmatpush1.msra.mxu1 %v4155_v33  ;;  %5857 = vst [vmem:[#allocation19_spill] sm:$0xff] %v4203_v49  ;;  %5858 = vst [vmem:[#allocation20_spill] sm:$0xff] %v4210_v51  ;;  %v4212_v52 = vld [vmem:[#allocation7 + $0x78] sm:$0xff]  ;;  %v4216_v53 = vld [vmem:[#allocation7 + $0x60] sm:$0xff] }
  0x30   :  { %144 = vmatprep.subr.mxu0 %v4159_v34  ;;  %215 = vmatprep.subr.mxu1 %v4161_v35  ;;  %5859 = vst [vmem:[#allocation21_spill] sm:$0xff] %v4212_v52  ;;  %53 = vst [vmem:[#allocation2] sm:$0xf] %v51_v50   ;;  %v4218_v54 = vld [vmem:[#allocation7 + $0x70] sm:$0xff]  ;;  %v4222_v55 = vld [vmem:[#allocation7 + $0x48] sm:$0xff] }
  0x31   :  { %145 = vmatpush1.msra.mxu0 %v4165_v36  ;;  %216 = vmatpush1.msra.mxu1 %v4167_v37  ;;  %5860 = vst [vmem:[#allocation22_spill] sm:$0xff] %v4216_v53  ;;  %5861 = vst [vmem:[#allocation23_spill] sm:$0xff] %v4218_v54  ;;  %v4224_v56 = vld [vmem:[#allocation7 + $0x58] sm:$0xff]  ;;  %v4228_v57 = vld [vmem:[#allocation7 + $0x40] sm:$0xff] }
  0x32   :  { %146 = vmatprep.subr.mxu0 %v4171_v38  ;;  %217 = vmatprep.subr.mxu1 %v4173_v39  ;;  %5862 = vst [vmem:[#allocation24_spill] sm:$0xff] %v4222_v55  ;;  %5863 = vst [vmem:[#allocation25_spill] sm:$0xff] %v4224_v56  ;;  %v4230_v58 = vld [vmem:[#allocation7 + $0x50] sm:$0xff]  ;;  %v4234_v59 = vld [vmem:[#allocation7 + $0x28] sm:$0xff] }
  0x33   :  { %147 = vmatpush1.msra.mxu0 %v4177_v40  ;;  %218 = vmatpush1.msra.mxu1 %v4179_v41  ;;  %5864 = vst [vmem:[#allocation26_spill] sm:$0xff] %v4228_v57  ;;  %5865 = vst [vmem:[#allocation27_spill] sm:$0xff] %v4230_v58  ;;  %v4236_v60 = vld [vmem:[#allocation7 + $0x38] sm:$0xff]  ;;  %v4240_v61 = vld [vmem:[#allocation7 + $0x20] sm:$0xff] }
  0x34   :  { %148 = vmatprep.subr.mxu0 %v4183_v42  ;;  %219 = vmatprep.subr.mxu1 %v4185_v43  ;;  %5866 = vst [vmem:[#allocation28_spill] sm:$0xff] %v4234_v59  ;;  %5867 = vst [vmem:[#allocation29_spill] sm:$0xff] %v4236_v60  ;;  %v4242_v62 = vld [vmem:[#allocation7 + $0x30] sm:$0xff]  ;;  %v4246_v63 = vld [vmem:[#allocation7 + $0x8] sm:$0xff] }
  0x35   :  { %149 = vmatpush1.msra.mxu0 %v4189_v44  ;;  %220 = vmatpush1.msra.mxu1 %v4191_v45  ;;  %5868 = vst [vmem:[#allocation30_spill] sm:$0xff] %v4240_v61  ;;  %5869 = vst [vmem:[#allocation31_spill] sm:$0xff] %v4242_v62  ;;  %v4248_v50 = vld [vmem:[#allocation7 + $0x18] sm:$0xff]  ;;  %v4252_v1 = vld [vmem:[#allocation7] sm:$0xff] }
  0x36   :  { %150 = vmatprep.subr.mxu0 %v4195_v46  ;;  %221 = vmatprep.subr.mxu1 %v4197_v47  ;;  %5870 = vst [vmem:[#allocation32_spill] sm:$0xff] %v4246_v63  ;;  %5871 = vst [vmem:[#allocation33_spill] sm:$0xff] %v4248_v50  ;;  %v4254_v0 = vld [vmem:[#allocation7 + $0x10] sm:$0xff] }
  0x37   :  { %151 = vmatpush1.msra.mxu0 %v4201_v48  ;;  %222 = vmatpush1.msra.mxu1 %v4203_v49  ;;  %5872 = vst [vmem:[#allocation34_spill] sm:$0xff] %v4252_v1  ;;  %5873 = vst [vmem:[#allocation35_spill] sm:$0xff] %v4254_v0 }
  0x38   :  { %152 = vmatprep.subr.mxu0 %v4210_v51  ;;  %223 = vmatprep.subr.mxu1 %v4212_v52 }
  0x39   :  { %153 = vmatpush1.msra.mxu0 %v4216_v53  ;;  %224 = vmatpush1.msra.mxu1 %v4218_v54 }
  0x3a   :  { %154 = vmatprep.subr.mxu0 %v4222_v55  ;;  %225 = vmatprep.subr.mxu1 %v4224_v56  ;;  %v4258_v56 = vld [vmem:[#allocation2] sm:$0x3] }
  0x3b   :  { %155 = vmatpush1.msra.mxu0 %v4228_v57  ;;  %226 = vmatpush1.msra.mxu1 %v4230_v58  ;;  %5874 = vst [vmem:[#allocation36_spill] sm:$0xff] %v4258_v56 }
  0x3c   :  { %156 = vmatprep.subr.mxu0 %v4234_v59  ;;  %227 = vmatprep.subr.mxu1 %v4236_v60 }
  0x3d   :  { %157 = vmatpush1.msra.mxu0 %v4240_v61  ;;  %228 = vmatpush1.msra.mxu1 %v4242_v62 }
  0x3e   :  { %158 = vmatprep.subr.mxu0 %v4246_v63  ;;  %229 = vmatprep.subr.mxu1 %v4248_v50 }
  0x3f   :  { %159 = vmatpush1.msra.mxu0 %v4252_v1  ;;  %230 = vmatpush1.msra.mxu1 %v4254_v0 }
  0x40   :  { %193 = vmatmul.mubr.f32.vlgmr.msra.gmra.mxu0 %v4258_v56  ;;  %264 = vmatmul.mubr.f32.vlgmr.msra.gmra.mxu1 %v4258_v56  ;;  %v4321_v56 = vld [vmem:[%s5639_s1] sm:$0x3] }
  0x41   :  { %335 = vmatprep.subr.mxu0 %v4067_v2  ;;  %406 = vmatprep.subr.mxu1 %v4069_v3  ;;  %5875 = vst [vmem:[#allocation37_spill] sm:$0xff] %v4321_v56  ;;  %vm126_vm0 = vcmp.gt.s32.totalorder %v4321_v56, 0  ;;  %vm540_vm1 = vcmp.gt.s32.totalorder %v4321_v56, 1  ;;  %vm1776_vm2 = vcmp.gt.s32.totalorder %v4321_v56, 4  ;;  %vm2600_vm3 = vcmp.gt.s32.totalorder %v4321_v56, 6  ;;  %v5883_v56 = vld [vmem:[#allocation27_spill] sm:$0xff] }
  0x42   :  { %336 = vmatpush1.msra.mxu0 %v4071_v4  ;;  %407 = vmatpush1.msra.mxu1 %v4075_v5 }
  0x43   :  { %337 = vmatprep.subr.mxu0 %v4077_v6  ;;  %408 = vmatprep.subr.mxu1 %v4079_v7 }
  0x44   :  { %338 = vmatpush1.msra.mxu0 %v4083_v8  ;;  %409 = vmatpush1.msra.mxu1 %v4085_v9 }
  0x45   :  { %339 = vmatprep.subr.mxu0 %v4087_v10  ;;  %410 = vmatprep.subr.mxu1 %v4091_v11 }
  0x46   :  { %340 = vmatpush1.msra.mxu0 %v4093_v12  ;;  %411 = vmatpush1.msra.mxu1 %v4095_v13 }
  0x47   :  { %341 = vmatprep.subr.mxu0 %v4099_v14  ;;  %412 = vmatprep.subr.mxu1 %v4101_v15 }
  0x48   :  { %342 = vmatpush1.msra.mxu0 %v4105_v16  ;;  %413 = vmatpush1.msra.mxu1 %v4107_v17 }
  0x49   :  { %343 = vmatprep.subr.mxu0 %v4111_v18  ;;  %414 = vmatprep.subr.mxu1 %v4113_v19 }
  0x4a   :  { %344 = vmatpush1.msra.mxu0 %v4117_v20  ;;  %415 = vmatpush1.msra.mxu1 %v4119_v21 }
  0x4b   :  { %345 = vmatprep.subr.mxu0 %v4123_v22  ;;  %416 = vmatprep.subr.mxu1 %v4125_v23 }
  0x4c   :  { %346 = vmatpush1.msra.mxu0 %v4129_v24  ;;  %417 = vmatpush1.msra.mxu1 %v4131_v25 }
  0x4d   :  { %347 = vmatprep.subr.mxu0 %v4135_v26  ;;  %418 = vmatprep.subr.mxu1 %v4137_v27 }
  0x4e   :  { %348 = vmatpush1.msra.mxu0 %v4141_v28  ;;  %419 = vmatpush1.msra.mxu1 %v4143_v29 }
  0x4f   :  { %349 = vmatprep.subr.mxu0 %v4147_v30  ;;  %420 = vmatprep.subr.mxu1 %v4149_v31 }
  0x50   :  { %350 = vmatpush1.msra.mxu0 %v4153_v32  ;;  %421 = vmatpush1.msra.mxu1 %v4155_v33 }
  0x51   :  { %351 = vmatprep.subr.mxu0 %v4159_v34  ;;  %422 = vmatprep.subr.mxu1 %v4161_v35 }
  0x52   :  { %352 = vmatpush1.msra.mxu0 %v4165_v36  ;;  %423 = vmatpush1.msra.mxu1 %v4167_v37 }
  0x53   :  { %353 = vmatprep.subr.mxu0 %v4171_v38  ;;  %424 = vmatprep.subr.mxu1 %v4173_v39 }
  0x54   :  { %354 = vmatpush1.msra.mxu0 %v4177_v40  ;;  %425 = vmatpush1.msra.mxu1 %v4179_v41 }
  0x55   :  { %355 = vmatprep.subr.mxu0 %v4183_v42  ;;  %426 = vmatprep.subr.mxu1 %v4185_v43 }
  0x56   :  { %356 = vmatpush1.msra.mxu0 %v4189_v44  ;;  %427 = vmatpush1.msra.mxu1 %v4191_v45 }
  0x57   :  { %357 = vmatprep.subr.mxu0 %v4195_v46  ;;  %428 = vmatprep.subr.mxu1 %v4197_v47  ;;  %v5876_v47 = vld [vmem:[#allocation25_spill] sm:$0xff] }
  0x58   :  { %358 = vmatpush1.msra.mxu0 %v4201_v48  ;;  %429 = vmatpush1.msra.mxu1 %v4203_v49 }
  0x59   :  { %359 = vmatprep.subr.mxu0 %v4210_v51  ;;  %430 = vmatprep.subr.mxu1 %v4212_v52 }
  0x5a   :  { %360 = vmatpush1.msra.mxu0 %v4216_v53  ;;  %431 = vmatpush1.msra.mxu1 %v4218_v54 }
  0x5b   :  { %361 = vmatprep.subr.mxu0 %v4222_v55  ;;  %432 = vmatprep.subr.mxu1 %v5876_v47  ;;  %v4334_v55 = vld [vmem:[#allocation2 + $0x2] sm:$0x3] }
  0x5c   :  { %362 = vmatpush1.msra.mxu0 %v4228_v57  ;;  %433 = vmatpush1.msra.mxu1 %v4230_v58  ;;  %5877 = vst [vmem:[#allocation38_spill] sm:$0xff] %v4334_v55  ;;  %v5878_v57 = vmov 0.0   ;;  %v5879_v58 = vmov 0  }
  0x5d   :  { %363 = vmatprep.subr.mxu0 %v4234_v59  ;;  %434 = vmatprep.subr.mxu1 %v4236_v60  ;;  %v326_v59 = vsel %vm126_vm0, 1, %v5879_v58 }
  0x5e   :  { %364 = vmatpush1.msra.mxu0 %v4240_v61  ;;  %435 = vmatpush1.msra.mxu1 %v4242_v62 }
  0x5f   :  { %365 = vmatprep.subr.mxu0 %v4246_v63  ;;  %436 = vmatprep.subr.mxu1 %v4248_v50  ;;  %v740_v50 = vsel %vm540_vm1, 1, %v5879_v58 }
  0x60   :  { %366 = vmatpush1.msra.mxu0 %v4252_v1  ;;  %399 = vmatprep.mubr.f32.mxu0 %v5878_v57 }
  0x61   :  { %437 = vmatpush1.msra.mxu1 %v4254_v0  ;;  %470 = vmatprep.mubr.f32.mxu1 %v5878_v57 }
  0x62   :  { %400 = vmatmul.mubr.f32.vlgmr.msra.gmra.mxu0 %v4334_v55  ;;  %471 = vmatmul.mubr.f32.vlgmr.msra.gmra.mxu1 %v4334_v55  ;;  %v5884_v55 = vld [vmem:[#allocation28_spill] sm:$0xff] }
  0x63   :  { %328 = vperm.xlu0 %3504, %v326_v59   ;;  %542 = vmatprep.subr.mxu0 %v4067_v2  ;;  %v1976_v59 = vsel %vm1776_vm2, 1, %v5879_v58 }
  0x64   :  { %613 = vmatprep.subr.mxu1 %v4069_v3  ;;  %543 = vmatpush1.msra.mxu0 %v4071_v4 }
  0x65   :  { %614 = vmatpush1.msra.mxu1 %v4075_v5  ;;  %544 = vmatprep.subr.mxu0 %v4077_v6 }
  0x66   :  { %615 = vmatprep.subr.mxu1 %v4079_v7  ;;  %545 = vmatpush1.msra.mxu0 %v4083_v8 }
  0x67   :  { %742 = vperm.xlu0 %3504, %v740_v50   ;;  %616 = vmatpush1.msra.mxu1 %v4085_v9  ;;  %v2800_v50 = vsel %vm2600_vm3, 1, %v5879_v58  ;;  %v5882_v58 = vld [vmem:[#allocation26_spill] sm:$0xff] }
  0x68   :  { %546 = vmatprep.subr.mxu0 %v4087_v10  ;;  %617 = vmatprep.subr.mxu1 %v4091_v11 }
  0x69   :  { %547 = vmatpush1.msra.mxu0 %v4093_v12  ;;  %618 = vmatpush1.msra.mxu1 %v4095_v13 }
  0x6a   :  { %548 = vmatprep.subr.mxu0 %v4099_v14  ;;  %619 = vmatprep.subr.mxu1 %v4101_v15 }
  0x6b   :  { %1978 = vperm.xlu0 %3504, %v1976_v59   ;;  %549 = vmatpush1.msra.mxu0 %v4105_v16  ;;  %v5880_v59 = vld [vmem:[#allocation17_spill] sm:$0xff] }
  0x6c   :  { %620 = vmatpush1.msra.mxu1 %v4107_v17  ;;  %550 = vmatprep.subr.mxu0 %v4111_v18 }
  0x6d   :  { %621 = vmatprep.subr.mxu1 %v4113_v19  ;;  %551 = vmatpush1.msra.mxu0 %v4117_v20 }
  0x6e   :  { %622 = vmatpush1.msra.mxu1 %v4119_v21  ;;  %552 = vmatprep.subr.mxu0 %v4123_v22 }
  0x6f   :  { %2802 = vperm.xlu0 %3504, %v2800_v50   ;;  %623 = vmatprep.subr.mxu1 %v4125_v23  ;;  %v5881_v50 = vld [vmem:[#allocation24_spill] sm:$0xff] }
  0x70   :  { %553 = vmatpush1.msra.mxu0 %v4129_v24  ;;  %624 = vmatpush1.msra.mxu1 %v4131_v25 }
  0x71   :  { %554 = vmatprep.subr.mxu0 %v4135_v26  ;;  %625 = vmatprep.subr.mxu1 %v4137_v27 }
  0x72   :  { %555 = vmatpush1.msra.mxu0 %v4141_v28  ;;  %626 = vmatpush1.msra.mxu1 %v4143_v29 }
  0x73   :  { %556 = vmatprep.subr.mxu0 %v4147_v30  ;;  %627 = vmatprep.subr.mxu1 %v4149_v31 }
  0x74   :  { %557 = vmatpush1.msra.mxu0 %v4153_v32  ;;  %628 = vmatpush1.msra.mxu1 %v4155_v33 }
  0x75   :  { %558 = vmatprep.subr.mxu0 %v4159_v34  ;;  %629 = vmatprep.subr.mxu1 %v4161_v35 }
  0x76   :  { %559 = vmatpush1.msra.mxu0 %v4165_v36  ;;  %630 = vmatpush1.msra.mxu1 %v4167_v37 }
  0x77   :  { %560 = vmatprep.subr.mxu0 %v4171_v38  ;;  %631 = vmatprep.subr.mxu1 %v4173_v39 }
  0x78   :  { %561 = vmatpush1.msra.mxu0 %v4177_v40  ;;  %632 = vmatpush1.msra.mxu1 %v4179_v41 }
  0x79   :  { %562 = vmatprep.subr.mxu0 %v4183_v42  ;;  %633 = vmatprep.subr.mxu1 %v4185_v43 }
  0x7a   :  { %563 = vmatpush1.msra.mxu0 %v4189_v44  ;;  %634 = vmatpush1.msra.mxu1 %v4191_v45 }
  0x7b   :  { %564 = vmatprep.subr.mxu0 %v4195_v46  ;;  %635 = vmatprep.subr.mxu1 %v5880_v59 }
  0x7c   :  { %565 = vmatpush1.msra.mxu0 %v4201_v48  ;;  %636 = vmatpush1.msra.mxu1 %v4203_v49 }
  0x7d   :  { %566 = vmatprep.subr.mxu0 %v4210_v51  ;;  %637 = vmatprep.subr.mxu1 %v4212_v52 }
  0x7e   :  { %567 = vmatpush1.msra.mxu0 %v4216_v53  ;;  %638 = vmatpush1.msra.mxu1 %v4218_v54  ;;  %v5885_v53 = vld [vmem:[#allocation33_spill] sm:$0xff] }
  0x7f   :  { %568 = vmatprep.subr.mxu0 %v5881_v50  ;;  %639 = vmatprep.subr.mxu1 %v5876_v47  ;;  %v124_v54 = vld [vmem:[#allocation4] sm:$0xff] }
  0x80   :  { %569 = vmatpush1.msra.mxu0 %v5882_v58  ;;  %640 = vmatpush1.msra.mxu1 %v5883_v56 }
  0x81   :  { %570 = vmatprep.subr.mxu0 %v5884_v55  ;;  %641 = vmatprep.subr.mxu1 %v4236_v60 }
  0x82   :  { %571 = vmatpush1.msra.mxu0 %v4240_v61  ;;  %642 = vmatpush1.msra.mxu1 %v4242_v62  ;;  %v55_v62 = vld [vmem:[%s5640_s2] sm:$0xf]   ;;  %s4029_s2 = smov [#allocation9]  }
  0x83   :  { %572 = vmatprep.subr.mxu0 %v4246_v63  ;;  %643 = vmatprep.subr.mxu1 %v5885_v53  ;;  %57 = vst [vmem:[#allocation3] sm:$0xf] %v55_v62   ;;  %v4028_v63 = vmov 1983009808   ;;  %v279_v53 = vlaneseq  ;;  %s3432_s6 = sshll.u32 %s4029_s2, 4  ;;  %s3433_s6 = int_to_ptr.vmem [resolvable:$true] %s3432_s6 }
  0x84   :  { %573 = vmatpush1.msra.mxu0 %v4252_v1  ;;  %606 = vmatprep.mubr.f32.mxu0 %v5878_v57  ;;  %v277_v61 = vunpack.c.l.s4 %v4028_v63  ;;  %s3994_s7 = scalar_lea.vmem %s3433_s6, 64  ;;  %p3999_p11 = scmp.lt.s32.totalorder %s3433_s6, %s3433_s6 }
  0x85   :  { %644 = vmatpush1.msra.mxu1 %v4254_v0  ;;  %677 = vmatprep.mubr.f32.mxu1 %v5878_v57  ;;  %v280_v1 = vshrl.u32 %v279_v53, 7  ;;  %p3995_p10 = scmp.ne.s32.totalorder %s3433_s6, %s3994_s7  ;;  %p4000_p12 = scmp.lt.s32.totalorder %s3994_s7, %s3994_s7 }
  0x86   :  { %748 = vmatprep.subr.mxu0 %v4067_v2  ;;  %819 = vmatprep.subr.mxu1 %v4069_v3  ;;  %v278_v60 = vunpack.c.0.s8 %v277_v61 }
  0x87   :  { %p4001_p13 = por %p4000_p12, %p3999_p11 }
  0x88   :  { %v4420_v58 = vsub.s32 %v278_v60, %v280_v1 }
  0x89   :  { %p4002_p0 = pnand %p4001_p13, %p3995_p10 }
  0x8a   :  { %5886 = vst [vmem:[#allocation39_spill] sm:$0xff] %v4420_v58 }
 0x100   :  { %v194_v55 = vpop.f32.mrf.mxu0  ;;  %v265_v56 = vpop.f32.mrf.mxu1 }
 0x102   :  { %v196_v0 = vpop.f32.mrf.mxu0  ;;  %v267_v57 = vpop.f32.mrf.mxu1 }
 0x103   :  { %v274_v47 = vcombine.low %v194_v55, %v196_v0  ;;  %v275_v2 = vcombine.low %v265_v56, %v267_v57 }
 0x105   :  { %v282_v3 = vrot.slane %v274_v47, %v4420_v58  ;;  %v289_v50 = vrot.slane %v275_v2, %v4420_v58 }
 0x107   :  { %v290_v52 = vcombine.low %v282_v3, %v289_v50 }
 0x109   :  { %v292_v62 = vadd.f32 %v290_v52, %v124_v54 }
 0x10b   :  { %v3445_v51 = vmul.f32 -1.442695, %v292_v62  ;;  %v300_v63 = vrot.slane %v292_v62, 2  ;;  %v311_v53 = vrot.slane %v292_v62, 6  ;;  %v308_v59 = vrot.slane %v292_v62, 4 }
 0x10c   :  { %v319_v62 = vld [vmem:[#allocation3] sm:$0x3] }
 0x10d   :  { %3506 = vpow2.f32 %v3445_v51  ;;  %v3446_v61 = vmul.f32 -1.442695, %v300_v63  ;;  %v3447_v49 = vmul.f32 -1.442695, %v311_v53 }
 0x10f   :  { %3508 = vpow2.f32 %v3446_v61 }
 0x110   :  { %3510 = vpow2.f32 %v3447_v49 }
 0x11a   :  { %v3507_v1 = vpop.eup %3506 }
 0x11b   :  { %v296_v60 = vadd.f32 1.0, %v3507_v1 }
 0x11c   :  { %v3509_v48 = vpop.eup %3508 }
 0x11d   :  { %v305_v0 = vadd.f32 1.0, %v3509_v48  ;;  %3512 = vrcp.f32 %v296_v60  ;;  %v3511_v63 = vpop.eup %3510 }
 0x11f   :  { %3514 = vrcp.f32 %v305_v0 }
 0x120   :  { %3516 = vtanh.f32 %v308_v59  ;;  %v316_v59 = vadd.f32 1.0, %v3511_v63 }
 0x122   :  { %v401_v2 = vpop.f32.mrf.mxu0  ;;  %v472_v47 = vpop.f32.mrf.mxu1 }
 0x124   :  { %v403_v3 = vpop.f32.mrf.mxu0  ;;  %v474_v52 = vpop.f32.mrf.mxu1 }
 0x125   :  { %v481_v55 = vcombine.low %v401_v2, %v403_v3  ;;  %v482_v56 = vcombine.low %v472_v47, %v474_v52 }
 0x127   :  { %v489_v51 = vrot.slane %v481_v55, %v4420_v58  ;;  %v496_v57 = vrot.slane %v482_v56, %v4420_v58  ;;  %v5911_v58 = vld [vmem:[#allocation35_spill] sm:$0xff] }
 0x129   :  { %v497_v50 = vcombine.low %v489_v51, %v496_v57 }
 0x12a   :  { %v3513_v61 = vpop.eup %3512 }
 0x12b   :  { %v499_v53 = vadd.f32 %v497_v50, %v124_v54  ;;  %v4426_v50 = vpop.permute.xlu0 %328 }
 0x12c   :  { %v3515_v48 = vpop.eup %3514  ;;  %vm330_vm4 = vcmp.eq.s32.totalorder %v4426_v50, 1  ;;  %v5902_v50 = vld [vmem:[#allocation27_spill] sm:$0xff] }
 0x12d   :  { %v3517_v49 = vpop.eup %3516  ;;  %v3448_v1 = vmul.f32 -1.442695, %v499_v53  ;;  %v507_v60 = vrot.slane %v499_v53, 2  ;;  %v320_v0 = vmul.f32 %v3515_v48, %v319_v62  ;;  %v518_v47 = vrot.slane %v499_v53, 6 }
 0x12e   :  { %v321_v46 = vmul.f32 %v3517_v49, %v3513_v61  ;;  %v515_v55 = vrot.slane %v499_v53, 4  ;;  %v527_v49 = vld [vmem:[#allocation3 + $0x2] sm:$0x3] }
 0x12f   :  { %3518 = vpow2.f32 %v3448_v1  ;;  %v3449_v45 = vmul.f32 -1.442695, %v507_v60  ;;  %v3450_v3 = vmul.f32 -1.442695, %v518_v47 }
 0x130   :  { %v322_v2 = vadd.f32 %v321_v46, %v320_v0  ;;  %v5887_v46 = vld [vmem:[#allocation36_spill] sm:$0xff] }
 0x131   :  { %3520 = vpow2.f32 %v3449_v45 }
 0x132   :  { %3522 = vrcp.f32 %v316_v59  ;;  %325 = vst [vmem:[#allocation3] sm:$0x3] %v322_v2 }
 0x133   :  { %3524 = vtanh.f32 %v322_v2 }
 0x134   :  { %3526 = vpow2.f32 %v3450_v3 }
 0x13c   :  { %v3519_v52 = vpop.eup %3518 }
 0x13d   :  { %v503_v54 = vadd.f32 1.0, %v3519_v52 }
 0x13e   :  { %v3521_v56 = vpop.eup %3520 }
 0x13f   :  { %v3523_v51 = vpop.eup %3522  ;;  %3528 = vrcp.f32 %v503_v54  ;;  %v512_v57 = vadd.f32 1.0, %v3521_v56  ;;  %v5889_v54 = vld [vmem:[#allocation15_spill] sm:$0xff]  ;;  %v5890_v56 = vld [vmem:[#allocation16_spill] sm:$0xff] }
 0x140   :  { %v3525_v63 = vpop.eup %3524  ;;  %3530 = vtanh.f32 %v515_v55 }
 0x141   :  { %3532 = vrcp.f32 %v512_v57  ;;  %v324_v45 = vmul.f32 %v3525_v63, %v3523_v51  ;;  %v3527_v53 = vpop.eup %3526  ;;  %v5891_v51 = vld [vmem:[#allocation17_spill] sm:$0xff]  ;;  %v5892_v57 = vld [vmem:[#allocation38_spill] sm:$0xff] }
 0x142   :  { %v523_v59 = vadd.f32 1.0, %v3527_v53  ;;  %v5896_v53 = vld [vmem:[#allocation21_spill] sm:$0xff] }
 0x143   :  { %v331_v61 = vsel %vm330_vm4, %v324_v45, %v5887_v46  ;;  %v5893_v45 = vld [vmem:[#allocation18_spill] sm:$0xff]  ;;  %v5894_v46 = vld [vmem:[#allocation19_spill] sm:$0xff] }
 0x144   :  { %332 = vst [vmem:[#allocation2] sm:$0x3] %v331_v61  ;;  %3534 = vrcp.f32 %v523_v59  ;;  %v5895_v61 = vld [vmem:[#allocation20_spill] sm:$0xff]  ;;  %v5901_v59 = vld [vmem:[#allocation26_spill] sm:$0xff] }
 0x14b   :  { %v4432_v62 = vld [vmem:[#allocation2] sm:$0x3] }
 0x14c   :  { %5888 = vst [vmem:[#allocation36_spill] sm:$0xff] %v4432_v62  ;;  %v3529_v48 = vpop.eup %3528  ;;  %607 = vmatmul.mubr.f32.vlgmr.msra.gmra.mxu0 %v4432_v62  ;;  %678 = vmatmul.mubr.f32.vlgmr.msra.gmra.mxu1 %v4432_v62 }
 0x14d   :  { %v3531_v1 = vpop.eup %3530  ;;  %749 = vmatpush1.msra.mxu0 %v4071_v4  ;;  %820 = vmatpush1.msra.mxu1 %v4075_v5 }
 0x14e   :  { %v3533_v60 = vpop.eup %3532  ;;  %750 = vmatprep.subr.mxu0 %v4077_v6  ;;  %821 = vmatprep.subr.mxu1 %v4079_v7  ;;  %v529_v2 = vmul.f32 %v3531_v1, %v3529_v48  ;;  %v5897_v48 = vld [vmem:[#allocation22_spill] sm:$0xff]  ;;  %v5899_v1 = vld [vmem:[#allocation24_spill] sm:$0xff] }
 0x14f   :  { %v528_v0 = vmul.f32 %v3533_v60, %v527_v49  ;;  %751 = vmatpush1.msra.mxu0 %v4083_v8  ;;  %822 = vmatpush1.msra.mxu1 %v4085_v9  ;;  %v5898_v49 = vld [vmem:[#allocation23_spill] sm:$0xff]  ;;  %v5900_v60 = vld [vmem:[#allocation25_spill] sm:$0xff] }
 0x150   :  { %752 = vmatprep.subr.mxu0 %v4087_v10  ;;  %823 = vmatprep.subr.mxu1 %v4091_v11 }
 0x151   :  { %v530_v47 = vadd.f32 %v529_v2, %v528_v0  ;;  %753 = vmatpush1.msra.mxu0 %v4093_v12  ;;  %824 = vmatpush1.msra.mxu1 %v4095_v13  ;;  %v3535_v3 = vpop.eup %3534  ;;  %v5903_v0 = vld [vmem:[#allocation28_spill] sm:$0xff]  ;;  %v5904_v2 = vld [vmem:[#allocation29_spill] sm:$0xff] }
 0x152   :  { %754 = vmatprep.subr.mxu0 %v4099_v14  ;;  %825 = vmatprep.subr.mxu1 %v4101_v15 }
 0x153   :  { %3536 = vtanh.f32 %v530_v47  ;;  %533 = vst [vmem:[#allocation3 + $0x2] sm:$0x3] %v530_v47  ;;  %755 = vmatpush1.msra.mxu0 %v4105_v16  ;;  %826 = vmatpush1.msra.mxu1 %v4107_v17  ;;  %v5905_v47 = vld [vmem:[#allocation30_spill] sm:$0xff] }
 0x154   :  { %756 = vmatprep.subr.mxu0 %v4111_v18  ;;  %827 = vmatprep.subr.mxu1 %v4113_v19 }
 0x155   :  { %757 = vmatpush1.msra.mxu0 %v4117_v20  ;;  %828 = vmatpush1.msra.mxu1 %v4119_v21 }
 0x156   :  { %758 = vmatprep.subr.mxu0 %v4123_v22  ;;  %829 = vmatprep.subr.mxu1 %v4125_v23 }
 0x157   :  { %759 = vmatpush1.msra.mxu0 %v4129_v24  ;;  %830 = vmatpush1.msra.mxu1 %v4131_v25 }
 0x158   :  { %760 = vmatprep.subr.mxu0 %v4135_v26  ;;  %831 = vmatprep.subr.mxu1 %v4137_v27 }
 0x159   :  { %761 = vmatpush1.msra.mxu0 %v4141_v28  ;;  %832 = vmatpush1.msra.mxu1 %v4143_v29 }
 0x15a   :  { %762 = vmatprep.subr.mxu0 %v4147_v30  ;;  %833 = vmatprep.subr.mxu1 %v4149_v31 }
 0x15b   :  { %763 = vmatpush1.msra.mxu0 %v4153_v32  ;;  %834 = vmatpush1.msra.mxu1 %v4155_v33 }
 0x15c   :  { %764 = vmatprep.subr.mxu0 %v4159_v34  ;;  %835 = vmatprep.subr.mxu1 %v4161_v35 }
 0x15d   :  { %765 = vmatpush1.msra.mxu0 %v4165_v36  ;;  %836 = vmatpush1.msra.mxu1 %v4167_v37 }
 0x15e   :  { %766 = vmatprep.subr.mxu0 %v4171_v38  ;;  %837 = vmatprep.subr.mxu1 %v4173_v39 }
 0x15f   :  { %767 = vmatpush1.msra.mxu0 %v4177_v40  ;;  %838 = vmatpush1.msra.mxu1 %v4179_v41 }
 0x160   :  { %v3537_v52 = vpop.eup %3536  ;;  %768 = vmatprep.subr.mxu0 %v4183_v42  ;;  %839 = vmatprep.subr.mxu1 %v4185_v43 }
 0x161   :  { %v532_v55 = vmul.f32 %v3537_v52, %v3535_v3  ;;  %769 = vmatpush1.msra.mxu0 %v4189_v44  ;;  %840 = vmatpush1.msra.mxu1 %v5889_v54  ;;  %v5906_v3 = vld [vmem:[#allocation31_spill] sm:$0xff]  ;;  %v5907_v52 = vld [vmem:[#allocation32_spill] sm:$0xff] }
 0x162   :  { %770 = vmatprep.subr.mxu0 %v5890_v56  ;;  %841 = vmatprep.subr.mxu1 %v5891_v51 }
 0x163   :  { %v534_v63 = vsel %vm330_vm4, %v532_v55, %v5892_v57  ;;  %771 = vmatpush1.msra.mxu0 %v5893_v45  ;;  %842 = vmatpush1.msra.mxu1 %v5894_v46  ;;  %v5908_v55 = vld [vmem:[#allocation33_spill] sm:$0xff]  ;;  %v5909_v57 = vld [vmem:[#allocation34_spill] sm:$0xff] }
 0x164   :  { %535 = vst [vmem:[#allocation2 + $0x2] sm:$0x3] %v534_v63  ;;  %772 = vmatprep.subr.mxu0 %v5895_v61  ;;  %843 = vmatprep.subr.mxu1 %v5896_v53  ;;  %v5910_v63 = vmov 0.0  }
 0x165   :  { %773 = vmatpush1.msra.mxu0 %v5897_v48  ;;  %844 = vmatpush1.msra.mxu1 %v5898_v49 }
 0x166   :  { %774 = vmatprep.subr.mxu0 %v5899_v1  ;;  %845 = vmatprep.subr.mxu1 %v5900_v60 }
 0x167   :  { %775 = vmatpush1.msra.mxu0 %v5901_v59  ;;  %846 = vmatpush1.msra.mxu1 %v5902_v50 }
 0x168   :  { %776 = vmatprep.subr.mxu0 %v5903_v0  ;;  %847 = vmatprep.subr.mxu1 %v5904_v2 }
 0x169   :  { %777 = vmatpush1.msra.mxu0 %v5905_v47  ;;  %848 = vmatpush1.msra.mxu1 %v5906_v3  ;;  %v5912_v47 = vld [vmem:[#allocation13_spill] sm:$0xff]  ;;  %v5913_v3 = vld [vmem:[#allocation14_spill] sm:$0xff] }
 0x16a   :  { %778 = vmatprep.subr.mxu0 %v5907_v52  ;;  %849 = vmatprep.subr.mxu1 %v5908_v55 }
 0x16b   :  { %779 = vmatpush1.msra.mxu0 %v5909_v57  ;;  %812 = vmatprep.mubr.f32.mxu0 %v5910_v63  ;;  %v4501_v62 = vld [vmem:[#allocation2 + $0x2] sm:$0x3] }
 0x16c   :  { %850 = vmatpush1.msra.mxu1 %v5911_v58  ;;  %883 = vmatprep.mubr.f32.mxu1 %v5910_v63 }
 0x16d   :  { %813 = vmatmul.mubr.f32.vlgmr.msra.gmra.mxu0 %v4501_v62  ;;  %884 = vmatmul.mubr.f32.vlgmr.msra.gmra.mxu1 %v4501_v62 }
 0x16e   :  { %954 = vmatprep.subr.mxu0 %v5912_v47  ;;  %1025 = vmatprep.subr.mxu1 %v5913_v3 }
 0x16f   :  { %955 = vmatpush1.msra.mxu0 %v4071_v4  ;;  %1026 = vmatpush1.msra.mxu1 %v4075_v5  ;;  %v5914_v4 = vld [vmem:[#allocation30_spill] sm:$0xff]  ;;  %v5915_v5 = vld [vmem:[#allocation31_spill] sm:$0xff] }
 0x170   :  { %956 = vmatprep.subr.mxu0 %v4077_v6  ;;  %1027 = vmatprep.subr.mxu1 %v4079_v7  ;;  %v4573_v6 = vld [vmem:[#allocation7 + $0x1e8] sm:$0xff]  ;;  %v4576_v7 = vld [vmem:[#allocation7 + $0x1f8] sm:$0xff] }
 0x171   :  { %957 = vmatpush1.msra.mxu0 %v4083_v8  ;;  %1028 = vmatpush1.msra.mxu1 %v4085_v9  ;;  %5916 = vst [vmem:[#allocation15_spill] sm:$0xff] %v4573_v6  ;;  %5917 = vst [vmem:[#allocation16_spill] sm:$0xff] %v4576_v7  ;;  %v5918_v8 = vld [vmem:[#allocation37_spill] sm:$0xff]  ;;  %v5919_v9 = vmov 0  }
 0x172   :  { %958 = vmatprep.subr.mxu0 %v4087_v10  ;;  %1029 = vmatprep.subr.mxu1 %v4091_v11  ;;  %vm952_vm5 = vcmp.gt.s32.totalorder %v5918_v8, 2  ;;  %vm1364_vm6 = vcmp.gt.s32.totalorder %v5918_v8, 3  ;;  %vm2188_vm7 = vcmp.gt.s32.totalorder %v5918_v8, 5  ;;  %vm3012_vm8 = vcmp.gt.s32.totalorder %v5918_v8, 7 }
 0x173   :  { %959 = vmatpush1.msra.mxu0 %v4093_v12  ;;  %1030 = vmatpush1.msra.mxu1 %v4095_v13  ;;  %v1152_v10 = vsel %vm952_vm5, 1, %v5919_v9  ;;  %v1564_v11 = vsel %vm1364_vm6, 1, %v5919_v9  ;;  %v2388_v12 = vsel %vm2188_vm7, 1, %v5919_v9  ;;  %v3212_v13 = vsel %vm3012_vm8, 1, %v5919_v9  ;;  %v5921_v9 = vld [vmem:[#allocation36_spill] sm:$0xff] }
 0x174   :  { %960 = vmatprep.subr.mxu0 %v4099_v14  ;;  %1031 = vmatprep.subr.mxu1 %v4101_v15 }
 0x175   :  { %961 = vmatpush1.msra.mxu0 %v4105_v16  ;;  %1032 = vmatpush1.msra.mxu1 %v4107_v17 }
 0x176   :  { %962 = vmatprep.subr.mxu0 %v4111_v18  ;;  %1033 = vmatprep.subr.mxu1 %v4113_v19 }
 0x177   :  { %963 = vmatpush1.msra.mxu0 %v4117_v20  ;;  %1034 = vmatpush1.msra.mxu1 %v4119_v21  ;;  %v5920_v20 = vld [vmem:[#allocation39_spill] sm:$0xff] }
 0x178   :  { %964 = vmatprep.subr.mxu0 %v4123_v22  ;;  %1035 = vmatprep.subr.mxu1 %v4125_v23  ;;  %v538_v23 = vld [vmem:[#allocation4 + $0x8] sm:$0xff] }
 0x179   :  { %965 = vmatpush1.msra.mxu0 %v4129_v24  ;;  %1036 = vmatpush1.msra.mxu1 %v4131_v25 }
 0x17a   :  { %966 = vmatprep.subr.mxu0 %v4135_v26  ;;  %1037 = vmatprep.subr.mxu1 %v4137_v27 }
 0x17b   :  { %967 = vmatpush1.msra.mxu0 %v4141_v28  ;;  %1038 = vmatpush1.msra.mxu1 %v4143_v29 }
 0x17c   :  { %968 = vmatprep.subr.mxu0 %v4147_v30  ;;  %1039 = vmatprep.subr.mxu1 %v4149_v31 }
 0x17d   :  { %969 = vmatpush1.msra.mxu0 %v4153_v32  ;;  %1040 = vmatpush1.msra.mxu1 %v4155_v33 }
 0x17e   :  { %970 = vmatprep.subr.mxu0 %v4159_v34  ;;  %1041 = vmatprep.subr.mxu1 %v4161_v35 }
 0x17f   :  { %971 = vmatpush1.msra.mxu0 %v4165_v36  ;;  %1042 = vmatpush1.msra.mxu1 %v4167_v37 }
 0x180   :  { %972 = vmatprep.subr.mxu0 %v4171_v38  ;;  %1043 = vmatprep.subr.mxu1 %v4173_v39 }
 0x181   :  { %973 = vmatpush1.msra.mxu0 %v4177_v40  ;;  %1044 = vmatpush1.msra.mxu1 %v4179_v41 }
 0x182   :  { %974 = vmatprep.subr.mxu0 %v4183_v42  ;;  %1045 = vmatprep.subr.mxu1 %v4185_v43 }
 0x183   :  { %975 = vmatpush1.msra.mxu0 %v4189_v44  ;;  %1046 = vmatpush1.msra.mxu1 %v5889_v54 }
 0x184   :  { %976 = vmatprep.subr.mxu0 %v5890_v56  ;;  %1047 = vmatprep.subr.mxu1 %v5891_v51 }
 0x185   :  { %977 = vmatpush1.msra.mxu0 %v5893_v45  ;;  %1048 = vmatpush1.msra.mxu1 %v5894_v46 }
 0x186   :  { %978 = vmatprep.subr.mxu0 %v5895_v61  ;;  %1049 = vmatprep.subr.mxu1 %v5896_v53  ;;  %v733_v61 = vld [vmem:[#allocation3] sm:$0x3] }
 0x187   :  { %979 = vmatpush1.msra.mxu0 %v5897_v48  ;;  %1050 = vmatpush1.msra.mxu1 %v5898_v49 }
 0x188   :  { %980 = vmatprep.subr.mxu0 %v5899_v1  ;;  %1051 = vmatprep.subr.mxu1 %v5900_v60 }
 0x189   :  { %981 = vmatpush1.msra.mxu0 %v5901_v59  ;;  %1052 = vmatpush1.msra.mxu1 %v5902_v50 }
 0x18a   :  { %982 = vmatprep.subr.mxu0 %v5903_v0  ;;  %1053 = vmatprep.subr.mxu1 %v5904_v2 }
 0x18b   :  { %983 = vmatpush1.msra.mxu0 %v5914_v4  ;;  %1054 = vmatpush1.msra.mxu1 %v5915_v5  ;;  %v4591_v5 = vpop.permute.xlu0 %742 }
 0x18c   :  { %984 = vmatprep.subr.mxu0 %v5907_v52  ;;  %1055 = vmatprep.subr.mxu1 %v5908_v55  ;;  %vm744_vm9 = vcmp.eq.s32.totalorder %v4591_v5, 1  ;;  %v4760_v5 = vld [vmem:[#allocation7 + $0x40] sm:$0xff] }
 0x18d   :  { %985 = vmatpush1.msra.mxu0 %v5909_v57  ;;  %1018 = vmatprep.mubr.f32.mxu0 %v5910_v63  ;;  %5934 = vst [vmem:[#allocation28_spill] sm:$0xff] %v4760_v5 }
 0x18e   :  { %1056 = vmatpush1.msra.mxu1 %v5911_v58  ;;  %1089 = vmatprep.mubr.f32.mxu1 %v5910_v63 }
 0x18f   :  { %1160 = vmatprep.subr.mxu0 %v4573_v6  ;;  %1231 = vmatprep.subr.mxu1 %v4576_v7 }
 0x190   :  { %1154 = vperm.xlu1 %3505, %v1152_v10  }
 0x194   :  { %1566 = vperm.xlu1 %3505, %v1564_v11  }
 0x198   :  { %2390 = vperm.xlu1 %3505, %v2388_v12  }
 0x19c   :  { %3214 = vperm.xlu1 %3505, %v3212_v13  }
 0x20c   :  { %v608_v14 = vpop.f32.mrf.mxu0  ;;  %v679_v15 = vpop.f32.mrf.mxu1 }
 0x20e   :  { %v610_v16 = vpop.f32.mrf.mxu0  ;;  %v681_v17 = vpop.f32.mrf.mxu1 }
 0x20f   :  { %v688_v18 = vcombine.low %v608_v14, %v610_v16  ;;  %v689_v19 = vcombine.low %v679_v15, %v681_v17  ;;  %v4601_v14 = vld [vmem:[#allocation7 + $0x1e0] sm:$0xff]  ;;  %v4604_v15 = vld [vmem:[#allocation7 + $0x1f0] sm:$0xff]  ;;  %v4607_v17 = vld [vmem:[#allocation7 + $0x1c8] sm:$0xff] }
 0x211   :  { %v696_v21 = vrot.slane %v688_v18, %v5920_v20  ;;  %v703_v22 = vrot.slane %v689_v19, %v5920_v20  ;;  %v4610_v18 = vld [vmem:[#allocation7 + $0x1d8] sm:$0xff] }
 0x213   :  { %v704_v24 = vcombine.low %v696_v21, %v703_v22  ;;  %v939_v22 = vld [vmem:[#allocation3 + $0x2] sm:$0x3] }
 0x215   :  { %v706_v25 = vadd.f32 %v704_v24, %v538_v23  ;;  %v4616_v24 = vld [vmem:[#allocation7 + $0x1d0] sm:$0xff] }
 0x217   :  { %v3451_v26 = vmul.f32 -1.442695, %v706_v25  ;;  %v714_v27 = vrot.slane %v706_v25, 2  ;;  %v725_v29 = vrot.slane %v706_v25, 6  ;;  %v722_v32 = vrot.slane %v706_v25, 4 }
 0x219   :  { %3538 = vpow2.f32 %v3451_v26  ;;  %v3452_v28 = vmul.f32 -1.442695, %v714_v27  ;;  %v3453_v30 = vmul.f32 -1.442695, %v725_v29  ;;  %v4619_v27 = vld [vmem:[#allocation7 + $0x1a8] sm:$0xff]  ;;  %v4625_v29 = vld [vmem:[#allocation7 + $0x1a0] sm:$0xff] }
 0x21b   :  { %3540 = vpow2.f32 %v3452_v28  ;;  %v4622_v28 = vld [vmem:[#allocation7 + $0x1b8] sm:$0xff] }
 0x21c   :  { %3542 = vpow2.f32 %v3453_v30  ;;  %v4628_v30 = vld [vmem:[#allocation7 + $0x1b0] sm:$0xff] }
 0x226   :  { %v3539_v31 = vpop.eup %3538 }
 0x227   :  { %v710_v33 = vadd.f32 1.0, %v3539_v31 }
 0x228   :  { %v3541_v34 = vpop.eup %3540 }
 0x229   :  { %3544 = vrcp.f32 %v710_v33  ;;  %v719_v35 = vadd.f32 1.0, %v3541_v34  ;;  %v3543_v44 = vpop.eup %3542  ;;  %v4634_v33 = vld [vmem:[#allocation7 + $0x198] sm:$0xff]  ;;  %v4637_v34 = vld [vmem:[#allocation7 + $0x180] sm:$0xff] }
 0x22a   :  { %3546 = vtanh.f32 %v722_v32  ;;  %v730_v45 = vadd.f32 1.0, %v3543_v44  ;;  %v4631_v32 = vld [vmem:[#allocation7 + $0x188] sm:$0xff] }
 0x22b   :  { %3548 = vrcp.f32 %v719_v35  ;;  %v4640_v35 = vld [vmem:[#allocation7 + $0x190] sm:$0xff]  ;;  %v4667_v44 = vld [vmem:[#allocation7 + $0x128] sm:$0xff] }
 0x22d   :  { %v814_v36 = vpop.f32.mrf.mxu0  ;;  %v885_v37 = vpop.f32.mrf.mxu1 }
 0x22f   :  { %v816_v38 = vpop.f32.mrf.mxu0  ;;  %v887_v39 = vpop.f32.mrf.mxu1 }
 0x230   :  { %v894_v40 = vcombine.low %v814_v36, %v816_v38  ;;  %v895_v41 = vcombine.low %v885_v37, %v887_v39  ;;  %v4643_v36 = vld [vmem:[#allocation7 + $0x168] sm:$0xff]  ;;  %v4646_v37 = vld [vmem:[#allocation7 + $0x178] sm:$0xff]  ;;  %v4649_v38 = vld [vmem:[#allocation7 + $0x160] sm:$0xff] }
 0x231   :  { %v4652_v39 = vld [vmem:[#allocation7 + $0x170] sm:$0xff] }
 0x232   :  { %v902_v42 = vrot.slane %v894_v40, %v5920_v20  ;;  %v909_v43 = vrot.slane %v895_v41, %v5920_v20  ;;  %v4655_v40 = vld [vmem:[#allocation7 + $0x148] sm:$0xff]  ;;  %v4658_v41 = vld [vmem:[#allocation7 + $0x158] sm:$0xff]  ;;  %v4784_v20 = vld [vmem:[#allocation7] sm:$0xff] }
 0x233   :  { %5942 = vst [vmem:[#allocation30_spill] sm:$0xff] %v4784_v20 }
 0x234   :  { %v910_v58 = vcombine.low %v902_v42, %v909_v43  ;;  %v4661_v42 = vld [vmem:[#allocation7 + $0x140] sm:$0xff]  ;;  %v4664_v43 = vld [vmem:[#allocation7 + $0x150] sm:$0xff] }
 0x236   :  { %v3545_v54 = vpop.eup %3544  ;;  %v912_v56 = vadd.f32 %v910_v58, %v538_v23  ;;  %v4613_v23 = vld [vmem:[#allocation7 + $0x1c0] sm:$0xff]  ;;  %v4670_v58 = vld [vmem:[#allocation7 + $0x138] sm:$0xff] }
 0x237   :  { %v3547_v51 = vpop.eup %3546 }
 0x238   :  { %v3549_v46 = vpop.eup %3548  ;;  %v3454_v53 = vmul.f32 -1.442695, %v912_v56  ;;  %v920_v48 = vrot.slane %v912_v56, 2  ;;  %v735_v1 = vmul.f32 %v3547_v51, %v3545_v54  ;;  %v931_v50 = vrot.slane %v912_v56, 6  ;;  %v4673_v54 = vld [vmem:[#allocation7 + $0x120] sm:$0xff]  ;;  %v4679_v51 = vld [vmem:[#allocation7 + $0x108] sm:$0xff] }
 0x239   :  { %v734_v49 = vmul.f32 %v3549_v46, %v733_v61  ;;  %v928_v47 = vrot.slane %v912_v56, 4  ;;  %v4676_v56 = vld [vmem:[#allocation7 + $0x130] sm:$0xff]  ;;  %v4685_v46 = vld [vmem:[#allocation7 + $0x100] sm:$0xff] }
 0x23a   :  { %3550 = vpow2.f32 %v3454_v53  ;;  %v3455_v60 = vmul.f32 -1.442695, %v920_v48  ;;  %v3456_v0 = vmul.f32 -1.442695, %v931_v50  ;;  %v4688_v61 = vld [vmem:[#allocation7 + $0x110] sm:$0xff]  ;;  %v4691_v53 = vld [vmem:[#allocation7 + $0xe8] sm:$0xff] }
 0x23b   :  { %3552 = vrcp.f32 %v730_v45  ;;  %v736_v59 = vadd.f32 %v735_v1, %v734_v49  ;;  %v4682_v45 = vld [vmem:[#allocation7 + $0x118] sm:$0xff]  ;;  %v4697_v49 = vld [vmem:[#allocation7 + $0xe0] sm:$0xff]  ;;  %v4700_v1 = vld [vmem:[#allocation7 + $0xf0] sm:$0xff] }
 0x23c   :  { %3554 = vpow2.f32 %v3455_v60  ;;  %v4694_v48 = vld [vmem:[#allocation7 + $0xf8] sm:$0xff]  ;;  %v4703_v60 = vld [vmem:[#allocation7 + $0xc8] sm:$0xff]  ;;  %v4709_v50 = vld [vmem:[#allocation7 + $0xc0] sm:$0xff] }
 0x23d   :  { %3556 = vtanh.f32 %v736_v59  ;;  %739 = vst [vmem:[#allocation3] sm:$0x3] %v736_v59  ;;  %v4706_v59 = vld [vmem:[#allocation7 + $0xd8] sm:$0xff] }
 0x23e   :  { %3558 = vpow2.f32 %v3456_v0  ;;  %v4712_v0 = vld [vmem:[#allocation7 + $0xd0] sm:$0xff] }
 0x247   :  { %v3551_v2 = vpop.eup %3550 }
 0x248   :  { %v3553_v3 = vpop.eup %3552  ;;  %v916_v52 = vadd.f32 1.0, %v3551_v2 }
 0x249   :  { %v3555_v55 = vpop.eup %3554 }
 0x24a   :  { %v3557_v57 = vpop.eup %3556  ;;  %3560 = vrcp.f32 %v916_v52  ;;  %v925_v4 = vadd.f32 1.0, %v3555_v55  ;;  %v4721_v55 = vld [vmem:[#allocation7 + $0xa0] sm:$0xff] }
 0x24b   :  { %v738_v8 = vmul.f32 %v3557_v57, %v3553_v3  ;;  %3562 = vtanh.f32 %v928_v47  ;;  %v3559_v12 = vpop.eup %3558  ;;  %v4715_v47 = vld [vmem:[#allocation7 + $0xa8] sm:$0xff]  ;;  %v4718_v3 = vld [vmem:[#allocation7 + $0xb8] sm:$0xff]  ;;  %v4724_v57 = vld [vmem:[#allocation7 + $0xb0] sm:$0xff] }
 0x24c   :  { %3564 = vrcp.f32 %v925_v4  ;;  %v936_v21 = vadd.f32 1.0, %v3559_v12  ;;  %5923 = vst [vmem:[#allocation38_spill] sm:$0xff] %v4724_v57  ;;  %v4736_v12 = vld [vmem:[#allocation7 + $0x90] sm:$0xff] }
 0x24d   :  { %v745_v10 = vsel %vm744_vm9, %v738_v8, %v5921_v9  ;;  %v4727_v8 = vld [vmem:[#allocation7 + $0x88] sm:$0xff]  ;;  %v4730_v9 = vld [vmem:[#allocation7 + $0x98] sm:$0xff]  ;;  %5927 = vst [vmem:[#allocation21_spill] sm:$0xff] %v4736_v12 }
 0x24e   :  { %746 = vst [vmem:[#allocation2] sm:$0x3] %v745_v10  ;;  %3566 = vrcp.f32 %v936_v21  ;;  %5924 = vst [vmem:[#allocation18_spill] sm:$0xff] %v4727_v8  ;;  %v4733_v10 = vld [vmem:[#allocation7 + $0x80] sm:$0xff] }
 0x24f   :  { %5925 = vst [vmem:[#allocation19_spill] sm:$0xff] %v4730_v9  ;;  %5926 = vst [vmem:[#allocation20_spill] sm:$0xff] %v4733_v10  ;;  %v4748_v21 = vld [vmem:[#allocation7 + $0x60] sm:$0xff] }
 0x250   :  { %5930 = vst [vmem:[#allocation24_spill] sm:$0xff] %v4748_v21 }
 0x255   :  { %v4597_v11 = vld [vmem:[#allocation2] sm:$0x3] }
 0x256   :  { %5922 = vst [vmem:[#allocation17_spill] sm:$0xff] %v4597_v11  ;;  %1019 = vmatmul.mubr.f32.vlgmr.msra.gmra.mxu0 %v4597_v11  ;;  %1090 = vmatmul.mubr.f32.vlgmr.msra.gmra.mxu1 %v4597_v11  ;;  %v4781_v11 = vld [vmem:[#allocation7 + $0x18] sm:$0xff] }
 0x257   :  { %v3561_v13 = vpop.eup %3560  ;;  %1161 = vmatpush1.msra.mxu0 %v4601_v14  ;;  %1232 = vmatpush1.msra.mxu1 %v4604_v15  ;;  %5941 = vst [vmem:[#allocation14_spill] sm:$0xff] %v4781_v11 }
 0x258   :  { %v3563_v16 = vpop.eup %3562  ;;  %1162 = vmatprep.subr.mxu0 %v4607_v17  ;;  %1233 = vmatprep.subr.mxu1 %v4610_v18 }
 0x259   :  { %v3565_v19 = vpop.eup %3564  ;;  %1163 = vmatpush1.msra.mxu0 %v4613_v23  ;;  %1234 = vmatpush1.msra.mxu1 %v4616_v24  ;;  %v941_v26 = vmul.f32 %v3563_v16, %v3561_v13  ;;  %v4742_v16 = vld [vmem:[#allocation7 + $0x68] sm:$0xff] }
 0x25a   :  { %v940_v25 = vmul.f32 %v3565_v19, %v939_v22  ;;  %1164 = vmatprep.subr.mxu0 %v4619_v27  ;;  %1235 = vmatprep.subr.mxu1 %v4622_v28  ;;  %5928 = vst [vmem:[#allocation22_spill] sm:$0xff] %v4742_v16  ;;  %v4745_v19 = vld [vmem:[#allocation7 + $0x78] sm:$0xff]  ;;  %v4751_v22 = vld [vmem:[#allocation7 + $0x70] sm:$0xff] }
 0x25b   :  { %1165 = vmatpush1.msra.mxu0 %v4625_v29  ;;  %1236 = vmatpush1.msra.mxu1 %v4628_v30  ;;  %v3567_v2 = vpop.eup %3566  ;;  %5929 = vst [vmem:[#allocation23_spill] sm:$0xff] %v4745_v19  ;;  %5931 = vst [vmem:[#allocation25_spill] sm:$0xff] %v4751_v22 }
 0x25c   :  { %v942_v31 = vadd.f32 %v941_v26, %v940_v25  ;;  %1166 = vmatprep.subr.mxu0 %v4631_v32  ;;  %1237 = vmatprep.subr.mxu1 %v4634_v33  ;;  %v4754_v25 = vld [vmem:[#allocation7 + $0x48] sm:$0xff]  ;;  %v4763_v26 = vld [vmem:[#allocation7 + $0x50] sm:$0xff] }
 0x25d   :  { %1167 = vmatpush1.msra.mxu0 %v4637_v34  ;;  %1238 = vmatpush1.msra.mxu1 %v4640_v35  ;;  %5932 = vst [vmem:[#allocation26_spill] sm:$0xff] %v4754_v25  ;;  %5935 = vst [vmem:[#allocation29_spill] sm:$0xff] %v4763_v26 }
 0x25e   :  { %3568 = vtanh.f32 %v942_v31  ;;  %945 = vst [vmem:[#allocation3 + $0x2] sm:$0x3] %v942_v31  ;;  %1168 = vmatprep.subr.mxu0 %v4643_v36  ;;  %1239 = vmatprep.subr.mxu1 %v4646_v37  ;;  %v4766_v31 = vld [vmem:[#allocation7 + $0x28] sm:$0xff] }
 0x25f   :  { %1169 = vmatpush1.msra.mxu0 %v4649_v38  ;;  %1240 = vmatpush1.msra.mxu1 %v4652_v39  ;;  %5936 = vst [vmem:[#allocation32_spill] sm:$0xff] %v4766_v31 }
 0x260   :  { %1170 = vmatprep.subr.mxu0 %v4655_v40  ;;  %1241 = vmatprep.subr.mxu1 %v4658_v41 }
 0x261   :  { %1171 = vmatpush1.msra.mxu0 %v4661_v42  ;;  %1242 = vmatpush1.msra.mxu1 %v4664_v43 }
 0x262   :  { %1172 = vmatprep.subr.mxu0 %v4667_v44  ;;  %1243 = vmatprep.subr.mxu1 %v4670_v58 }
 0x263   :  { %1173 = vmatpush1.msra.mxu0 %v4673_v54  ;;  %1244 = vmatpush1.msra.mxu1 %v4676_v56 }
 0x264   :  { %1174 = vmatprep.subr.mxu0 %v4679_v51  ;;  %1245 = vmatprep.subr.mxu1 %v4682_v45 }
 0x265   :  { %1175 = vmatpush1.msra.mxu0 %v4685_v46  ;;  %1246 = vmatpush1.msra.mxu1 %v4688_v61 }
 0x266   :  { %1176 = vmatprep.subr.mxu0 %v4691_v53  ;;  %1247 = vmatprep.subr.mxu1 %v4694_v48 }
 0x267   :  { %1177 = vmatpush1.msra.mxu0 %v4697_v49  ;;  %1248 = vmatpush1.msra.mxu1 %v4700_v1 }
 0x268   :  { %1178 = vmatprep.subr.mxu0 %v4703_v60  ;;  %1249 = vmatprep.subr.mxu1 %v4706_v59 }
 0x269   :  { %1179 = vmatpush1.msra.mxu0 %v4709_v50  ;;  %1250 = vmatpush1.msra.mxu1 %v4712_v0 }
 0x26a   :  { %1180 = vmatprep.subr.mxu0 %v4715_v47  ;;  %1251 = vmatprep.subr.mxu1 %v4718_v3 }
 0x26b   :  { %v3569_v52 = vpop.eup %3568  ;;  %1181 = vmatpush1.msra.mxu0 %v4721_v55  ;;  %1252 = vmatpush1.msra.mxu1 %v4724_v57 }
 0x26c   :  { %v944_v4 = vmul.f32 %v3569_v52, %v3567_v2  ;;  %1182 = vmatprep.subr.mxu0 %v4727_v8  ;;  %1253 = vmatprep.subr.mxu1 %v4730_v9  ;;  %v4769_v2 = vld [vmem:[#allocation7 + $0x38] sm:$0xff]  ;;  %v4772_v52 = vld [vmem:[#allocation7 + $0x20] sm:$0xff] }
 0x26d   :  { %1183 = vmatpush1.msra.mxu0 %v4733_v10  ;;  %1254 = vmatpush1.msra.mxu1 %v4736_v12  ;;  %5937 = vst [vmem:[#allocation33_spill] sm:$0xff] %v4769_v2  ;;  %5938 = vst [vmem:[#allocation34_spill] sm:$0xff] %v4772_v52 }
 0x26e   :  { %v946_v13 = vsel %vm744_vm9, %v944_v4, %v4501_v62  ;;  %1184 = vmatprep.subr.mxu0 %v4742_v16  ;;  %1255 = vmatprep.subr.mxu1 %v4745_v19  ;;  %v4757_v62 = vld [vmem:[#allocation7 + $0x58] sm:$0xff]  ;;  %v4775_v4 = vld [vmem:[#allocation7 + $0x30] sm:$0xff] }
 0x26f   :  { %947 = vst [vmem:[#allocation2 + $0x2] sm:$0x3] %v946_v13  ;;  %1185 = vmatpush1.msra.mxu0 %v4748_v21  ;;  %1256 = vmatpush1.msra.mxu1 %v4751_v22  ;;  %5933 = vst [vmem:[#allocation27_spill] sm:$0xff] %v4757_v62  ;;  %v4778_v13 = vld [vmem:[#allocation7 + $0x8] sm:$0xff] }
 0x270   :  { %1186 = vmatprep.subr.mxu0 %v4754_v25  ;;  %1257 = vmatprep.subr.mxu1 %v4757_v62  ;;  %5939 = vst [vmem:[#allocation35_spill] sm:$0xff] %v4775_v4  ;;  %5940 = vst [vmem:[#allocation13_spill] sm:$0xff] %v4778_v13 }
 0x271   :  { %1187 = vmatpush1.msra.mxu0 %v4760_v5  ;;  %1258 = vmatpush1.msra.mxu1 %v4763_v26 }
 0x272   :  { %1188 = vmatprep.subr.mxu0 %v4766_v31  ;;  %1259 = vmatprep.subr.mxu1 %v4769_v2  ;;  %v4788_v2 = vld [vmem:[#allocation7 + $0x10] sm:$0xff] }
 0x273   :  { %1189 = vmatpush1.msra.mxu0 %v4772_v52  ;;  %1260 = vmatpush1.msra.mxu1 %v4775_v4  ;;  %5943 = vst [vmem:[#allocation31_spill] sm:$0xff] %v4788_v2 }
 0x274   :  { %1190 = vmatprep.subr.mxu0 %v4778_v13  ;;  %1261 = vmatprep.subr.mxu1 %v4781_v11 }
 0x275   :  { %1191 = vmatpush1.msra.mxu0 %v4784_v20  ;;  %1224 = vmatprep.mubr.f32.mxu0 %v5910_v63 }
 0x276   :  { %1262 = vmatpush1.msra.mxu1 %v4788_v2  ;;  %1295 = vmatprep.mubr.f32.mxu1 %v5910_v63  ;;  %v4792_v4 = vld [vmem:[#allocation2 + $0x2] sm:$0x3] }
 0x277   :  { %5944 = vst [vmem:[#allocation37_spill] sm:$0xff] %v4792_v4  ;;  %1225 = vmatmul.mubr.f32.vlgmr.msra.gmra.mxu0 %v4792_v4  ;;  %1296 = vmatmul.mubr.f32.vlgmr.msra.gmra.mxu1 %v4792_v4 }
 0x278   :  { %1366 = vmatprep.subr.mxu0 %v4573_v6  ;;  %1437 = vmatprep.subr.mxu1 %v4576_v7 }
 0x279   :  { %1367 = vmatpush1.msra.mxu0 %v4601_v14  ;;  %1438 = vmatpush1.msra.mxu1 %v4604_v15 }
 0x27a   :  { %1368 = vmatprep.subr.mxu0 %v4607_v17  ;;  %1439 = vmatprep.subr.mxu1 %v4610_v18 }
 0x27b   :  { %1369 = vmatpush1.msra.mxu0 %v4613_v23  ;;  %1440 = vmatpush1.msra.mxu1 %v4616_v24 }
 0x27c   :  { %1370 = vmatprep.subr.mxu0 %v4619_v27  ;;  %1441 = vmatprep.subr.mxu1 %v4622_v28 }
 0x27d   :  { %1371 = vmatpush1.msra.mxu0 %v4625_v29  ;;  %1442 = vmatpush1.msra.mxu1 %v4628_v30 }
 0x27e   :  { %1372 = vmatprep.subr.mxu0 %v4631_v32  ;;  %1443 = vmatprep.subr.mxu1 %v4634_v33 }
 0x27f   :  { %1373 = vmatpush1.msra.mxu0 %v4637_v34  ;;  %1444 = vmatpush1.msra.mxu1 %v4640_v35 }
 0x280   :  { %1374 = vmatprep.subr.mxu0 %v4643_v36  ;;  %1445 = vmatprep.subr.mxu1 %v4646_v37 }
 0x281   :  { %1375 = vmatpush1.msra.mxu0 %v4649_v38  ;;  %1446 = vmatpush1.msra.mxu1 %v4652_v39 }
 0x282   :  { %1376 = vmatprep.subr.mxu0 %v4655_v40  ;;  %1447 = vmatprep.subr.mxu1 %v4658_v41 }
 0x283   :  { %1377 = vmatpush1.msra.mxu0 %v4661_v42  ;;  %1448 = vmatpush1.msra.mxu1 %v4664_v43 }
 0x284   :  { %1378 = vmatprep.subr.mxu0 %v4667_v44  ;;  %1449 = vmatprep.subr.mxu1 %v4670_v58 }
 0x285   :  { %1379 = vmatpush1.msra.mxu0 %v4673_v54  ;;  %1450 = vmatpush1.msra.mxu1 %v4676_v56 }
 0x286   :  { %1380 = vmatprep.subr.mxu0 %v4679_v51  ;;  %1451 = vmatprep.subr.mxu1 %v4682_v45 }
 0x287   :  { %1381 = vmatpush1.msra.mxu0 %v4685_v46  ;;  %1452 = vmatpush1.msra.mxu1 %v4688_v61 }
 0x288   :  { %1382 = vmatprep.subr.mxu0 %v4691_v53  ;;  %1453 = vmatprep.subr.mxu1 %v4694_v48 }
 0x289   :  { %1383 = vmatpush1.msra.mxu0 %v4697_v49  ;;  %1454 = vmatpush1.msra.mxu1 %v4700_v1 }
 0x28a   :  { %1384 = vmatprep.subr.mxu0 %v4703_v60  ;;  %1455 = vmatprep.subr.mxu1 %v4706_v59 }
 0x28b   :  { %1385 = vmatpush1.msra.mxu0 %v4709_v50  ;;  %1456 = vmatpush1.msra.mxu1 %v4712_v0 }
 0x28c   :  { %1386 = vmatprep.subr.mxu0 %v4715_v47  ;;  %1457 = vmatprep.subr.mxu1 %v4718_v3 }
 0x28d   :  { %1387 = vmatpush1.msra.mxu0 %v4721_v55  ;;  %1458 = vmatpush1.msra.mxu1 %v4724_v57 }
 0x28e   :  { %1388 = vmatprep.subr.mxu0 %v4727_v8  ;;  %1459 = vmatprep.subr.mxu1 %v4730_v9 }
 0x28f   :  { %1389 = vmatpush1.msra.mxu0 %v4733_v10  ;;  %1460 = vmatpush1.msra.mxu1 %v4736_v12  ;;  %v5945_v10 = vld [vmem:[#allocation33_spill] sm:$0xff] }
 0x290   :  { %1390 = vmatprep.subr.mxu0 %v4742_v16  ;;  %1461 = vmatprep.subr.mxu1 %v4745_v19  ;;  %v5946_v16 = vld [vmem:[#allocation35_spill] sm:$0xff] }
 0x291   :  { %1391 = vmatpush1.msra.mxu0 %v4748_v21  ;;  %1462 = vmatpush1.msra.mxu1 %v4751_v22 }
 0x292   :  { %1392 = vmatprep.subr.mxu0 %v4754_v25  ;;  %1463 = vmatprep.subr.mxu1 %v4757_v62  ;;  %v950_v62 = vld [vmem:[#allocation4 + $0x10] sm:$0xff] }
 0x293   :  { %1393 = vmatpush1.msra.mxu0 %v4760_v5  ;;  %1464 = vmatpush1.msra.mxu1 %v4763_v26  ;;  %v5947_v5 = vld [vmem:[#allocation39_spill] sm:$0xff] }
 0x294   :  { %1394 = vmatprep.subr.mxu0 %v4766_v31  ;;  %1465 = vmatprep.subr.mxu1 %v5945_v10 }
 0x295   :  { %1395 = vmatpush1.msra.mxu0 %v4772_v52  ;;  %1466 = vmatpush1.msra.mxu1 %v5946_v16 }
 0x296   :  { %1396 = vmatprep.subr.mxu0 %v4778_v13  ;;  %1467 = vmatprep.subr.mxu1 %v4781_v11 }
 0x297   :  { %1397 = vmatpush1.msra.mxu0 %v4784_v20  ;;  %1430 = vmatprep.mubr.f32.mxu0 %v5910_v63 }
 0x298   :  { %1468 = vmatpush1.msra.mxu1 %v4788_v2  ;;  %1501 = vmatprep.mubr.f32.mxu1 %v5910_v63 }
 0x299   :  { %1572 = vmatprep.subr.mxu0 %v4573_v6  ;;  %1643 = vmatprep.subr.mxu1 %v4576_v7 }
 0x316   :  { %v1020_v10 = vpop.f32.mrf.mxu0  ;;  %v1091_v52 = vpop.f32.mrf.mxu1 }
 0x318   :  { %v1022_v31 = vpop.f32.mrf.mxu0  ;;  %v1093_v16 = vpop.f32.mrf.mxu1 }
 0x319   :  { %v1100_v26 = vcombine.low %v1020_v10, %v1022_v31  ;;  %v1101_v13 = vcombine.low %v1091_v52, %v1093_v16 }
 0x31b   :  { %v1108_v11 = vrot.slane %v1100_v26, %v5947_v5  ;;  %v1115_v20 = vrot.slane %v1101_v13, %v5947_v5 }
 0x31d   :  { %v1116_v25 = vcombine.low %v1108_v11, %v1115_v20 }
 0x31f   :  { %v1118_v22 = vadd.f32 %v1116_v25, %v950_v62 }
 0x321   :  { %v3457_v2 = vmul.f32 -1.442695, %v1118_v22  ;;  %v1126_v21 = vrot.slane %v1118_v22, 2  ;;  %v1137_v6 = vrot.slane %v1118_v22, 6  ;;  %v1134_v12 = vrot.slane %v1118_v22, 4 }
 0x323   :  { %3570 = vpow2.f32 %v3457_v2  ;;  %v3458_v63 = vmul.f32 -1.442695, %v1126_v21  ;;  %v3459_v7 = vmul.f32 -1.442695, %v1137_v6 }
 0x325   :  { %3572 = vpow2.f32 %v3458_v63 }
 0x326   :  { %3574 = vpow2.f32 %v3459_v7 }
 0x330   :  { %v3571_v19 = vpop.eup %3570 }
 0x331   :  { %v1122_v4 = vadd.f32 1.0, %v3571_v19 }
 0x332   :  { %v3573_v9 = vpop.eup %3572 }
 0x333   :  { %3576 = vrcp.f32 %v1122_v4  ;;  %v1131_v10 = vadd.f32 1.0, %v3573_v9  ;;  %v3575_v2 = vpop.eup %3574 }
 0x334   :  { %3578 = vtanh.f32 %v1134_v12  ;;  %v1145_v12 = vld [vmem:[#allocation3] sm:$0x3]  ;;  %v1142_v13 = vadd.f32 1.0, %v3575_v2 }
 0x335   :  { %3580 = vrcp.f32 %v1131_v10 }
 0x337   :  { %v1226_v16 = vpop.f32.mrf.mxu0  ;;  %v1297_v26 = vpop.f32.mrf.mxu1 }
 0x339   :  { %v1228_v20 = vpop.f32.mrf.mxu0  ;;  %v1299_v11 = vpop.f32.mrf.mxu1 }
 0x33a   :  { %v1306_v25 = vcombine.low %v1226_v16, %v1228_v20  ;;  %v1307_v31 = vcombine.low %v1297_v26, %v1299_v11 }
 0x33c   :  { %v1314_v21 = vrot.slane %v1306_v25, %v5947_v5  ;;  %v1321_v63 = vrot.slane %v1307_v31, %v5947_v5  ;;  %v5973_v5 = vld [vmem:[#allocation31_spill] sm:$0xff] }
 0x33e   :  { %v1322_v6 = vcombine.low %v1314_v21, %v1321_v63 }
 0x340   :  { %v3577_v22 = vpop.eup %3576  ;;  %v1324_v19 = vadd.f32 %v1322_v6, %v950_v62  ;;  %v4868_v6 = vpop.permute.xlu1 %1154 }
 0x341   :  { %v3579_v52 = vpop.eup %3578  ;;  %vm1156_vm10 = vcmp.eq.s32.totalorder %v4868_v6, 1  ;;  %v5963_v6 = vld [vmem:[#allocation29_spill] sm:$0xff] }
 0x342   :  { %v3581_v7 = vpop.eup %3580  ;;  %v3460_v4 = vmul.f32 -1.442695, %v1324_v19  ;;  %v1332_v9 = vrot.slane %v1324_v19, 2  ;;  %v1147_v8 = vmul.f32 %v3579_v52, %v3577_v22  ;;  %v1343_v26 = vrot.slane %v1324_v19, 6 }
 0x343   :  { %v1146_v10 = vmul.f32 %v3581_v7, %v1145_v12  ;;  %v1340_v25 = vrot.slane %v1324_v19, 4 }
 0x344   :  { %3582 = vpow2.f32 %v3460_v4  ;;  %v3461_v57 = vmul.f32 -1.442695, %v1332_v9  ;;  %v3462_v20 = vmul.f32 -1.442695, %v1343_v26 }
 0x345   :  { %v1148_v16 = vadd.f32 %v1147_v8, %v1146_v10  ;;  %v5948_v8 = vld [vmem:[#allocation17_spill] sm:$0xff] }
 0x346   :  { %3584 = vpow2.f32 %v3461_v57 }
 0x347   :  { %3586 = vrcp.f32 %v1142_v13  ;;  %1151 = vst [vmem:[#allocation3] sm:$0x3] %v1148_v16  ;;  %v1351_v13 = vld [vmem:[#allocation3 + $0x2] sm:$0x3] }
 0x348   :  { %3588 = vtanh.f32 %v1148_v16 }
 0x349   :  { %3590 = vpow2.f32 %v3462_v20 }
 0x351   :  { %v3583_v11 = vpop.eup %3582 }
 0x352   :  { %v1328_v62 = vadd.f32 1.0, %v3583_v11 }
 0x353   :  { %v3585_v31 = vpop.eup %3584 }
 0x354   :  { %v3587_v21 = vpop.eup %3586  ;;  %3592 = vrcp.f32 %v1328_v62  ;;  %v1337_v63 = vadd.f32 1.0, %v3585_v31  ;;  %v5950_v62 = vld [vmem:[#allocation38_spill] sm:$0xff] }
 0x355   :  { %v3589_v2 = vpop.eup %3588  ;;  %3594 = vtanh.f32 %v1340_v25  ;;  %v5951_v31 = vld [vmem:[#allocation18_spill] sm:$0xff] }
 0x356   :  { %3596 = vrcp.f32 %v1337_v63  ;;  %v1150_v57 = vmul.f32 %v3589_v2, %v3587_v21  ;;  %v3591_v19 = vpop.eup %3590  ;;  %v5952_v21 = vld [vmem:[#allocation19_spill] sm:$0xff]  ;;  %v5953_v63 = vld [vmem:[#allocation37_spill] sm:$0xff] }
 0x357   :  { %v1348_v12 = vadd.f32 1.0, %v3591_v19  ;;  %v5957_v19 = vld [vmem:[#allocation23_spill] sm:$0xff] }
 0x358   :  { %v1157_v22 = vsel %vm1156_vm10, %v1150_v57, %v5948_v8  ;;  %v5954_v57 = vld [vmem:[#allocation20_spill] sm:$0xff]  ;;  %v5955_v8 = vld [vmem:[#allocation21_spill] sm:$0xff] }
 0x359   :  { %1158 = vst [vmem:[#allocation2] sm:$0x3] %v1157_v22  ;;  %3598 = vrcp.f32 %v1348_v12  ;;  %v5956_v22 = vld [vmem:[#allocation22_spill] sm:$0xff]  ;;  %v5961_v12 = vld [vmem:[#allocation27_spill] sm:$0xff] }
 0x360   :  { %v4874_v52 = vld [vmem:[#allocation2] sm:$0x3] }
 0x361   :  { %5949 = vst [vmem:[#allocation36_spill] sm:$0xff] %v4874_v52  ;;  %v3593_v7 = vpop.eup %3592  ;;  %1431 = vmatmul.mubr.f32.vlgmr.msra.gmra.mxu0 %v4874_v52  ;;  %1502 = vmatmul.mubr.f32.vlgmr.msra.gmra.mxu1 %v4874_v52 }
 0x362   :  { %v3595_v4 = vpop.eup %3594  ;;  %1573 = vmatpush1.msra.mxu0 %v4601_v14  ;;  %1644 = vmatpush1.msra.mxu1 %v4604_v15 }
 0x363   :  { %v3597_v9 = vpop.eup %3596  ;;  %1574 = vmatprep.subr.mxu0 %v4607_v17  ;;  %1645 = vmatprep.subr.mxu1 %v4610_v18  ;;  %v1353_v16 = vmul.f32 %v3595_v4, %v3593_v7  ;;  %v5958_v7 = vld [vmem:[#allocation24_spill] sm:$0xff]  ;;  %v5959_v4 = vld [vmem:[#allocation25_spill] sm:$0xff] }
 0x364   :  { %v1352_v10 = vmul.f32 %v3597_v9, %v1351_v13  ;;  %1575 = vmatpush1.msra.mxu0 %v4613_v23  ;;  %1646 = vmatpush1.msra.mxu1 %v4616_v24  ;;  %v5960_v9 = vld [vmem:[#allocation26_spill] sm:$0xff]  ;;  %v5962_v13 = vld [vmem:[#allocation28_spill] sm:$0xff] }
 0x365   :  { %1576 = vmatprep.subr.mxu0 %v4619_v27  ;;  %1647 = vmatprep.subr.mxu1 %v4622_v28 }
 0x366   :  { %v1354_v26 = vadd.f32 %v1353_v16, %v1352_v10  ;;  %1577 = vmatpush1.msra.mxu0 %v4625_v29  ;;  %1648 = vmatpush1.msra.mxu1 %v4628_v30  ;;  %v3599_v20 = vpop.eup %3598  ;;  %v5964_v10 = vld [vmem:[#allocation32_spill] sm:$0xff]  ;;  %v5965_v16 = vld [vmem:[#allocation33_spill] sm:$0xff] }
 0x367   :  { %1578 = vmatprep.subr.mxu0 %v4631_v32  ;;  %1649 = vmatprep.subr.mxu1 %v4634_v33 }
 0x368   :  { %3600 = vtanh.f32 %v1354_v26  ;;  %1357 = vst [vmem:[#allocation3 + $0x2] sm:$0x3] %v1354_v26  ;;  %1579 = vmatpush1.msra.mxu0 %v4637_v34  ;;  %1650 = vmatpush1.msra.mxu1 %v4640_v35  ;;  %v5966_v26 = vld [vmem:[#allocation34_spill] sm:$0xff] }
 0x369   :  { %1580 = vmatprep.subr.mxu0 %v4643_v36  ;;  %1651 = vmatprep.subr.mxu1 %v4646_v37 }
 0x36a   :  { %1581 = vmatpush1.msra.mxu0 %v4649_v38  ;;  %1652 = vmatpush1.msra.mxu1 %v4652_v39 }
 0x36b   :  { %1582 = vmatprep.subr.mxu0 %v4655_v40  ;;  %1653 = vmatprep.subr.mxu1 %v4658_v41 }
 0x36c   :  { %1583 = vmatpush1.msra.mxu0 %v4661_v42  ;;  %1654 = vmatpush1.msra.mxu1 %v4664_v43 }
 0x36d   :  { %1584 = vmatprep.subr.mxu0 %v4667_v44  ;;  %1655 = vmatprep.subr.mxu1 %v4670_v58 }
 0x36e   :  { %1585 = vmatpush1.msra.mxu0 %v4673_v54  ;;  %1656 = vmatpush1.msra.mxu1 %v4676_v56 }
 0x36f   :  { %1586 = vmatprep.subr.mxu0 %v4679_v51  ;;  %1657 = vmatprep.subr.mxu1 %v4682_v45 }
 0x370   :  { %1587 = vmatpush1.msra.mxu0 %v4685_v46  ;;  %1658 = vmatpush1.msra.mxu1 %v4688_v61 }
 0x371   :  { %1588 = vmatprep.subr.mxu0 %v4691_v53  ;;  %1659 = vmatprep.subr.mxu1 %v4694_v48 }
 0x372   :  { %1589 = vmatpush1.msra.mxu0 %v4697_v49  ;;  %1660 = vmatpush1.msra.mxu1 %v4700_v1 }
 0x373   :  { %1590 = vmatprep.subr.mxu0 %v4703_v60  ;;  %1661 = vmatprep.subr.mxu1 %v4706_v59 }
 0x374   :  { %1591 = vmatpush1.msra.mxu0 %v4709_v50  ;;  %1662 = vmatpush1.msra.mxu1 %v4712_v0 }
 0x375   :  { %v3601_v11 = vpop.eup %3600  ;;  %1592 = vmatprep.subr.mxu0 %v4715_v47  ;;  %1663 = vmatprep.subr.mxu1 %v4718_v3 }
 0x376   :  { %v1356_v25 = vmul.f32 %v3601_v11, %v3599_v20  ;;  %1593 = vmatpush1.msra.mxu0 %v4721_v55  ;;  %1664 = vmatpush1.msra.mxu1 %v5950_v62  ;;  %v5967_v20 = vld [vmem:[#allocation35_spill] sm:$0xff]  ;;  %v5968_v11 = vld [vmem:[#allocation13_spill] sm:$0xff] }
 0x377   :  { %1594 = vmatprep.subr.mxu0 %v5951_v31  ;;  %1665 = vmatprep.subr.mxu1 %v5952_v21 }
 0x378   :  { %v1358_v2 = vsel %vm1156_vm10, %v1356_v25, %v5953_v63  ;;  %1595 = vmatpush1.msra.mxu0 %v5954_v57  ;;  %1666 = vmatpush1.msra.mxu1 %v5955_v8  ;;  %v5969_v25 = vld [vmem:[#allocation14_spill] sm:$0xff] }
 0x379   :  { %1359 = vst [vmem:[#allocation2 + $0x2] sm:$0x3] %v1358_v2  ;;  %1596 = vmatprep.subr.mxu0 %v5956_v22  ;;  %1667 = vmatprep.subr.mxu1 %v5957_v19  ;;  %v5970_v63 = vld [vmem:[#allocation30_spill] sm:$0xff]  ;;  %v5971_v2 = vmov 0.0  }
 0x37a   :  { %1597 = vmatpush1.msra.mxu0 %v5958_v7  ;;  %1668 = vmatpush1.msra.mxu1 %v5959_v4 }
 0x37b   :  { %1598 = vmatprep.subr.mxu0 %v5960_v9  ;;  %1669 = vmatprep.subr.mxu1 %v5961_v12 }
 0x37c   :  { %1599 = vmatpush1.msra.mxu0 %v5962_v13  ;;  %1670 = vmatpush1.msra.mxu1 %v5963_v6 }
 0x37d   :  { %1600 = vmatprep.subr.mxu0 %v5964_v10  ;;  %1671 = vmatprep.subr.mxu1 %v5965_v16 }
 0x37e   :  { %1601 = vmatpush1.msra.mxu0 %v5966_v26  ;;  %1672 = vmatpush1.msra.mxu1 %v5967_v20  ;;  %v5974_v26 = vld [vmem:[#allocation15_spill] sm:$0xff]  ;;  %v5975_v20 = vld [vmem:[#allocation16_spill] sm:$0xff] }
 0x37f   :  { %1602 = vmatprep.subr.mxu0 %v5968_v11  ;;  %1673 = vmatprep.subr.mxu1 %v5969_v25 }
 0x380   :  { %1603 = vmatpush1.msra.mxu0 %v5970_v63  ;;  %1636 = vmatprep.mubr.f32.mxu0 %v5971_v2  ;;  %v4943_v52 = vld [vmem:[#allocation2 + $0x2] sm:$0x3] }
 0x381   :  { %5972 = vst [vmem:[#allocation17_spill] sm:$0xff] %v4943_v52  ;;  %1674 = vmatpush1.msra.mxu1 %v5973_v5  ;;  %1707 = vmatprep.mubr.f32.mxu1 %v5971_v2 }
 0x382   :  { %1637 = vmatmul.mubr.f32.vlgmr.msra.gmra.mxu0 %v4943_v52  ;;  %1708 = vmatmul.mubr.f32.vlgmr.msra.gmra.mxu1 %v4943_v52  ;;  %v5976_v52 = vld [vmem:[#allocation34_spill] sm:$0xff] }
 0x383   :  { %1778 = vmatprep.subr.mxu0 %v5974_v26  ;;  %1849 = vmatprep.subr.mxu1 %v5975_v20 }
 0x384   :  { %1779 = vmatpush1.msra.mxu0 %v4601_v14  ;;  %1850 = vmatpush1.msra.mxu1 %v4604_v15 }
 0x385   :  { %1780 = vmatprep.subr.mxu0 %v4607_v17  ;;  %1851 = vmatprep.subr.mxu1 %v4610_v18 }
 0x386   :  { %1781 = vmatpush1.msra.mxu0 %v4613_v23  ;;  %1852 = vmatpush1.msra.mxu1 %v4616_v24 }
 0x387   :  { %1782 = vmatprep.subr.mxu0 %v4619_v27  ;;  %1853 = vmatprep.subr.mxu1 %v4622_v28 }
 0x388   :  { %1783 = vmatpush1.msra.mxu0 %v4625_v29  ;;  %1854 = vmatpush1.msra.mxu1 %v4628_v30 }
 0x389   :  { %1784 = vmatprep.subr.mxu0 %v4631_v32  ;;  %1855 = vmatprep.subr.mxu1 %v4634_v33 }
 0x38a   :  { %1785 = vmatpush1.msra.mxu0 %v4637_v34  ;;  %1856 = vmatpush1.msra.mxu1 %v4640_v35 }
 0x38b   :  { %1786 = vmatprep.subr.mxu0 %v4643_v36  ;;  %1857 = vmatprep.subr.mxu1 %v4646_v37 }
 0x38c   :  { %1787 = vmatpush1.msra.mxu0 %v4649_v38  ;;  %1858 = vmatpush1.msra.mxu1 %v4652_v39 }
 0x38d   :  { %1788 = vmatprep.subr.mxu0 %v4655_v40  ;;  %1859 = vmatprep.subr.mxu1 %v4658_v41 }
 0x38e   :  { %1789 = vmatpush1.msra.mxu0 %v4661_v42  ;;  %1860 = vmatpush1.msra.mxu1 %v4664_v43 }
 0x38f   :  { %1790 = vmatprep.subr.mxu0 %v4667_v44  ;;  %1861 = vmatprep.subr.mxu1 %v4670_v58 }
 0x390   :  { %1791 = vmatpush1.msra.mxu0 %v4673_v54  ;;  %1862 = vmatpush1.msra.mxu1 %v4676_v56 }
 0x391   :  { %1792 = vmatprep.subr.mxu0 %v4679_v51  ;;  %1863 = vmatprep.subr.mxu1 %v4682_v45 }
 0x392   :  { %1793 = vmatpush1.msra.mxu0 %v4685_v46  ;;  %1864 = vmatpush1.msra.mxu1 %v4688_v61 }
 0x393   :  { %1794 = vmatprep.subr.mxu0 %v4691_v53  ;;  %1865 = vmatprep.subr.mxu1 %v4694_v48 }
 0x394   :  { %1795 = vmatpush1.msra.mxu0 %v4697_v49  ;;  %1866 = vmatpush1.msra.mxu1 %v4700_v1 }
 0x395   :  { %1796 = vmatprep.subr.mxu0 %v4703_v60  ;;  %1867 = vmatprep.subr.mxu1 %v4706_v59 }
 0x396   :  { %1797 = vmatpush1.msra.mxu0 %v4709_v50  ;;  %1868 = vmatpush1.msra.mxu1 %v4712_v0 }
 0x397   :  { %1798 = vmatprep.subr.mxu0 %v4715_v47  ;;  %1869 = vmatprep.subr.mxu1 %v4718_v3 }
 0x398   :  { %1799 = vmatpush1.msra.mxu0 %v4721_v55  ;;  %1870 = vmatpush1.msra.mxu1 %v5950_v62 }
 0x399   :  { %1800 = vmatprep.subr.mxu0 %v5951_v31  ;;  %1871 = vmatprep.subr.mxu1 %v5952_v21 }
 0x39a   :  { %1801 = vmatpush1.msra.mxu0 %v5954_v57  ;;  %1872 = vmatpush1.msra.mxu1 %v5955_v8 }
 0x39b   :  { %1802 = vmatprep.subr.mxu0 %v5956_v22  ;;  %1873 = vmatprep.subr.mxu1 %v5957_v19  ;;  %v5977_v22 = vld [vmem:[#allocation35_spill] sm:$0xff] }
 0x39c   :  { %1803 = vmatpush1.msra.mxu0 %v5958_v7  ;;  %1874 = vmatpush1.msra.mxu1 %v5959_v4 }
 0x39d   :  { %1804 = vmatprep.subr.mxu0 %v5960_v9  ;;  %1875 = vmatprep.subr.mxu1 %v5961_v12  ;;  %v1362_v12 = vld [vmem:[#allocation4 + $0x18] sm:$0xff] }
 0x39e   :  { %1805 = vmatpush1.msra.mxu0 %v5962_v13  ;;  %1876 = vmatpush1.msra.mxu1 %v5963_v6  ;;  %v5978_v13 = vld [vmem:[#allocation39_spill] sm:$0xff] }
 0x39f   :  { %1806 = vmatprep.subr.mxu0 %v5964_v10  ;;  %1877 = vmatprep.subr.mxu1 %v5965_v16 }
 0x3a0   :  { %1807 = vmatpush1.msra.mxu0 %v5976_v52  ;;  %1878 = vmatpush1.msra.mxu1 %v5977_v22 }
 0x3a1   :  { %1808 = vmatprep.subr.mxu0 %v5968_v11  ;;  %1879 = vmatprep.subr.mxu1 %v5969_v25 }
 0x3a2   :  { %1809 = vmatpush1.msra.mxu0 %v5970_v63  ;;  %1842 = vmatprep.mubr.f32.mxu0 %v5971_v2 }
 0x3a3   :  { %1880 = vmatpush1.msra.mxu1 %v5973_v5  ;;  %1913 = vmatprep.mubr.f32.mxu1 %v5971_v2 }
 0x3a4   :  { %1984 = vmatprep.subr.mxu0 %v5974_v26  ;;  %2055 = vmatprep.subr.mxu1 %v5975_v20 }
 0x421   :  { %v1432_v16 = vpop.f32.mrf.mxu0  ;;  %v1503_v52 = vpop.f32.mrf.mxu1 }
 0x423   :  { %v1434_v10 = vpop.f32.mrf.mxu0  ;;  %v1505_v22 = vpop.f32.mrf.mxu1 }
 0x424   :  { %v1512_v6 = vcombine.low %v1432_v16, %v1434_v10  ;;  %v1513_v11 = vcombine.low %v1503_v52, %v1505_v22 }
 0x426   :  { %v1520_v25 = vrot.slane %v1512_v6, %v5978_v13  ;;  %v1527_v63 = vrot.slane %v1513_v11, %v5978_v13 }
 0x428   :  { %v1528_v9 = vcombine.low %v1520_v25, %v1527_v63 }
 0x42a   :  { %v1530_v4 = vadd.f32 %v1528_v9, %v1362_v12 }
 0x42c   :  { %v3463_v5 = vmul.f32 -1.442695, %v1530_v4  ;;  %v1538_v7 = vrot.slane %v1530_v4, 2  ;;  %v1549_v26 = vrot.slane %v1530_v4, 6  ;;  %v1546_v8 = vrot.slane %v1530_v4, 4 }
 0x42e   :  { %3602 = vpow2.f32 %v3463_v5  ;;  %v3464_v2 = vmul.f32 -1.442695, %v1538_v7  ;;  %v3465_v20 = vmul.f32 -1.442695, %v1549_v26 }
 0x430   :  { %3604 = vpow2.f32 %v3464_v2 }
 0x431   :  { %3606 = vpow2.f32 %v3465_v20 }
 0x43b   :  { %v3603_v19 = vpop.eup %3602 }
 0x43c   :  { %v1534_v57 = vadd.f32 1.0, %v3603_v19 }
 0x43d   :  { %v3605_v10 = vpop.eup %3604 }
 0x43e   :  { %3608 = vrcp.f32 %v1534_v57  ;;  %v1543_v52 = vadd.f32 1.0, %v3605_v10  ;;  %v3607_v63 = vpop.eup %3606  ;;  %v1557_v10 = vld [vmem:[#allocation3] sm:$0x3] }
 0x43f   :  { %3610 = vtanh.f32 %v1546_v8  ;;  %v1554_v20 = vadd.f32 1.0, %v3607_v63 }
 0x440   :  { %3612 = vrcp.f32 %v1543_v52 }
 0x442   :  { %v1638_v22 = vpop.f32.mrf.mxu0  ;;  %v1709_v6 = vpop.f32.mrf.mxu1 }
 0x444   :  { %v1640_v16 = vpop.f32.mrf.mxu0  ;;  %v1711_v9 = vpop.f32.mrf.mxu1 }
 0x445   :  { %v1718_v11 = vcombine.low %v1638_v22, %v1640_v16  ;;  %v1719_v25 = vcombine.low %v1709_v6, %v1711_v9 }
 0x447   :  { %v1726_v5 = vrot.slane %v1718_v11, %v5978_v13  ;;  %v1733_v7 = vrot.slane %v1719_v25, %v5978_v13 }
 0x449   :  { %v1734_v2 = vcombine.low %v1726_v5, %v1733_v7 }
 0x44b   :  { %v3609_v4 = vpop.eup %3608  ;;  %v1736_v19 = vadd.f32 %v1734_v2, %v1362_v12  ;;  %v5021_v2 = vpop.permute.xlu1 %1566 }
 0x44c   :  { %v3611_v26 = vpop.eup %3610  ;;  %vm1568_vm11 = vcmp.eq.s32.totalorder %v5021_v2, 1  ;;  %v5165_v2 = vld [vmem:[#allocation7 + $0x158] sm:$0xff] }
 0x44d   :  { %v3613_v57 = vpop.eup %3612  ;;  %v3466_v8 = vmul.f32 -1.442695, %v1736_v19  ;;  %v1744_v52 = vrot.slane %v1736_v19, 2  ;;  %v1559_v31 = vmul.f32 %v3611_v26, %v3609_v4  ;;  %v1755_v6 = vrot.slane %v1736_v19, 6 }
 0x44e   :  { %v1558_v21 = vmul.f32 %v3613_v57, %v1557_v10  ;;  %v1752_v11 = vrot.slane %v1736_v19, 4 }
 0x44f   :  { %3614 = vpow2.f32 %v3466_v8  ;;  %v3467_v62 = vmul.f32 -1.442695, %v1744_v52  ;;  %v3468_v16 = vmul.f32 -1.442695, %v1755_v6  ;;  %v1763_v8 = vld [vmem:[#allocation3 + $0x2] sm:$0x3] }
 0x450   :  { %3616 = vrcp.f32 %v1554_v20  ;;  %v1560_v22 = vadd.f32 %v1559_v31, %v1558_v21  ;;  %v5138_v6 = vld [vmem:[#allocation7 + $0x188] sm:$0xff] }
 0x451   :  { %3618 = vpow2.f32 %v3467_v62  ;;  %v5979_v62 = vld [vmem:[#allocation36_spill] sm:$0xff] }
 0x452   :  { %3620 = vtanh.f32 %v1560_v22  ;;  %1563 = vst [vmem:[#allocation3] sm:$0x3] %v1560_v22 }
 0x453   :  { %3622 = vpow2.f32 %v3468_v16  ;;  %v5141_v16 = vld [vmem:[#allocation7 + $0x198] sm:$0xff] }
 0x45c   :  { %v3615_v9 = vpop.eup %3614 }
 0x45d   :  { %v3617_v12 = vpop.eup %3616  ;;  %v1740_v25 = vadd.f32 1.0, %v3615_v9  ;;  %v5144_v9 = vld [vmem:[#allocation7 + $0x180] sm:$0xff] }
 0x45e   :  { %v3619_v5 = vpop.eup %3618 }
 0x45f   :  { %v3621_v7 = vpop.eup %3620  ;;  %3624 = vrcp.f32 %v1740_v25  ;;  %v1749_v63 = vadd.f32 1.0, %v3619_v5  ;;  %v5153_v25 = vld [vmem:[#allocation7 + $0x178] sm:$0xff]  ;;  %v5156_v5 = vld [vmem:[#allocation7 + $0x160] sm:$0xff] }
 0x460   :  { %v1562_v4 = vmul.f32 %v3621_v7, %v3617_v12  ;;  %3626 = vtanh.f32 %v1752_v11  ;;  %v3623_v19 = vpop.eup %3622  ;;  %v5147_v11 = vld [vmem:[#allocation7 + $0x190] sm:$0xff]  ;;  %v5150_v12 = vld [vmem:[#allocation7 + $0x168] sm:$0xff] }
 0x461   :  { %3628 = vrcp.f32 %v1749_v63  ;;  %v1760_v10 = vadd.f32 1.0, %v3623_v19  ;;  %v5159_v7 = vld [vmem:[#allocation7 + $0x170] sm:$0xff]  ;;  %v5162_v63 = vld [vmem:[#allocation7 + $0x148] sm:$0xff]  ;;  %v5177_v19 = vld [vmem:[#allocation7 + $0x138] sm:$0xff] }
 0x462   :  { %v1569_v31 = vsel %vm1568_vm11, %v1562_v4, %v5979_v62  ;;  %v5168_v4 = vld [vmem:[#allocation7 + $0x140] sm:$0xff]  ;;  %v5171_v62 = vld [vmem:[#allocation7 + $0x150] sm:$0xff] }
 0x463   :  { %1570 = vst [vmem:[#allocation2] sm:$0x3] %v1569_v31  ;;  %3630 = vrcp.f32 %v1760_v10  ;;  %v5174_v31 = vld [vmem:[#allocation7 + $0x128] sm:$0xff]  ;;  %v5189_v10 = vld [vmem:[#allocation7 + $0x118] sm:$0xff] }
 0x46a   :  { %v5027_v21 = vld [vmem:[#allocation2] sm:$0x3] }
 0x46b   :  { %1843 = vmatmul.mubr.f32.vlgmr.msra.gmra.mxu0 %v5027_v21  ;;  %1914 = vmatmul.mubr.f32.vlgmr.msra.gmra.mxu1 %v5027_v21 }
 0x46c   :  { %v3625_v26 = vpop.eup %3624  ;;  %1985 = vmatpush1.msra.mxu0 %v4601_v14  ;;  %2056 = vmatpush1.msra.mxu1 %v4604_v15 }
 0x46d   :  { %v3627_v20 = vpop.eup %3626  ;;  %1986 = vmatprep.subr.mxu0 %v4607_v17  ;;  %2057 = vmatprep.subr.mxu1 %v4610_v18  ;;  %v5980_v18 = vld [vmem:[#allocation38_spill] sm:$0xff] }
 0x46e   :  { %v3629_v57 = vpop.eup %3628  ;;  %1987 = vmatpush1.msra.mxu0 %v4613_v23  ;;  %2058 = vmatpush1.msra.mxu1 %v4616_v24  ;;  %v1765_v22 = vmul.f32 %v3627_v20, %v3625_v26  ;;  %v5981_v24 = vld [vmem:[#allocation18_spill] sm:$0xff]  ;;  %v5180_v26 = vld [vmem:[#allocation7 + $0x120] sm:$0xff] }
 0x46f   :  { %v1764_v52 = vmul.f32 %v3629_v57, %v1763_v8  ;;  %1988 = vmatprep.subr.mxu0 %v4619_v27  ;;  %2059 = vmatprep.subr.mxu1 %v4622_v28  ;;  %v5982_v27 = vld [vmem:[#allocation19_spill] sm:$0xff]  ;;  %v5983_v28 = vld [vmem:[#allocation20_spill] sm:$0xff]  ;;  %v5186_v57 = vld [vmem:[#allocation7 + $0x108] sm:$0xff] }
 0x470   :  { %1989 = vmatpush1.msra.mxu0 %v4625_v29  ;;  %2060 = vmatpush1.msra.mxu1 %v4628_v30  ;;  %v3631_v15 = vpop.eup %3630  ;;  %v5984_v29 = vld [vmem:[#allocation21_spill] sm:$0xff]  ;;  %v5183_v20 = vld [vmem:[#allocation7 + $0x130] sm:$0xff] }
 0x471   :  { %v1766_v14 = vadd.f32 %v1765_v22, %v1764_v52  ;;  %1990 = vmatprep.subr.mxu0 %v4631_v32  ;;  %2061 = vmatprep.subr.mxu1 %v4634_v33  ;;  %v5985_v30 = vld [vmem:[#allocation17_spill] sm:$0xff]  ;;  %v5986_v33 = vld [vmem:[#allocation22_spill] sm:$0xff] }
 0x472   :  { %1991 = vmatpush1.msra.mxu0 %v4637_v34  ;;  %2062 = vmatpush1.msra.mxu1 %v4640_v35  ;;  %v5987_v34 = vld [vmem:[#allocation23_spill] sm:$0xff]  ;;  %v5988_v35 = vld [vmem:[#allocation24_spill] sm:$0xff]  ;;  %v5198_v22 = vld [vmem:[#allocation7 + $0xe8] sm:$0xff] }
 0x473   :  { %3632 = vtanh.f32 %v1766_v14  ;;  %1769 = vst [vmem:[#allocation3 + $0x2] sm:$0x3] %v1766_v14  ;;  %1992 = vmatprep.subr.mxu0 %v4643_v36  ;;  %2063 = vmatprep.subr.mxu1 %v4646_v37  ;;  %v5989_v36 = vld [vmem:[#allocation25_spill] sm:$0xff]  ;;  %v5990_v37 = vld [vmem:[#allocation26_spill] sm:$0xff]  ;;  %v5201_v14 = vld [vmem:[#allocation7 + $0xf8] sm:$0xff] }
 0x474   :  { %1993 = vmatpush1.msra.mxu0 %v4649_v38  ;;  %2064 = vmatpush1.msra.mxu1 %v4652_v39  ;;  %v5991_v38 = vld [vmem:[#allocation27_spill] sm:$0xff]  ;;  %v5992_v39 = vld [vmem:[#allocation28_spill] sm:$0xff] }
 0x475   :  { %1994 = vmatprep.subr.mxu0 %v4655_v40  ;;  %2065 = vmatprep.subr.mxu1 %v4658_v41  ;;  %v5993_v40 = vld [vmem:[#allocation29_spill] sm:$0xff]  ;;  %v5994_v41 = vld [vmem:[#allocation32_spill] sm:$0xff]  ;;  %v5195_v52 = vld [vmem:[#allocation7 + $0x110] sm:$0xff] }
 0x476   :  { %1995 = vmatpush1.msra.mxu0 %v4661_v42  ;;  %2066 = vmatpush1.msra.mxu1 %v4664_v43  ;;  %v5995_v42 = vld [vmem:[#allocation33_spill] sm:$0xff]  ;;  %v5996_v43 = vld [vmem:[#allocation34_spill] sm:$0xff] }
 0x477   :  { %1996 = vmatprep.subr.mxu0 %v4667_v44  ;;  %2067 = vmatprep.subr.mxu1 %v4670_v58  ;;  %v5997_v44 = vld [vmem:[#allocation35_spill] sm:$0xff]  ;;  %v5998_v58 = vld [vmem:[#allocation13_spill] sm:$0xff] }
 0x478   :  { %1997 = vmatpush1.msra.mxu0 %v4673_v54  ;;  %2068 = vmatpush1.msra.mxu1 %v4676_v56  ;;  %v5999_v54 = vld [vmem:[#allocation14_spill] sm:$0xff]  ;;  %v5192_v8 = vld [vmem:[#allocation7 + $0x100] sm:$0xff] }
 0x479   :  { %1998 = vmatprep.subr.mxu0 %v4679_v51  ;;  %2069 = vmatprep.subr.mxu1 %v4682_v45  ;;  %v6000_v56 = vld [vmem:[#allocation30_spill] sm:$0xff]  ;;  %v6001_v51 = vmov 0.0   ;;  %v6002_v45 = vld [vmem:[#allocation31_spill] sm:$0xff] }
 0x47a   :  { %1999 = vmatpush1.msra.mxu0 %v4685_v46  ;;  %2070 = vmatpush1.msra.mxu1 %v4688_v61  ;;  %v5102_v61 = vld [vmem:[#allocation7 + $0x1e8] sm:$0xff] }
 0x47b   :  { %2000 = vmatprep.subr.mxu0 %v4691_v53  ;;  %2071 = vmatprep.subr.mxu1 %v4694_v48  ;;  %6004 = vst [vmem:[#allocation15_spill] sm:$0xff] %v5102_v61  ;;  %v5105_v53 = vld [vmem:[#allocation7 + $0x1f8] sm:$0xff]  ;;  %v5108_v48 = vld [vmem:[#allocation7 + $0x1e0] sm:$0xff] }
 0x47c   :  { %2001 = vmatpush1.msra.mxu0 %v4697_v49  ;;  %2072 = vmatpush1.msra.mxu1 %v4700_v1  ;;  %6005 = vst [vmem:[#allocation16_spill] sm:$0xff] %v5105_v53  ;;  %v5111_v49 = vld [vmem:[#allocation7 + $0x1f0] sm:$0xff]  ;;  %v5114_v1 = vld [vmem:[#allocation7 + $0x1c8] sm:$0xff] }
 0x47d   :  { %2002 = vmatprep.subr.mxu0 %v4703_v60  ;;  %2073 = vmatprep.subr.mxu1 %v4706_v59  ;;  %v5117_v60 = vld [vmem:[#allocation7 + $0x1d8] sm:$0xff]  ;;  %v5120_v59 = vld [vmem:[#allocation7 + $0x1c0] sm:$0xff] }
 0x47e   :  { %2003 = vmatpush1.msra.mxu0 %v4709_v50  ;;  %2074 = vmatpush1.msra.mxu1 %v4712_v0  ;;  %v5123_v50 = vld [vmem:[#allocation7 + $0x1d0] sm:$0xff]  ;;  %v5126_v0 = vld [vmem:[#allocation7 + $0x1a8] sm:$0xff] }
 0x47f   :  { %2004 = vmatprep.subr.mxu0 %v4715_v47  ;;  %2075 = vmatprep.subr.mxu1 %v4718_v3  ;;  %v5129_v47 = vld [vmem:[#allocation7 + $0x1b8] sm:$0xff]  ;;  %v5132_v3 = vld [vmem:[#allocation7 + $0x1a0] sm:$0xff] }
 0x480   :  { %v3633_v17 = vpop.eup %3632  ;;  %2005 = vmatpush1.msra.mxu0 %v4721_v55  ;;  %2076 = vmatpush1.msra.mxu1 %v5980_v18  ;;  %v5135_v55 = vld [vmem:[#allocation7 + $0x1b0] sm:$0xff]  ;;  %v5210_v18 = vld [vmem:[#allocation7 + $0xc8] sm:$0xff] }
 0x481   :  { %v1768_v23 = vmul.f32 %v3633_v17, %v3631_v15  ;;  %2006 = vmatprep.subr.mxu0 %v5981_v24  ;;  %2077 = vmatprep.subr.mxu1 %v5982_v27  ;;  %v5204_v15 = vld [vmem:[#allocation7 + $0xe0] sm:$0xff]  ;;  %v5207_v17 = vld [vmem:[#allocation7 + $0xf0] sm:$0xff] }
 0x482   :  { %2007 = vmatpush1.msra.mxu0 %v5983_v28  ;;  %2078 = vmatpush1.msra.mxu1 %v5984_v29  ;;  %v5216_v24 = vld [vmem:[#allocation7 + $0xc0] sm:$0xff]  ;;  %v5219_v27 = vld [vmem:[#allocation7 + $0xd0] sm:$0xff]  ;;  %v5222_v28 = vld [vmem:[#allocation7 + $0xa8] sm:$0xff] }
 0x483   :  { %v1770_v32 = vsel %vm1568_vm11, %v1768_v23, %v5985_v30  ;;  %2008 = vmatprep.subr.mxu0 %v5986_v33  ;;  %2079 = vmatprep.subr.mxu1 %v5987_v34  ;;  %v5213_v23 = vld [vmem:[#allocation7 + $0xd8] sm:$0xff]  ;;  %v5228_v30 = vld [vmem:[#allocation7 + $0xa0] sm:$0xff]  ;;  %v5234_v33 = vld [vmem:[#allocation7 + $0x88] sm:$0xff] }
 0x484   :  { %1771 = vst [vmem:[#allocation2 + $0x2] sm:$0x3] %v1770_v32  ;;  %2009 = vmatpush1.msra.mxu0 %v5988_v35  ;;  %2080 = vmatpush1.msra.mxu1 %v5989_v36  ;;  %v5225_v29 = vld [vmem:[#allocation7 + $0xb8] sm:$0xff]  ;;  %6006 = vst [vmem:[#allocation36_spill] sm:$0xff] %v5228_v30  ;;  %v5231_v32 = vld [vmem:[#allocation7 + $0xb0] sm:$0xff] }
 0x485   :  { %2010 = vmatprep.subr.mxu0 %v5990_v37  ;;  %2081 = vmatprep.subr.mxu1 %v5991_v38  ;;  %6007 = vst [vmem:[#allocation38_spill] sm:$0xff] %v5231_v32  ;;  %6008 = vst [vmem:[#allocation18_spill] sm:$0xff] %v5234_v33  ;;  %v5237_v34 = vld [vmem:[#allocation7 + $0x98] sm:$0xff]  ;;  %v5240_v35 = vld [vmem:[#allocation7 + $0x80] sm:$0xff] }
 0x486   :  { %2011 = vmatpush1.msra.mxu0 %v5992_v39  ;;  %2082 = vmatpush1.msra.mxu1 %v5993_v40  ;;  %6009 = vst [vmem:[#allocation19_spill] sm:$0xff] %v5237_v34  ;;  %6010 = vst [vmem:[#allocation20_spill] sm:$0xff] %v5240_v35  ;;  %v5243_v36 = vld [vmem:[#allocation7 + $0x90] sm:$0xff]  ;;  %v5246_v37 = vld [vmem:[#allocation7 + $0x68] sm:$0xff] }
 0x487   :  { %2012 = vmatprep.subr.mxu0 %v5994_v41  ;;  %2083 = vmatprep.subr.mxu1 %v5995_v42  ;;  %6011 = vst [vmem:[#allocation21_spill] sm:$0xff] %v5243_v36  ;;  %6012 = vst [vmem:[#allocation17_spill] sm:$0xff] %v5246_v37  ;;  %v5249_v38 = vld [vmem:[#allocation7 + $0x78] sm:$0xff]  ;;  %v5252_v39 = vld [vmem:[#allocation7 + $0x60] sm:$0xff] }
 0x488   :  { %2013 = vmatpush1.msra.mxu0 %v5996_v43  ;;  %2084 = vmatpush1.msra.mxu1 %v5997_v44  ;;  %6013 = vst [vmem:[#allocation22_spill] sm:$0xff] %v5249_v38  ;;  %6014 = vst [vmem:[#allocation23_spill] sm:$0xff] %v5252_v39  ;;  %v5255_v40 = vld [vmem:[#allocation7 + $0x70] sm:$0xff]  ;;  %v5258_v41 = vld [vmem:[#allocation7 + $0x48] sm:$0xff] }
 0x489   :  { %2014 = vmatprep.subr.mxu0 %v5998_v58  ;;  %2085 = vmatprep.subr.mxu1 %v5999_v54  ;;  %6015 = vst [vmem:[#allocation24_spill] sm:$0xff] %v5255_v40  ;;  %6016 = vst [vmem:[#allocation25_spill] sm:$0xff] %v5258_v41  ;;  %v5261_v42 = vld [vmem:[#allocation7 + $0x58] sm:$0xff]  ;;  %v5264_v43 = vld [vmem:[#allocation7 + $0x40] sm:$0xff] }
 0x48a   :  { %2015 = vmatpush1.msra.mxu0 %v6000_v56  ;;  %2048 = vmatprep.mubr.f32.mxu0 %v6001_v51  ;;  %6017 = vst [vmem:[#allocation26_spill] sm:$0xff] %v5261_v42  ;;  %6018 = vst [vmem:[#allocation27_spill] sm:$0xff] %v5264_v43  ;;  %v5267_v44 = vld [vmem:[#allocation7 + $0x50] sm:$0xff]  ;;  %v5270_v58 = vld [vmem:[#allocation7 + $0x28] sm:$0xff] }
 0x48b   :  { %2086 = vmatpush1.msra.mxu1 %v6002_v45  ;;  %2119 = vmatprep.mubr.f32.mxu1 %v6001_v51  ;;  %v5098_v46 = vld [vmem:[#allocation2 + $0x2] sm:$0x3]  ;;  %6019 = vst [vmem:[#allocation28_spill] sm:$0xff] %v5267_v44  ;;  %6020 = vst [vmem:[#allocation29_spill] sm:$0xff] %v5270_v58  ;;  %v5276_v56 = vld [vmem:[#allocation7 + $0x20] sm:$0xff] }
 0x48c   :  { %6003 = vst [vmem:[#allocation37_spill] sm:$0xff] %v5098_v46  ;;  %2049 = vmatmul.mubr.f32.vlgmr.msra.gmra.mxu0 %v5098_v46  ;;  %2120 = vmatmul.mubr.f32.vlgmr.msra.gmra.mxu1 %v5098_v46  ;;  %v5273_v54 = vld [vmem:[#allocation7 + $0x38] sm:$0xff]  ;;  %6022 = vst [vmem:[#allocation33_spill] sm:$0xff] %v5276_v56  ;;  %v5279_v45 = vld [vmem:[#allocation7 + $0x30] sm:$0xff] }
 0x48d   :  { %2190 = vmatprep.subr.mxu0 %v5102_v61  ;;  %2261 = vmatprep.subr.mxu1 %v5105_v53  ;;  %6021 = vst [vmem:[#allocation32_spill] sm:$0xff] %v5273_v54  ;;  %6023 = vst [vmem:[#allocation34_spill] sm:$0xff] %v5279_v45 }
 0x48e   :  { %2191 = vmatpush1.msra.mxu0 %v5108_v48  ;;  %2262 = vmatpush1.msra.mxu1 %v5111_v49 }
 0x48f   :  { %2192 = vmatprep.subr.mxu0 %v5114_v1  ;;  %2263 = vmatprep.subr.mxu1 %v5117_v60 }
 0x490   :  { %2193 = vmatpush1.msra.mxu0 %v5120_v59  ;;  %2264 = vmatpush1.msra.mxu1 %v5123_v50 }
 0x491   :  { %2194 = vmatprep.subr.mxu0 %v5126_v0  ;;  %2265 = vmatprep.subr.mxu1 %v5129_v47 }
 0x492   :  { %2195 = vmatpush1.msra.mxu0 %v5132_v3  ;;  %2266 = vmatpush1.msra.mxu1 %v5135_v55 }
 0x493   :  { %2196 = vmatprep.subr.mxu0 %v5138_v6  ;;  %2267 = vmatprep.subr.mxu1 %v5141_v16 }
 0x494   :  { %2197 = vmatpush1.msra.mxu0 %v5144_v9  ;;  %2268 = vmatpush1.msra.mxu1 %v5147_v11 }
 0x495   :  { %2198 = vmatprep.subr.mxu0 %v5150_v12  ;;  %2269 = vmatprep.subr.mxu1 %v5153_v25 }
 0x496   :  { %2199 = vmatpush1.msra.mxu0 %v5156_v5  ;;  %2270 = vmatpush1.msra.mxu1 %v5159_v7 }
 0x497   :  { %2200 = vmatprep.subr.mxu0 %v5162_v63  ;;  %2271 = vmatprep.subr.mxu1 %v5165_v2 }
 0x498   :  { %2201 = vmatpush1.msra.mxu0 %v5168_v4  ;;  %2272 = vmatpush1.msra.mxu1 %v5171_v62 }
 0x499   :  { %2202 = vmatprep.subr.mxu0 %v5174_v31  ;;  %2273 = vmatprep.subr.mxu1 %v5177_v19 }
 0x49a   :  { %2203 = vmatpush1.msra.mxu0 %v5180_v26  ;;  %2274 = vmatpush1.msra.mxu1 %v5183_v20 }
 0x49b   :  { %2204 = vmatprep.subr.mxu0 %v5186_v57  ;;  %2275 = vmatprep.subr.mxu1 %v5189_v10 }
 0x49c   :  { %2205 = vmatpush1.msra.mxu0 %v5192_v8  ;;  %2276 = vmatpush1.msra.mxu1 %v5195_v52 }
 0x49d   :  { %2206 = vmatprep.subr.mxu0 %v5198_v22  ;;  %2277 = vmatprep.subr.mxu1 %v5201_v14 }
 0x49e   :  { %2207 = vmatpush1.msra.mxu0 %v5204_v15  ;;  %2278 = vmatpush1.msra.mxu1 %v5207_v17 }
 0x49f   :  { %2208 = vmatprep.subr.mxu0 %v5210_v18  ;;  %2279 = vmatprep.subr.mxu1 %v5213_v23 }
 0x4a0   :  { %2209 = vmatpush1.msra.mxu0 %v5216_v24  ;;  %2280 = vmatpush1.msra.mxu1 %v5219_v27 }
 0x4a1   :  { %2210 = vmatprep.subr.mxu0 %v5222_v28  ;;  %2281 = vmatprep.subr.mxu1 %v5225_v29 }
 0x4a2   :  { %2211 = vmatpush1.msra.mxu0 %v5228_v30  ;;  %2282 = vmatpush1.msra.mxu1 %v5231_v32 }
 0x4a3   :  { %2212 = vmatprep.subr.mxu0 %v5234_v33  ;;  %2283 = vmatprep.subr.mxu1 %v5237_v34 }
 0x4a4   :  { %2213 = vmatpush1.msra.mxu0 %v5240_v35  ;;  %2284 = vmatpush1.msra.mxu1 %v5243_v36 }
 0x4a5   :  { %2214 = vmatprep.subr.mxu0 %v5246_v37  ;;  %2285 = vmatprep.subr.mxu1 %v5249_v38 }
 0x4a6   :  { %2215 = vmatpush1.msra.mxu0 %v5252_v39  ;;  %2286 = vmatpush1.msra.mxu1 %v5255_v40  ;;  %v1774_v39 = vld [vmem:[#allocation4 + $0x20] sm:$0xff] }
 0x4a7   :  { %2216 = vmatprep.subr.mxu0 %v5258_v41  ;;  %2287 = vmatprep.subr.mxu1 %v5261_v42 }
 0x4a8   :  { %2217 = vmatpush1.msra.mxu0 %v5264_v43  ;;  %2288 = vmatpush1.msra.mxu1 %v5267_v44  ;;  %v5282_v43 = vld [vmem:[#allocation7 + $0x8] sm:$0xff]  ;;  %v5285_v44 = vld [vmem:[#allocation7 + $0x18] sm:$0xff] }
 0x4a9   :  { %2218 = vmatprep.subr.mxu0 %v5270_v58  ;;  %2289 = vmatprep.subr.mxu1 %v5273_v54  ;;  %6024 = vst [vmem:[#allocation35_spill] sm:$0xff] %v5282_v43  ;;  %6025 = vst [vmem:[#allocation13_spill] sm:$0xff] %v5285_v44  ;;  %v5288_v58 = vld [vmem:[#allocation7] sm:$0xff]  ;;  %v5292_v54 = vld [vmem:[#allocation7 + $0x10] sm:$0xff] }
 0x4aa   :  { %2219 = vmatpush1.msra.mxu0 %v5276_v56  ;;  %2290 = vmatpush1.msra.mxu1 %v5279_v45  ;;  %6026 = vst [vmem:[#allocation14_spill] sm:$0xff] %v5288_v58  ;;  %6027 = vst [vmem:[#allocation30_spill] sm:$0xff] %v5292_v54 }
 0x4ab   :  { %2220 = vmatprep.subr.mxu0 %v5282_v43  ;;  %2291 = vmatprep.subr.mxu1 %v5285_v44 }
 0x4ac   :  { %2221 = vmatpush1.msra.mxu0 %v5288_v58  ;;  %2254 = vmatprep.mubr.f32.mxu0 %v6001_v51 }
 0x4ad   :  { %2292 = vmatpush1.msra.mxu1 %v5292_v54  ;;  %2325 = vmatprep.mubr.f32.mxu1 %v6001_v51 }
 0x4ae   :  { %2396 = vmatprep.subr.mxu0 %v5102_v61  ;;  %2467 = vmatprep.subr.mxu1 %v5105_v53 }
 0x52b   :  { %v1844_v43 = vpop.f32.mrf.mxu0  ;;  %v1915_v45 = vpop.f32.mrf.mxu1 }
 0x52d   :  { %v1846_v56 = vpop.f32.mrf.mxu0  ;;  %v1917_v44 = vpop.f32.mrf.mxu1 }
 0x52e   :  { %v1924_v42 = vcombine.low %v1844_v43, %v1846_v56  ;;  %v1925_v41 = vcombine.low %v1915_v45, %v1917_v44 }
 0x530   :  { %v1932_v58 = vrot.slane %v1924_v42, %v5978_v13  ;;  %v1939_v40 = vrot.slane %v1925_v41, %v5978_v13 }
 0x532   :  { %v1940_v38 = vcombine.low %v1932_v58, %v1939_v40 }
 0x534   :  { %v1942_v37 = vadd.f32 %v1940_v38, %v1774_v39 }
 0x536   :  { %v3469_v54 = vmul.f32 -1.442695, %v1942_v37  ;;  %v1950_v46 = vrot.slane %v1942_v37, 2  ;;  %v1961_v61 = vrot.slane %v1942_v37, 6  ;;  %v1958_v35 = vrot.slane %v1942_v37, 4 }
 0x538   :  { %3634 = vpow2.f32 %v3469_v54  ;;  %v3470_v51 = vmul.f32 -1.442695, %v1950_v46  ;;  %v3471_v53 = vmul.f32 -1.442695, %v1961_v61 }
 0x53a   :  { %3636 = vpow2.f32 %v3470_v51 }
 0x53b   :  { %3638 = vpow2.f32 %v3471_v53 }
 0x545   :  { %v3635_v36 = vpop.eup %3634 }
 0x546   :  { %v1946_v34 = vadd.f32 1.0, %v3635_v36 }
 0x547   :  { %v3637_v43 = vpop.eup %3636 }
 0x548   :  { %3640 = vrcp.f32 %v1946_v34  ;;  %v1955_v44 = vadd.f32 1.0, %v3637_v43  ;;  %v3639_v61 = vpop.eup %3638  ;;  %v1969_v43 = vld [vmem:[#allocation3] sm:$0x3] }
 0x549   :  { %3642 = vtanh.f32 %v1958_v35  ;;  %v1966_v45 = vadd.f32 1.0, %v3639_v61 }
 0x54a   :  { %3644 = vrcp.f32 %v1955_v44 }
 0x54c   :  { %v2050_v41 = vpop.f32.mrf.mxu0  ;;  %v2121_v42 = vpop.f32.mrf.mxu1 }
 0x54e   :  { %v2052_v40 = vpop.f32.mrf.mxu0  ;;  %v2123_v38 = vpop.f32.mrf.mxu1 }
 0x54f   :  { %v2130_v58 = vcombine.low %v2050_v41, %v2052_v40  ;;  %v2131_v56 = vcombine.low %v2121_v42, %v2123_v38 }
 0x551   :  { %v2138_v46 = vrot.slane %v2130_v58, %v5978_v13  ;;  %v2145_v51 = vrot.slane %v2131_v56, %v5978_v13 }
 0x553   :  { %v2146_v54 = vcombine.low %v2138_v46, %v2145_v51 }
 0x555   :  { %v3641_v37 = vpop.eup %3640  ;;  %v2148_v36 = vadd.f32 %v2146_v54, %v1774_v39  ;;  %v5302_v54 = vpop.permute.xlu0 %1978 }
 0x556   :  { %v3643_v53 = vpop.eup %3642  ;;  %vm1980_vm12 = vcmp.eq.s32.totalorder %v5302_v54, 1  ;;  %v6045_v54 = vld [vmem:[#allocation32_spill] sm:$0xff] }
 0x557   :  { %v3645_v34 = vpop.eup %3644  ;;  %v3472_v35 = vmul.f32 -1.442695, %v2148_v36  ;;  %v2156_v44 = vrot.slane %v2148_v36, 2  ;;  %v1971_v32 = vmul.f32 %v3643_v53, %v3641_v37  ;;  %v2167_v42 = vrot.slane %v2148_v36, 6 }
 0x558   :  { %v1970_v33 = vmul.f32 %v3645_v34, %v1969_v43  ;;  %v2164_v58 = vrot.slane %v2148_v36, 4  ;;  %v2175_v34 = vld [vmem:[#allocation3 + $0x2] sm:$0x3] }
 0x559   :  { %3646 = vpow2.f32 %v3472_v35  ;;  %v3473_v30 = vmul.f32 -1.442695, %v2156_v44  ;;  %v3474_v40 = vmul.f32 -1.442695, %v2167_v42 }
 0x55a   :  { %3648 = vrcp.f32 %v1966_v45  ;;  %v1972_v41 = vadd.f32 %v1971_v32, %v1970_v33 }
 0x55b   :  { %3650 = vpow2.f32 %v3473_v30 }
 0x55c   :  { %3652 = vtanh.f32 %v1972_v41  ;;  %1975 = vst [vmem:[#allocation3] sm:$0x3] %v1972_v41 }
 0x55d   :  { %3654 = vpow2.f32 %v3474_v40  ;;  %v6029_v40 = vld [vmem:[#allocation36_spill] sm:$0xff] }
 0x566   :  { %v3647_v38 = vpop.eup %3646 }
 0x567   :  { %v3649_v39 = vpop.eup %3648  ;;  %v2152_v56 = vadd.f32 1.0, %v3647_v38  ;;  %v6030_v38 = vld [vmem:[#allocation38_spill] sm:$0xff] }
 0x568   :  { %v3651_v46 = vpop.eup %3650 }
 0x569   :  { %v3653_v51 = vpop.eup %3652  ;;  %3656 = vrcp.f32 %v2152_v56  ;;  %v2161_v61 = vadd.f32 1.0, %v3651_v46  ;;  %v6032_v56 = vld [vmem:[#allocation19_spill] sm:$0xff]  ;;  %v6033_v46 = vld [vmem:[#allocation20_spill] sm:$0xff] }
 0x56a   :  { %v1974_v37 = vmul.f32 %v3653_v51, %v3649_v39  ;;  %3658 = vtanh.f32 %v2164_v58  ;;  %v3655_v33 = vpop.eup %3654  ;;  %v6031_v39 = vld [vmem:[#allocation18_spill] sm:$0xff]  ;;  %v6034_v51 = vld [vmem:[#allocation21_spill] sm:$0xff] }
 0x56b   :  { %3660 = vrcp.f32 %v2161_v61  ;;  %v6035_v61 = vld [vmem:[#allocation37_spill] sm:$0xff] }
 0x56c   :  { %v1981_v30 = vsel %vm1980_vm12, %v1974_v37, %v5027_v21  ;;  %v2172_v21 = vadd.f32 1.0, %v3655_v33  ;;  %v6037_v33 = vld [vmem:[#allocation22_spill] sm:$0xff] }
 0x56d   :  { %1982 = vst [vmem:[#allocation2] sm:$0x3] %v1981_v30  ;;  %v6036_v30 = vld [vmem:[#allocation17_spill] sm:$0xff] }
 0x56e   :  { %3662 = vrcp.f32 %v2172_v21  ;;  %v6041_v21 = vld [vmem:[#allocation26_spill] sm:$0xff] }
 0x574   :  { %v5308_v32 = vld [vmem:[#allocation2] sm:$0x3] }
 0x575   :  { %6028 = vst [vmem:[#allocation31_spill] sm:$0xff] %v5308_v32  ;;  %2255 = vmatmul.mubr.f32.vlgmr.msra.gmra.mxu0 %v5308_v32  ;;  %2326 = vmatmul.mubr.f32.vlgmr.msra.gmra.mxu1 %v5308_v32  ;;  %v6052_v32 = vld [vmem:[#allocation30_spill] sm:$0xff] }
 0x576   :  { %v3657_v36 = vpop.eup %3656  ;;  %2397 = vmatpush1.msra.mxu0 %v5108_v48  ;;  %2468 = vmatpush1.msra.mxu1 %v5111_v49 }
 0x577   :  { %v3659_v53 = vpop.eup %3658  ;;  %2398 = vmatprep.subr.mxu0 %v5114_v1  ;;  %2469 = vmatprep.subr.mxu1 %v5117_v60 }
 0x578   :  { %v3661_v45 = vpop.eup %3660  ;;  %2399 = vmatpush1.msra.mxu0 %v5120_v59  ;;  %2470 = vmatpush1.msra.mxu1 %v5123_v50  ;;  %v2177_v35 = vmul.f32 %v3659_v53, %v3657_v36  ;;  %v6038_v36 = vld [vmem:[#allocation23_spill] sm:$0xff]  ;;  %v6039_v53 = vld [vmem:[#allocation24_spill] sm:$0xff] }
 0x579   :  { %v2176_v43 = vmul.f32 %v3661_v45, %v2175_v34  ;;  %2400 = vmatprep.subr.mxu0 %v5126_v0  ;;  %2471 = vmatprep.subr.mxu1 %v5129_v47  ;;  %v6040_v45 = vld [vmem:[#allocation25_spill] sm:$0xff]  ;;  %v6042_v34 = vld [vmem:[#allocation27_spill] sm:$0xff] }
 0x57a   :  { %2401 = vmatpush1.msra.mxu0 %v5132_v3  ;;  %2472 = vmatpush1.msra.mxu1 %v5135_v55 }
 0x57b   :  { %v2178_v44 = vadd.f32 %v2177_v35, %v2176_v43  ;;  %2402 = vmatprep.subr.mxu0 %v5138_v6  ;;  %2473 = vmatprep.subr.mxu1 %v5141_v16  ;;  %v3663_v41 = vpop.eup %3662  ;;  %v6043_v43 = vld [vmem:[#allocation28_spill] sm:$0xff]  ;;  %v6044_v35 = vld [vmem:[#allocation29_spill] sm:$0xff] }
 0x57c   :  { %2403 = vmatpush1.msra.mxu0 %v5144_v9  ;;  %2474 = vmatpush1.msra.mxu1 %v5147_v11 }
 0x57d   :  { %3664 = vtanh.f32 %v2178_v44  ;;  %2181 = vst [vmem:[#allocation3 + $0x2] sm:$0x3] %v2178_v44  ;;  %2404 = vmatprep.subr.mxu0 %v5150_v12  ;;  %2475 = vmatprep.subr.mxu1 %v5153_v25  ;;  %v6046_v44 = vld [vmem:[#allocation33_spill] sm:$0xff] }
 0x57e   :  { %2405 = vmatpush1.msra.mxu0 %v5156_v5  ;;  %2476 = vmatpush1.msra.mxu1 %v5159_v7 }
 0x57f   :  { %2406 = vmatprep.subr.mxu0 %v5162_v63  ;;  %2477 = vmatprep.subr.mxu1 %v5165_v2 }
 0x580   :  { %2407 = vmatpush1.msra.mxu0 %v5168_v4  ;;  %2478 = vmatpush1.msra.mxu1 %v5171_v62 }
 0x581   :  { %2408 = vmatprep.subr.mxu0 %v5174_v31  ;;  %2479 = vmatprep.subr.mxu1 %v5177_v19 }
 0x582   :  { %2409 = vmatpush1.msra.mxu0 %v5180_v26  ;;  %2480 = vmatpush1.msra.mxu1 %v5183_v20 }
 0x583   :  { %2410 = vmatprep.subr.mxu0 %v5186_v57  ;;  %2481 = vmatprep.subr.mxu1 %v5189_v10 }
 0x584   :  { %2411 = vmatpush1.msra.mxu0 %v5192_v8  ;;  %2482 = vmatpush1.msra.mxu1 %v5195_v52 }
 0x585   :  { %2412 = vmatprep.subr.mxu0 %v5198_v22  ;;  %2483 = vmatprep.subr.mxu1 %v5201_v14 }
 0x586   :  { %2413 = vmatpush1.msra.mxu0 %v5204_v15  ;;  %2484 = vmatpush1.msra.mxu1 %v5207_v17 }
 0x587   :  { %2414 = vmatprep.subr.mxu0 %v5210_v18  ;;  %2485 = vmatprep.subr.mxu1 %v5213_v23 }
 0x588   :  { %2415 = vmatpush1.msra.mxu0 %v5216_v24  ;;  %2486 = vmatpush1.msra.mxu1 %v5219_v27 }
 0x589   :  { %2416 = vmatprep.subr.mxu0 %v5222_v28  ;;  %2487 = vmatprep.subr.mxu1 %v5225_v29 }
 0x58a   :  { %v3665_v42 = vpop.eup %3664  ;;  %2417 = vmatpush1.msra.mxu0 %v6029_v40  ;;  %2488 = vmatpush1.msra.mxu1 %v6030_v38 }
 0x58b   :  { %v2180_v58 = vmul.f32 %v3665_v42, %v3663_v41  ;;  %2418 = vmatprep.subr.mxu0 %v6031_v39  ;;  %2489 = vmatprep.subr.mxu1 %v6032_v56  ;;  %v6047_v41 = vld [vmem:[#allocation34_spill] sm:$0xff]  ;;  %v6048_v42 = vld [vmem:[#allocation35_spill] sm:$0xff] }
 0x58c   :  { %2419 = vmatpush1.msra.mxu0 %v6033_v46  ;;  %2490 = vmatpush1.msra.mxu1 %v6034_v51 }
 0x58d   :  { %v2182_v37 = vsel %vm1980_vm12, %v2180_v58, %v6035_v61  ;;  %2420 = vmatprep.subr.mxu0 %v6036_v30  ;;  %2491 = vmatprep.subr.mxu1 %v6037_v33  ;;  %v6049_v58 = vld [vmem:[#allocation13_spill] sm:$0xff]  ;;  %v6050_v61 = vld [vmem:[#allocation14_spill] sm:$0xff] }
 0x58e   :  { %2183 = vst [vmem:[#allocation2 + $0x2] sm:$0x3] %v2182_v37  ;;  %2421 = vmatpush1.msra.mxu0 %v6038_v36  ;;  %2492 = vmatpush1.msra.mxu1 %v6039_v53  ;;  %v6051_v37 = vmov 0.0  }
 0x58f   :  { %2422 = vmatprep.subr.mxu0 %v6040_v45  ;;  %2493 = vmatprep.subr.mxu1 %v6041_v21 }
 0x590   :  { %2423 = vmatpush1.msra.mxu0 %v6042_v34  ;;  %2494 = vmatpush1.msra.mxu1 %v6043_v43 }
 0x591   :  { %2424 = vmatprep.subr.mxu0 %v6044_v35  ;;  %2495 = vmatprep.subr.mxu1 %v6045_v54 }
 0x592   :  { %2425 = vmatpush1.msra.mxu0 %v6046_v44  ;;  %2496 = vmatpush1.msra.mxu1 %v6047_v41  ;;  %v6054_v44 = vld [vmem:[#allocation15_spill] sm:$0xff]  ;;  %v6055_v41 = vld [vmem:[#allocation16_spill] sm:$0xff] }
 0x593   :  { %2426 = vmatprep.subr.mxu0 %v6048_v42  ;;  %2497 = vmatprep.subr.mxu1 %v6049_v58 }
 0x594   :  { %2427 = vmatpush1.msra.mxu0 %v6050_v61  ;;  %2460 = vmatprep.mubr.f32.mxu0 %v6051_v37 }
 0x595   :  { %2498 = vmatpush1.msra.mxu1 %v6052_v32  ;;  %2531 = vmatprep.mubr.f32.mxu1 %v6051_v37  ;;  %v5379_v13 = vld [vmem:[#allocation2 + $0x2] sm:$0x3] }
 0x596   :  { %6053 = vst [vmem:[#allocation36_spill] sm:$0xff] %v5379_v13  ;;  %2461 = vmatmul.mubr.f32.vlgmr.msra.gmra.mxu0 %v5379_v13  ;;  %2532 = vmatmul.mubr.f32.vlgmr.msra.gmra.mxu1 %v5379_v13  ;;  %v6056_v13 = vld [vmem:[#allocation33_spill] sm:$0xff] }
 0x597   :  { %2602 = vmatprep.subr.mxu0 %v6054_v44  ;;  %2673 = vmatprep.subr.mxu1 %v6055_v41 }
 0x598   :  { %2603 = vmatpush1.msra.mxu0 %v5108_v48  ;;  %2674 = vmatpush1.msra.mxu1 %v5111_v49 }
 0x599   :  { %2604 = vmatprep.subr.mxu0 %v5114_v1  ;;  %2675 = vmatprep.subr.mxu1 %v5117_v60 }
 0x59a   :  { %2605 = vmatpush1.msra.mxu0 %v5120_v59  ;;  %2676 = vmatpush1.msra.mxu1 %v5123_v50 }
 0x59b   :  { %2606 = vmatprep.subr.mxu0 %v5126_v0  ;;  %2677 = vmatprep.subr.mxu1 %v5129_v47 }
 0x59c   :  { %2607 = vmatpush1.msra.mxu0 %v5132_v3  ;;  %2678 = vmatpush1.msra.mxu1 %v5135_v55 }
 0x59d   :  { %2608 = vmatprep.subr.mxu0 %v5138_v6  ;;  %2679 = vmatprep.subr.mxu1 %v5141_v16 }
 0x59e   :  { %2609 = vmatpush1.msra.mxu0 %v5144_v9  ;;  %2680 = vmatpush1.msra.mxu1 %v5147_v11 }
 0x59f   :  { %2610 = vmatprep.subr.mxu0 %v5150_v12  ;;  %2681 = vmatprep.subr.mxu1 %v5153_v25 }
 0x5a0   :  { %2611 = vmatpush1.msra.mxu0 %v5156_v5  ;;  %2682 = vmatpush1.msra.mxu1 %v5159_v7 }
 0x5a1   :  { %2612 = vmatprep.subr.mxu0 %v5162_v63  ;;  %2683 = vmatprep.subr.mxu1 %v5165_v2 }
 0x5a2   :  { %2613 = vmatpush1.msra.mxu0 %v5168_v4  ;;  %2684 = vmatpush1.msra.mxu1 %v5171_v62 }
 0x5a3   :  { %2614 = vmatprep.subr.mxu0 %v5174_v31  ;;  %2685 = vmatprep.subr.mxu1 %v5177_v19 }
 0x5a4   :  { %2615 = vmatpush1.msra.mxu0 %v5180_v26  ;;  %2686 = vmatpush1.msra.mxu1 %v5183_v20 }
 0x5a5   :  { %2616 = vmatprep.subr.mxu0 %v5186_v57  ;;  %2687 = vmatprep.subr.mxu1 %v5189_v10 }
 0x5a6   :  { %2617 = vmatpush1.msra.mxu0 %v5192_v8  ;;  %2688 = vmatpush1.msra.mxu1 %v5195_v52 }
 0x5a7   :  { %2618 = vmatprep.subr.mxu0 %v5198_v22  ;;  %2689 = vmatprep.subr.mxu1 %v5201_v14 }
 0x5a8   :  { %2619 = vmatpush1.msra.mxu0 %v5204_v15  ;;  %2690 = vmatpush1.msra.mxu1 %v5207_v17 }
 0x5a9   :  { %2620 = vmatprep.subr.mxu0 %v5210_v18  ;;  %2691 = vmatprep.subr.mxu1 %v5213_v23 }
 0x5aa   :  { %2621 = vmatpush1.msra.mxu0 %v5216_v24  ;;  %2692 = vmatpush1.msra.mxu1 %v5219_v27 }
 0x5ab   :  { %2622 = vmatprep.subr.mxu0 %v5222_v28  ;;  %2693 = vmatprep.subr.mxu1 %v5225_v29 }
 0x5ac   :  { %2623 = vmatpush1.msra.mxu0 %v6029_v40  ;;  %2694 = vmatpush1.msra.mxu1 %v6030_v38 }
 0x5ad   :  { %2624 = vmatprep.subr.mxu0 %v6031_v39  ;;  %2695 = vmatprep.subr.mxu1 %v6032_v56 }
 0x5ae   :  { %2625 = vmatpush1.msra.mxu0 %v6033_v46  ;;  %2696 = vmatpush1.msra.mxu1 %v6034_v51 }
 0x5af   :  { %2626 = vmatprep.subr.mxu0 %v6036_v30  ;;  %2697 = vmatprep.subr.mxu1 %v6037_v33  ;;  %v6057_v30 = vld [vmem:[#allocation34_spill] sm:$0xff] }
 0x5b0   :  { %2627 = vmatpush1.msra.mxu0 %v6038_v36  ;;  %2698 = vmatpush1.msra.mxu1 %v6039_v53 }
 0x5b1   :  { %2628 = vmatprep.subr.mxu0 %v6040_v45  ;;  %2699 = vmatprep.subr.mxu1 %v6041_v21  ;;  %v2186_v21 = vld [vmem:[#allocation4 + $0x28] sm:$0xff] }
 0x5b2   :  { %2629 = vmatpush1.msra.mxu0 %v6042_v34  ;;  %2700 = vmatpush1.msra.mxu1 %v6043_v43  ;;  %v6058_v34 = vld [vmem:[#allocation39_spill] sm:$0xff] }
 0x5b3   :  { %2630 = vmatprep.subr.mxu0 %v6044_v35  ;;  %2701 = vmatprep.subr.mxu1 %v6045_v54 }
 0x5b4   :  { %2631 = vmatpush1.msra.mxu0 %v6056_v13  ;;  %2702 = vmatpush1.msra.mxu1 %v6057_v30 }
 0x5b5   :  { %2632 = vmatprep.subr.mxu0 %v6048_v42  ;;  %2703 = vmatprep.subr.mxu1 %v6049_v58 }
 0x5b6   :  { %2633 = vmatpush1.msra.mxu0 %v6050_v61  ;;  %2666 = vmatprep.mubr.f32.mxu0 %v6051_v37 }
 0x5b7   :  { %2704 = vmatpush1.msra.mxu1 %v6052_v32  ;;  %2737 = vmatprep.mubr.f32.mxu1 %v6051_v37 }
 0x5b8   :  { %2808 = vmatprep.subr.mxu0 %v6054_v44  ;;  %2879 = vmatprep.subr.mxu1 %v6055_v41 }
 0x635   :  { %v2256_v54 = vpop.f32.mrf.mxu0  ;;  %v2327_v13 = vpop.f32.mrf.mxu1 }
 0x637   :  { %v2258_v35 = vpop.f32.mrf.mxu0  ;;  %v2329_v30 = vpop.f32.mrf.mxu1 }
 0x638   :  { %v2336_v43 = vcombine.low %v2256_v54, %v2258_v35  ;;  %v2337_v42 = vcombine.low %v2327_v13, %v2329_v30 }
 0x63a   :  { %v2344_v58 = vrot.slane %v2336_v43, %v6058_v34  ;;  %v2351_v61 = vrot.slane %v2337_v42, %v6058_v34 }
 0x63c   :  { %v2352_v45 = vcombine.low %v2344_v58, %v2351_v61 }
 0x63e   :  { %v2354_v53 = vadd.f32 %v2352_v45, %v2186_v21 }
 0x640   :  { %v3475_v32 = vmul.f32 -1.442695, %v2354_v53  ;;  %v2362_v36 = vrot.slane %v2354_v53, 2  ;;  %v2373_v44 = vrot.slane %v2354_v53, 6  ;;  %v2370_v51 = vrot.slane %v2354_v53, 4 }
 0x642   :  { %3666 = vpow2.f32 %v3475_v32  ;;  %v3476_v37 = vmul.f32 -1.442695, %v2362_v36  ;;  %v3477_v41 = vmul.f32 -1.442695, %v2373_v44 }
 0x644   :  { %3668 = vpow2.f32 %v3476_v37 }
 0x645   :  { %3670 = vpow2.f32 %v3477_v41 }
 0x64f   :  { %v3667_v33 = vpop.eup %3666 }
 0x650   :  { %v2358_v46 = vadd.f32 1.0, %v3667_v33 }
 0x651   :  { %v3669_v35 = vpop.eup %3668 }
 0x652   :  { %3672 = vrcp.f32 %v2358_v46  ;;  %v2367_v13 = vadd.f32 1.0, %v3669_v35  ;;  %v3671_v44 = vpop.eup %3670  ;;  %v2381_v35 = vld [vmem:[#allocation3] sm:$0x3] }
 0x653   :  { %3674 = vtanh.f32 %v2370_v51  ;;  %v2378_v37 = vadd.f32 1.0, %v3671_v44 }
 0x654   :  { %3676 = vrcp.f32 %v2367_v13 }
 0x656   :  { %v2462_v30 = vpop.f32.mrf.mxu0  ;;  %v2533_v43 = vpop.f32.mrf.mxu1 }
 0x658   :  { %v2464_v54 = vpop.f32.mrf.mxu0  ;;  %v2535_v45 = vpop.f32.mrf.mxu1 }
 0x659   :  { %v2542_v42 = vcombine.low %v2462_v30, %v2464_v54  ;;  %v2543_v58 = vcombine.low %v2533_v43, %v2535_v45 }
 0x65b   :  { %v2550_v32 = vrot.slane %v2542_v42, %v6058_v34  ;;  %v2557_v36 = vrot.slane %v2543_v58, %v6058_v34 }
 0x65d   :  { %v2558_v61 = vcombine.low %v2550_v32, %v2557_v36 }
 0x65f   :  { %v3673_v53 = vpop.eup %3672  ;;  %v2560_v33 = vadd.f32 %v2558_v61, %v2186_v21  ;;  %v5455_v61 = vpop.permute.xlu1 %2390 }
 0x660   :  { %v3675_v41 = vpop.eup %3674  ;;  %vm2392_vm13 = vcmp.eq.s32.totalorder %v5455_v61, 1  ;;  %v6076_v61 = vld [vmem:[#allocation32_spill] sm:$0xff] }
 0x661   :  { %v3677_v46 = vpop.eup %3676  ;;  %v3478_v51 = vmul.f32 -1.442695, %v2560_v33  ;;  %v2568_v13 = vrot.slane %v2560_v33, 2  ;;  %v2383_v39 = vmul.f32 %v3675_v41, %v3673_v53  ;;  %v2579_v43 = vrot.slane %v2560_v33, 6 }
 0x662   :  { %v2382_v56 = vmul.f32 %v3677_v46, %v2381_v35  ;;  %v2576_v42 = vrot.slane %v2560_v33, 4 }
 0x663   :  { %3678 = vpow2.f32 %v3478_v51  ;;  %v3479_v38 = vmul.f32 -1.442695, %v2568_v13  ;;  %v3480_v54 = vmul.f32 -1.442695, %v2579_v43  ;;  %v2587_v51 = vld [vmem:[#allocation3 + $0x2] sm:$0x3] }
 0x664   :  { %3680 = vrcp.f32 %v2378_v37  ;;  %v2384_v30 = vadd.f32 %v2383_v39, %v2382_v56 }
 0x665   :  { %3682 = vpow2.f32 %v3479_v38  ;;  %v6059_v38 = vld [vmem:[#allocation31_spill] sm:$0xff] }
 0x666   :  { %3684 = vtanh.f32 %v2384_v30  ;;  %2387 = vst [vmem:[#allocation3] sm:$0x3] %v2384_v30 }
 0x667   :  { %3686 = vpow2.f32 %v3480_v54 }
 0x670   :  { %v3679_v45 = vpop.eup %3678 }
 0x671   :  { %v3681_v21 = vpop.eup %3680  ;;  %v2564_v58 = vadd.f32 1.0, %v3679_v45 }
 0x672   :  { %v3683_v32 = vpop.eup %3682 }
 0x673   :  { %v3685_v36 = vpop.eup %3684  ;;  %3688 = vrcp.f32 %v2564_v58  ;;  %v2573_v44 = vadd.f32 1.0, %v3683_v32  ;;  %v6062_v58 = vld [vmem:[#allocation18_spill] sm:$0xff]  ;;  %v6063_v32 = vld [vmem:[#allocation19_spill] sm:$0xff] }
 0x674   :  { %v2386_v53 = vmul.f32 %v3685_v36, %v3681_v21  ;;  %3690 = vtanh.f32 %v2576_v42  ;;  %v3687_v33 = vpop.eup %3686  ;;  %v6061_v42 = vld [vmem:[#allocation38_spill] sm:$0xff]  ;;  %v6064_v36 = vld [vmem:[#allocation20_spill] sm:$0xff] }
 0x675   :  { %3692 = vrcp.f32 %v2573_v44  ;;  %v2584_v35 = vadd.f32 1.0, %v3687_v33  ;;  %v6065_v44 = vld [vmem:[#allocation21_spill] sm:$0xff]  ;;  %v6068_v33 = vld [vmem:[#allocation22_spill] sm:$0xff] }
 0x676   :  { %v2393_v39 = vsel %vm2392_vm13, %v2386_v53, %v6059_v38  ;;  %v6066_v53 = vld [vmem:[#allocation36_spill] sm:$0xff] }
 0x677   :  { %2394 = vst [vmem:[#allocation2] sm:$0x3] %v2393_v39  ;;  %3694 = vrcp.f32 %v2584_v35  ;;  %v6067_v39 = vld [vmem:[#allocation17_spill] sm:$0xff]  ;;  %v6072_v35 = vld [vmem:[#allocation26_spill] sm:$0xff] }
 0x67e   :  { %v5461_v56 = vld [vmem:[#allocation2] sm:$0x3] }
 0x67f   :  { %6060 = vst [vmem:[#allocation37_spill] sm:$0xff] %v5461_v56  ;;  %2667 = vmatmul.mubr.f32.vlgmr.msra.gmra.mxu0 %v5461_v56  ;;  %2738 = vmatmul.mubr.f32.vlgmr.msra.gmra.mxu1 %v5461_v56  ;;  %v6083_v56 = vld [vmem:[#allocation30_spill] sm:$0xff] }
 0x680   :  { %v3689_v41 = vpop.eup %3688  ;;  %2809 = vmatpush1.msra.mxu0 %v5108_v48  ;;  %2880 = vmatpush1.msra.mxu1 %v5111_v49 }
 0x681   :  { %v3691_v37 = vpop.eup %3690  ;;  %2810 = vmatprep.subr.mxu0 %v5114_v1  ;;  %2881 = vmatprep.subr.mxu1 %v5117_v60 }
 0x682   :  { %v3693_v46 = vpop.eup %3692  ;;  %2811 = vmatpush1.msra.mxu0 %v5120_v59  ;;  %2882 = vmatpush1.msra.mxu1 %v5123_v50  ;;  %v2589_v30 = vmul.f32 %v3691_v37, %v3689_v41  ;;  %v6069_v41 = vld [vmem:[#allocation23_spill] sm:$0xff]  ;;  %v6070_v37 = vld [vmem:[#allocation24_spill] sm:$0xff] }
 0x683   :  { %v2588_v13 = vmul.f32 %v3693_v46, %v2587_v51  ;;  %2812 = vmatprep.subr.mxu0 %v5126_v0  ;;  %2883 = vmatprep.subr.mxu1 %v5129_v47  ;;  %v6071_v46 = vld [vmem:[#allocation25_spill] sm:$0xff]  ;;  %v6073_v51 = vld [vmem:[#allocation27_spill] sm:$0xff] }
 0x684   :  { %2813 = vmatpush1.msra.mxu0 %v5132_v3  ;;  %2884 = vmatpush1.msra.mxu1 %v5135_v55  ;;  %v3695_v54 = vpop.eup %3694 }
 0x685   :  { %v2590_v43 = vadd.f32 %v2589_v30, %v2588_v13  ;;  %2814 = vmatprep.subr.mxu0 %v5138_v6  ;;  %2885 = vmatprep.subr.mxu1 %v5141_v16  ;;  %v6074_v13 = vld [vmem:[#allocation28_spill] sm:$0xff]  ;;  %v6075_v30 = vld [vmem:[#allocation29_spill] sm:$0xff] }
 0x686   :  { %2815 = vmatpush1.msra.mxu0 %v5144_v9  ;;  %2886 = vmatpush1.msra.mxu1 %v5147_v11 }
 0x687   :  { %3696 = vtanh.f32 %v2590_v43  ;;  %2593 = vst [vmem:[#allocation3 + $0x2] sm:$0x3] %v2590_v43  ;;  %2816 = vmatprep.subr.mxu0 %v5150_v12  ;;  %2887 = vmatprep.subr.mxu1 %v5153_v25  ;;  %v6077_v43 = vld [vmem:[#allocation33_spill] sm:$0xff] }
 0x688   :  { %2817 = vmatpush1.msra.mxu0 %v5156_v5  ;;  %2888 = vmatpush1.msra.mxu1 %v5159_v7 }
 0x689   :  { %2818 = vmatprep.subr.mxu0 %v5162_v63  ;;  %2889 = vmatprep.subr.mxu1 %v5165_v2 }
 0x68a   :  { %2819 = vmatpush1.msra.mxu0 %v5168_v4  ;;  %2890 = vmatpush1.msra.mxu1 %v5171_v62 }
 0x68b   :  { %2820 = vmatprep.subr.mxu0 %v5174_v31  ;;  %2891 = vmatprep.subr.mxu1 %v5177_v19 }
 0x68c   :  { %2821 = vmatpush1.msra.mxu0 %v5180_v26  ;;  %2892 = vmatpush1.msra.mxu1 %v5183_v20 }
 0x68d   :  { %2822 = vmatprep.subr.mxu0 %v5186_v57  ;;  %2893 = vmatprep.subr.mxu1 %v5189_v10 }
 0x68e   :  { %2823 = vmatpush1.msra.mxu0 %v5192_v8  ;;  %2894 = vmatpush1.msra.mxu1 %v5195_v52 }
 0x68f   :  { %2824 = vmatprep.subr.mxu0 %v5198_v22  ;;  %2895 = vmatprep.subr.mxu1 %v5201_v14 }
 0x690   :  { %2825 = vmatpush1.msra.mxu0 %v5204_v15  ;;  %2896 = vmatpush1.msra.mxu1 %v5207_v17 }
 0x691   :  { %2826 = vmatprep.subr.mxu0 %v5210_v18  ;;  %2897 = vmatprep.subr.mxu1 %v5213_v23 }
 0x692   :  { %2827 = vmatpush1.msra.mxu0 %v5216_v24  ;;  %2898 = vmatpush1.msra.mxu1 %v5219_v27 }
 0x693   :  { %2828 = vmatprep.subr.mxu0 %v5222_v28  ;;  %2899 = vmatprep.subr.mxu1 %v5225_v29 }
 0x694   :  { %v3697_v45 = vpop.eup %3696  ;;  %2829 = vmatpush1.msra.mxu0 %v6029_v40  ;;  %2900 = vmatpush1.msra.mxu1 %v6061_v42 }
 0x695   :  { %v2592_v21 = vmul.f32 %v3697_v45, %v3695_v54  ;;  %2830 = vmatprep.subr.mxu0 %v6062_v58  ;;  %2901 = vmatprep.subr.mxu1 %v6063_v32  ;;  %v6078_v54 = vld [vmem:[#allocation34_spill] sm:$0xff]  ;;  %v6079_v45 = vld [vmem:[#allocation35_spill] sm:$0xff] }
 0x696   :  { %2831 = vmatpush1.msra.mxu0 %v6064_v36  ;;  %2902 = vmatpush1.msra.mxu1 %v6065_v44 }
 0x697   :  { %v2594_v38 = vsel %vm2392_vm13, %v2592_v21, %v6066_v53  ;;  %2832 = vmatprep.subr.mxu0 %v6067_v39  ;;  %2903 = vmatprep.subr.mxu1 %v6068_v33  ;;  %v6080_v21 = vld [vmem:[#allocation13_spill] sm:$0xff]  ;;  %v6081_v53 = vld [vmem:[#allocation14_spill] sm:$0xff] }
 0x698   :  { %2595 = vst [vmem:[#allocation2 + $0x2] sm:$0x3] %v2594_v38  ;;  %2833 = vmatpush1.msra.mxu0 %v6069_v41  ;;  %2904 = vmatpush1.msra.mxu1 %v6070_v37  ;;  %v6082_v38 = vmov 0.0  }
 0x699   :  { %2834 = vmatprep.subr.mxu0 %v6071_v46  ;;  %2905 = vmatprep.subr.mxu1 %v6072_v35 }
 0x69a   :  { %2835 = vmatpush1.msra.mxu0 %v6073_v51  ;;  %2906 = vmatpush1.msra.mxu1 %v6074_v13 }
 0x69b   :  { %2836 = vmatprep.subr.mxu0 %v6075_v30  ;;  %2907 = vmatprep.subr.mxu1 %v6076_v61 }
 0x69c   :  { %2837 = vmatpush1.msra.mxu0 %v6077_v43  ;;  %2908 = vmatpush1.msra.mxu1 %v6078_v54  ;;  %v6084_v43 = vld [vmem:[#allocation15_spill] sm:$0xff]  ;;  %v6085_v54 = vld [vmem:[#allocation16_spill] sm:$0xff] }
 0x69d   :  { %2838 = vmatprep.subr.mxu0 %v6079_v45  ;;  %2909 = vmatprep.subr.mxu1 %v6080_v21 }
 0x69e   :  { %2839 = vmatpush1.msra.mxu0 %v6081_v53  ;;  %2872 = vmatprep.mubr.f32.mxu0 %v6082_v38 }
 0x69f   :  { %2910 = vmatpush1.msra.mxu1 %v6083_v56  ;;  %2943 = vmatprep.mubr.f32.mxu1 %v6082_v38  ;;  %v5532_v34 = vld [vmem:[#allocation2 + $0x2] sm:$0x3] }
 0x6a0   :  { %2873 = vmatmul.mubr.f32.vlgmr.msra.gmra.mxu0 %v5532_v34  ;;  %2944 = vmatmul.mubr.f32.vlgmr.msra.gmra.mxu1 %v5532_v34 }
 0x6a1   :  { %3014 = vmatprep.subr.mxu0 %v6084_v43  ;;  %3085 = vmatprep.subr.mxu1 %v6085_v54 }
 0x6a2   :  { %3015 = vmatpush1.msra.mxu0 %v5108_v48  ;;  %3086 = vmatpush1.msra.mxu1 %v5111_v49  ;;  %v6086_v48 = vld [vmem:[#allocation33_spill] sm:$0xff]  ;;  %v6087_v49 = vld [vmem:[#allocation34_spill] sm:$0xff] }
 0x6a3   :  { %3016 = vmatprep.subr.mxu0 %v5114_v1  ;;  %3087 = vmatprep.subr.mxu1 %v5117_v60  ;;  %v3890_v1 = vld [vmem:[#allocation7 + $0x1e8] sm:$0xff]  ;;  %v3891_v60 = vld [vmem:[#allocation7 + $0x1f8] sm:$0xff] }
 0x6a4   :  { %3017 = vmatpush1.msra.mxu0 %v5120_v59  ;;  %3088 = vmatpush1.msra.mxu1 %v5123_v50 }
 0x6a5   :  { %3018 = vmatprep.subr.mxu0 %v5126_v0  ;;  %3089 = vmatprep.subr.mxu1 %v5129_v47 }
 0x6a6   :  { %3019 = vmatpush1.msra.mxu0 %v5132_v3  ;;  %3090 = vmatpush1.msra.mxu1 %v5135_v55 }
 0x6a7   :  { %3020 = vmatprep.subr.mxu0 %v5138_v6  ;;  %3091 = vmatprep.subr.mxu1 %v5141_v16  ;;  %v6088_v6 = vld [vmem:[#allocation39_spill] sm:$0xff] }
 0x6a8   :  { %3021 = vmatpush1.msra.mxu0 %v5144_v9  ;;  %3092 = vmatpush1.msra.mxu1 %v5147_v11  ;;  %v2598_v11 = vld [vmem:[#allocation4 + $0x30] sm:$0xff] }
 0x6a9   :  { %3022 = vmatprep.subr.mxu0 %v5150_v12  ;;  %3093 = vmatprep.subr.mxu1 %v5153_v25 }
 0x6aa   :  { %3023 = vmatpush1.msra.mxu0 %v5156_v5  ;;  %3094 = vmatpush1.msra.mxu1 %v5159_v7 }
 0x6ab   :  { %3024 = vmatprep.subr.mxu0 %v5162_v63  ;;  %3095 = vmatprep.subr.mxu1 %v5165_v2 }
 0x6ac   :  { %3025 = vmatpush1.msra.mxu0 %v5168_v4  ;;  %3096 = vmatpush1.msra.mxu1 %v5171_v62 }
 0x6ad   :  { %3026 = vmatprep.subr.mxu0 %v5174_v31  ;;  %3097 = vmatprep.subr.mxu1 %v5177_v19 }
 0x6ae   :  { %3027 = vmatpush1.msra.mxu0 %v5180_v26  ;;  %3098 = vmatpush1.msra.mxu1 %v5183_v20 }
 0x6af   :  { %3028 = vmatprep.subr.mxu0 %v5186_v57  ;;  %3099 = vmatprep.subr.mxu1 %v5189_v10 }
 0x6b0   :  { %3029 = vmatpush1.msra.mxu0 %v5192_v8  ;;  %3100 = vmatpush1.msra.mxu1 %v5195_v52 }
 0x6b1   :  { %3030 = vmatprep.subr.mxu0 %v5198_v22  ;;  %3101 = vmatprep.subr.mxu1 %v5201_v14 }
 0x6b2   :  { %3031 = vmatpush1.msra.mxu0 %v5204_v15  ;;  %3102 = vmatpush1.msra.mxu1 %v5207_v17 }
 0x6b3   :  { %3032 = vmatprep.subr.mxu0 %v5210_v18  ;;  %3103 = vmatprep.subr.mxu1 %v5213_v23 }
 0x6b4   :  { %3033 = vmatpush1.msra.mxu0 %v5216_v24  ;;  %3104 = vmatpush1.msra.mxu1 %v5219_v27 }
 0x6b5   :  { %3034 = vmatprep.subr.mxu0 %v5222_v28  ;;  %3105 = vmatprep.subr.mxu1 %v5225_v29 }
 0x6b6   :  { %3035 = vmatpush1.msra.mxu0 %v6029_v40  ;;  %3106 = vmatpush1.msra.mxu1 %v6061_v42 }
 0x6b7   :  { %3036 = vmatprep.subr.mxu0 %v6062_v58  ;;  %3107 = vmatprep.subr.mxu1 %v6063_v32 }
 0x6b8   :  { %3037 = vmatpush1.msra.mxu0 %v6064_v36  ;;  %3108 = vmatpush1.msra.mxu1 %v6065_v44 }
 0x6b9   :  { %3038 = vmatprep.subr.mxu0 %v6067_v39  ;;  %3109 = vmatprep.subr.mxu1 %v6068_v33 }
 0x6ba   :  { %3039 = vmatpush1.msra.mxu0 %v6069_v41  ;;  %3110 = vmatpush1.msra.mxu1 %v6070_v37 }
 0x6bb   :  { %3040 = vmatprep.subr.mxu0 %v6071_v46  ;;  %3111 = vmatprep.subr.mxu1 %v6072_v35 }
 0x6bc   :  { %3041 = vmatpush1.msra.mxu0 %v6073_v51  ;;  %3112 = vmatpush1.msra.mxu1 %v6074_v13 }
 0x6bd   :  { %3042 = vmatprep.subr.mxu0 %v6075_v30  ;;  %3113 = vmatprep.subr.mxu1 %v6076_v61  ;;  %v5606_v30 = vpop.permute.xlu0 %2802 }
 0x6be   :  { %3043 = vmatpush1.msra.mxu0 %v6086_v48  ;;  %3114 = vmatpush1.msra.mxu1 %v6087_v49  ;;  %vm2804_vm14 = vcmp.eq.s32.totalorder %v5606_v30, 1  ;;  %v3948_v30 = vld [vmem:[#allocation7 + $0x20] sm:$0xff] }
 0x6bf   :  { %3044 = vmatprep.subr.mxu0 %v6079_v45  ;;  %3115 = vmatprep.subr.mxu1 %v6080_v21  ;;  %v6089_v45 = vld [vmem:[#allocation37_spill] sm:$0xff] }
 0x6c0   :  { %3045 = vmatpush1.msra.mxu0 %v6081_v53  ;;  %3078 = vmatprep.mubr.f32.mxu0 %v6082_v38 }
 0x6c1   :  { %3116 = vmatpush1.msra.mxu1 %v6083_v56  ;;  %3149 = vmatprep.mubr.f32.mxu1 %v6082_v38  ;;  %v2793_v56 = vld [vmem:[#allocation3] sm:$0x3] }
 0x6c2   :  { %3220 = vmatprep.subr.mxu0 %v3890_v1  ;;  %3291 = vmatprep.subr.mxu1 %v3891_v60  ;;  %v3892_v1 = vld [vmem:[#allocation7 + $0x1e0] sm:$0xff]  ;;  %v3893_v60 = vld [vmem:[#allocation7 + $0x1f0] sm:$0xff] }
 0x73f   :  { %v2668_v59 = vpop.f32.mrf.mxu0  ;;  %v2739_v50 = vpop.f32.mrf.mxu1 }
 0x741   :  { %v2670_v0 = vpop.f32.mrf.mxu0  ;;  %v2741_v47 = vpop.f32.mrf.mxu1 }
 0x742   :  { %v2748_v3 = vcombine.low %v2668_v59, %v2670_v0  ;;  %v2749_v55 = vcombine.low %v2739_v50, %v2741_v47  ;;  %v3894_v50 = vld [vmem:[#allocation7 + $0x1c8] sm:$0xff]  ;;  %v3895_v0 = vld [vmem:[#allocation7 + $0x1d8] sm:$0xff] }
 0x744   :  { %v2756_v16 = vrot.slane %v2748_v3, %v6088_v6  ;;  %v2763_v9 = vrot.slane %v2749_v55, %v6088_v6  ;;  %v2999_v55 = vld [vmem:[#allocation3 + $0x2] sm:$0x3] }
 0x746   :  { %v2764_v12 = vcombine.low %v2756_v16, %v2763_v9  ;;  %v3896_v16 = vld [vmem:[#allocation7 + $0x1c0] sm:$0xff]  ;;  %v3897_v9 = vld [vmem:[#allocation7 + $0x1d0] sm:$0xff] }
 0x748   :  { %v2766_v25 = vadd.f32 %v2764_v12, %v2598_v11 }
 0x74a   :  { %v3481_v5 = vmul.f32 -1.442695, %v2766_v25  ;;  %v2774_v7 = vrot.slane %v2766_v25, 2  ;;  %v2785_v2 = vrot.slane %v2766_v25, 6  ;;  %v2782_v31 = vrot.slane %v2766_v25, 4  ;;  %v3898_v25 = vld [vmem:[#allocation7 + $0x1a8] sm:$0xff] }
 0x74c   :  { %3698 = vpow2.f32 %v3481_v5  ;;  %v3482_v63 = vmul.f32 -1.442695, %v2774_v7  ;;  %v3483_v4 = vmul.f32 -1.442695, %v2785_v2  ;;  %v3899_v5 = vld [vmem:[#allocation7 + $0x1b8] sm:$0xff]  ;;  %v3900_v7 = vld [vmem:[#allocation7 + $0x1a0] sm:$0xff] }
 0x74e   :  { %3700 = vpow2.f32 %v3482_v63  ;;  %v3901_v63 = vld [vmem:[#allocation7 + $0x1b0] sm:$0xff] }
 0x74f   :  { %3702 = vpow2.f32 %v3483_v4  ;;  %v3902_v4 = vld [vmem:[#allocation7 + $0x188] sm:$0xff] }
 0x759   :  { %v3699_v62 = vpop.eup %3698 }
 0x75a   :  { %v2770_v19 = vadd.f32 1.0, %v3699_v62  ;;  %v3903_v62 = vld [vmem:[#allocation7 + $0x198] sm:$0xff] }
 0x75b   :  { %v3701_v26 = vpop.eup %3700 }
 0x75c   :  { %3704 = vrcp.f32 %v2770_v19  ;;  %v2779_v20 = vadd.f32 1.0, %v3701_v26  ;;  %v3703_v18 = vpop.eup %3702  ;;  %v3905_v19 = vld [vmem:[#allocation7 + $0x190] sm:$0xff]  ;;  %v3906_v26 = vld [vmem:[#allocation7 + $0x168] sm:$0xff] }
 0x75d   :  { %3706 = vtanh.f32 %v2782_v31  ;;  %v2790_v29 = vadd.f32 1.0, %v3703_v18  ;;  %v3904_v31 = vld [vmem:[#allocation7 + $0x180] sm:$0xff] }
 0x75e   :  { %3708 = vrcp.f32 %v2779_v20  ;;  %v3907_v20 = vld [vmem:[#allocation7 + $0x178] sm:$0xff]  ;;  %v3916_v18 = vld [vmem:[#allocation7 + $0x120] sm:$0xff] }
 0x760   :  { %v2874_v57 = vpop.f32.mrf.mxu0  ;;  %v2945_v10 = vpop.f32.mrf.mxu1 }
 0x762   :  { %v2876_v8 = vpop.f32.mrf.mxu0  ;;  %v2947_v52 = vpop.f32.mrf.mxu1 }
 0x763   :  { %v2954_v22 = vcombine.low %v2874_v57, %v2876_v8  ;;  %v2955_v14 = vcombine.low %v2945_v10, %v2947_v52  ;;  %v3908_v57 = vld [vmem:[#allocation7 + $0x160] sm:$0xff]  ;;  %v3909_v10 = vld [vmem:[#allocation7 + $0x170] sm:$0xff]  ;;  %v3910_v8 = vld [vmem:[#allocation7 + $0x148] sm:$0xff] }
 0x764   :  { %v3911_v52 = vld [vmem:[#allocation7 + $0x158] sm:$0xff] }
 0x765   :  { %v2962_v15 = vrot.slane %v2954_v22, %v6088_v6  ;;  %v2969_v17 = vrot.slane %v2955_v14, %v6088_v6  ;;  %v3912_v22 = vld [vmem:[#allocation7 + $0x140] sm:$0xff]  ;;  %v3913_v14 = vld [vmem:[#allocation7 + $0x150] sm:$0xff] }
 0x767   :  { %v2970_v23 = vcombine.low %v2962_v15, %v2969_v17  ;;  %v3914_v15 = vld [vmem:[#allocation7 + $0x128] sm:$0xff]  ;;  %v3915_v17 = vld [vmem:[#allocation7 + $0x138] sm:$0xff] }
 0x769   :  { %v3705_v24 = vpop.eup %3704  ;;  %v2972_v27 = vadd.f32 %v2970_v23, %v2598_v11  ;;  %v3917_v23 = vld [vmem:[#allocation7 + $0x130] sm:$0xff] }
 0x76a   :  { %v3707_v28 = vpop.eup %3706 }
 0x76b   :  { %v3709_v40 = vpop.eup %3708  ;;  %v3484_v42 = vmul.f32 -1.442695, %v2972_v27  ;;  %v2980_v58 = vrot.slane %v2972_v27, 2  ;;  %v2795_v36 = vmul.f32 %v3707_v28, %v3705_v24  ;;  %v2991_v33 = vrot.slane %v2972_v27, 6  ;;  %v3918_v24 = vld [vmem:[#allocation7 + $0x108] sm:$0xff]  ;;  %v3920_v28 = vld [vmem:[#allocation7 + $0x100] sm:$0xff] }
 0x76c   :  { %v2794_v32 = vmul.f32 %v3709_v40, %v2793_v56  ;;  %v2988_v46 = vrot.slane %v2972_v27, 4  ;;  %v3919_v27 = vld [vmem:[#allocation7 + $0x118] sm:$0xff]  ;;  %v3922_v40 = vld [vmem:[#allocation7 + $0xe8] sm:$0xff] }
 0x76d   :  { %3710 = vpow2.f32 %v3484_v42  ;;  %v3485_v44 = vmul.f32 -1.442695, %v2980_v58  ;;  %v3486_v41 = vmul.f32 -1.442695, %v2991_v33  ;;  %v3923_v56 = vld [vmem:[#allocation7 + $0xf8] sm:$0xff]  ;;  %v3924_v42 = vld [vmem:[#allocation7 + $0xe0] sm:$0xff] }
 0x76e   :  { %3712 = vrcp.f32 %v2790_v29  ;;  %v2796_v39 = vadd.f32 %v2795_v36, %v2794_v32  ;;  %v3921_v29 = vld [vmem:[#allocation7 + $0x110] sm:$0xff]  ;;  %v3926_v32 = vld [vmem:[#allocation7 + $0xc8] sm:$0xff]  ;;  %v3927_v36 = vld [vmem:[#allocation7 + $0xd8] sm:$0xff] }
 0x76f   :  { %3714 = vpow2.f32 %v3485_v44  ;;  %v3925_v58 = vld [vmem:[#allocation7 + $0xf0] sm:$0xff]  ;;  %v3928_v44 = vld [vmem:[#allocation7 + $0xc0] sm:$0xff] }
 0x770   :  { %3716 = vtanh.f32 %v2796_v39  ;;  %2799 = vst [vmem:[#allocation3] sm:$0x3] %v2796_v39  ;;  %v3929_v39 = vld [vmem:[#allocation7 + $0xd0] sm:$0xff] }
 0x771   :  { %3718 = vpow2.f32 %v3486_v41  ;;  %v3930_v41 = vld [vmem:[#allocation7 + $0xa8] sm:$0xff] }
 0x77a   :  { %v3711_v37 = vpop.eup %3710 }
 0x77b   :  { %v3713_v35 = vpop.eup %3712  ;;  %v2976_v51 = vadd.f32 1.0, %v3711_v37  ;;  %v3931_v37 = vld [vmem:[#allocation7 + $0xb8] sm:$0xff] }
 0x77c   :  { %v3715_v13 = vpop.eup %3714 }
 0x77d   :  { %v3717_v61 = vpop.eup %3716  ;;  %3720 = vrcp.f32 %v2976_v51  ;;  %v2985_v43 = vadd.f32 1.0, %v3715_v13  ;;  %v3933_v51 = vld [vmem:[#allocation7 + $0xb0] sm:$0xff] }
 0x77e   :  { %v2798_v54 = vmul.f32 %v3717_v61, %v3713_v35  ;;  %3722 = vtanh.f32 %v2988_v46  ;;  %v3719_v48 = vpop.eup %3718  ;;  %v3932_v35 = vld [vmem:[#allocation7 + $0xa0] sm:$0xff]  ;;  %v3934_v61 = vld [vmem:[#allocation7 + $0x88] sm:$0xff] }
 0x77f   :  { %3724 = vrcp.f32 %v2985_v43  ;;  %v2996_v3 = vadd.f32 1.0, %v3719_v48  ;;  %v3935_v43 = vld [vmem:[#allocation7 + $0x98] sm:$0xff]  ;;  %v3938_v48 = vld [vmem:[#allocation7 + $0x68] sm:$0xff] }
 0x780   :  { %v2805_v21 = vsel %vm2804_vm14, %v2798_v54, %v6089_v45  ;;  %v3936_v54 = vld [vmem:[#allocation7 + $0x80] sm:$0xff]  ;;  %v3937_v45 = vld [vmem:[#allocation7 + $0x90] sm:$0xff] }
 0x781   :  { %2806 = vst [vmem:[#allocation2] sm:$0x3] %v2805_v21  ;;  %3726 = vrcp.f32 %v2996_v3  ;;  %v3946_v3 = vld [vmem:[#allocation7 + $0x28] sm:$0xff] }
 0x788   :  { %v5612_v53 = vld [vmem:[#allocation2] sm:$0x3] }
 0x789   :  { %3079 = vmatmul.mubr.f32.vlgmr.msra.gmra.mxu0 %v5612_v53  ;;  %3150 = vmatmul.mubr.f32.vlgmr.msra.gmra.mxu1 %v5612_v53 }
 0x78a   :  { %v3721_v49 = vpop.eup %3720  ;;  %3221 = vmatpush1.msra.mxu0 %v3892_v1  ;;  %3292 = vmatpush1.msra.mxu1 %v3893_v60  ;;  %v3940_v1 = vld [vmem:[#allocation7 + $0x60] sm:$0xff]  ;;  %v3941_v60 = vld [vmem:[#allocation7 + $0x70] sm:$0xff] }
 0x78b   :  { %v3723_v59 = vpop.eup %3722  ;;  %3222 = vmatprep.subr.mxu0 %v3894_v50  ;;  %3293 = vmatprep.subr.mxu1 %v3895_v0  ;;  %v3943_v50 = vld [vmem:[#allocation7 + $0x58] sm:$0xff]  ;;  %v3944_v0 = vld [vmem:[#allocation7 + $0x40] sm:$0xff] }
 0x78c   :  { %v3725_v47 = vpop.eup %3724  ;;  %3223 = vmatpush1.msra.mxu0 %v3896_v16  ;;  %3294 = vmatpush1.msra.mxu1 %v3897_v9  ;;  %v3001_v12 = vmul.f32 %v3723_v59, %v3721_v49  ;;  %v3939_v49 = vld [vmem:[#allocation7 + $0x78] sm:$0xff]  ;;  %v3942_v59 = vld [vmem:[#allocation7 + $0x48] sm:$0xff] }
 0x78d   :  { %v3000_v11 = vmul.f32 %v3725_v47, %v2999_v55  ;;  %3224 = vmatprep.subr.mxu0 %v3898_v25  ;;  %3295 = vmatprep.subr.mxu1 %v3899_v5  ;;  %v3945_v47 = vld [vmem:[#allocation7 + $0x50] sm:$0xff]  ;;  %v3950_v16 = vld [vmem:[#allocation7 + $0x8] sm:$0xff]  ;;  %v3951_v9 = vld [vmem:[#allocation7 + $0x18] sm:$0xff] }
 0x78e   :  { %3225 = vmatpush1.msra.mxu0 %v3900_v7  ;;  %3296 = vmatpush1.msra.mxu1 %v3901_v63  ;;  %v3727_v33 = vpop.eup %3726  ;;  %v3949_v55 = vld [vmem:[#allocation7 + $0x30] sm:$0xff] }
 0x78f   :  { %v3002_v2 = vadd.f32 %v3001_v12, %v3000_v11  ;;  %3226 = vmatprep.subr.mxu0 %v3902_v4  ;;  %3297 = vmatprep.subr.mxu1 %v3903_v62  ;;  %v3952_v11 = vld [vmem:[#allocation7] sm:$0xff]  ;;  %v3953_v12 = vld [vmem:[#allocation7 + $0x10] sm:$0xff] }
 0x790   :  { %3227 = vmatpush1.msra.mxu0 %v3904_v31  ;;  %3298 = vmatpush1.msra.mxu1 %v3905_v19 }
 0x791   :  { %3728 = vtanh.f32 %v3002_v2  ;;  %3005 = vst [vmem:[#allocation3 + $0x2] sm:$0x3] %v3002_v2  ;;  %3228 = vmatprep.subr.mxu0 %v3906_v26  ;;  %3299 = vmatprep.subr.mxu1 %v3907_v20  ;;  %v3010_v26 = vld [vmem:[#allocation4 + $0x38] sm:$0xff] }
 0x792   :  { %3229 = vmatpush1.msra.mxu0 %v3908_v57  ;;  %3300 = vmatpush1.msra.mxu1 %v3909_v10 }
 0x793   :  { %3230 = vmatprep.subr.mxu0 %v3910_v8  ;;  %3301 = vmatprep.subr.mxu1 %v3911_v52 }
 0x794   :  { %3231 = vmatpush1.msra.mxu0 %v3912_v22  ;;  %3302 = vmatpush1.msra.mxu1 %v3913_v14 }
 0x795   :  { %3232 = vmatprep.subr.mxu0 %v3914_v15  ;;  %3303 = vmatprep.subr.mxu1 %v3915_v17 }
 0x796   :  { %3233 = vmatpush1.msra.mxu0 %v3916_v18  ;;  %3304 = vmatpush1.msra.mxu1 %v3917_v23 }
 0x797   :  { %3234 = vmatprep.subr.mxu0 %v3918_v24  ;;  %3305 = vmatprep.subr.mxu1 %v3919_v27 }
 0x798   :  { %3235 = vmatpush1.msra.mxu0 %v3920_v28  ;;  %3306 = vmatpush1.msra.mxu1 %v3921_v29 }
 0x799   :  { %3236 = vmatprep.subr.mxu0 %v3922_v40  ;;  %3307 = vmatprep.subr.mxu1 %v3923_v56 }
 0x79a   :  { %3237 = vmatpush1.msra.mxu0 %v3924_v42  ;;  %3308 = vmatpush1.msra.mxu1 %v3925_v58 }
 0x79b   :  { %3238 = vmatprep.subr.mxu0 %v3926_v32  ;;  %3309 = vmatprep.subr.mxu1 %v3927_v36 }
 0x79c   :  { %3239 = vmatpush1.msra.mxu0 %v3928_v44  ;;  %3310 = vmatpush1.msra.mxu1 %v3929_v39 }
 0x79d   :  { %3240 = vmatprep.subr.mxu0 %v3930_v41  ;;  %3311 = vmatprep.subr.mxu1 %v3931_v37 }
 0x79e   :  { %v3729_v46 = vpop.eup %3728  ;;  %3241 = vmatpush1.msra.mxu0 %v3932_v35  ;;  %3312 = vmatpush1.msra.mxu1 %v3933_v51 }
 0x79f   :  { %v3004_v13 = vmul.f32 %v3729_v46, %v3727_v33  ;;  %3242 = vmatprep.subr.mxu0 %v3934_v61  ;;  %3313 = vmatprep.subr.mxu1 %v3935_v43  ;;  %v3205_v46 = vld [vmem:[#allocation3] sm:$0x3] }
 0x7a0   :  { %3243 = vmatpush1.msra.mxu0 %v3936_v54  ;;  %3314 = vmatpush1.msra.mxu1 %v3937_v45 }
 0x7a1   :  { %v3006_v21 = vsel %vm2804_vm14, %v3004_v13, %v5532_v34  ;;  %3244 = vmatprep.subr.mxu0 %v3938_v48  ;;  %3315 = vmatprep.subr.mxu1 %v3939_v49  ;;  %v3947_v34 = vld [vmem:[#allocation7 + $0x38] sm:$0xff] }
 0x7a2   :  { %3007 = vst [vmem:[#allocation2 + $0x2] sm:$0x3] %v3006_v21  ;;  %3245 = vmatpush1.msra.mxu0 %v3940_v1  ;;  %3316 = vmatpush1.msra.mxu1 %v3941_v60 }
 0x7a3   :  { %3246 = vmatprep.subr.mxu0 %v3942_v59  ;;  %3317 = vmatprep.subr.mxu1 %v3943_v50  ;;  %v3215_v59 = vpop.permute.xlu1 %3214 }
 0x7a4   :  { %3247 = vmatpush1.msra.mxu0 %v3944_v0  ;;  %3318 = vmatpush1.msra.mxu1 %v3945_v47  ;;  %vm3216_vm15 = vcmp.eq.s32.totalorder %v3215_v59, 1 }
 0x7a5   :  { %3248 = vmatprep.subr.mxu0 %v3946_v3  ;;  %3319 = vmatprep.subr.mxu1 %v3947_v34 }
 0x7a6   :  { %3249 = vmatpush1.msra.mxu0 %v3948_v30  ;;  %3320 = vmatpush1.msra.mxu1 %v3949_v55 }
 0x7a7   :  { %3250 = vmatprep.subr.mxu0 %v3950_v16  ;;  %3321 = vmatprep.subr.mxu1 %v3951_v9 }
 0x7a8   :  { %3251 = vmatpush1.msra.mxu0 %v3952_v11  ;;  %3284 = vmatprep.mubr.f32.mxu0 %v6082_v38  ;;  %v3411_v11 = vld [vmem:[#allocation3 + $0x2] sm:$0x3] }
 0x7a9   :  { %3322 = vmatpush1.msra.mxu1 %v3953_v12  ;;  %3355 = vmatprep.mubr.f32.mxu1 %v6082_v38  ;;  %v5621_v25 = vld [vmem:[#allocation2 + $0x2] sm:$0x3] }
 0x7aa   :  { %3285 = vmatmul.mubr.f32.vlgmr.msra.gmra.mxu0 %v5621_v25  ;;  %3356 = vmatmul.mubr.f32.vlgmr.msra.gmra.mxu1 %v5621_v25 }
 0x849   :  { %v3080_v5 = vpop.f32.mrf.mxu0  ;;  %v3151_v7 = vpop.f32.mrf.mxu1 }
 0x84b   :  { %v3082_v63 = vpop.f32.mrf.mxu0  ;;  %v3153_v2 = vpop.f32.mrf.mxu1 }
 0x84c   :  { %v3160_v4 = vcombine.low %v3080_v5, %v3082_v63  ;;  %v3161_v62 = vcombine.low %v3151_v7, %v3153_v2 }
 0x84e   :  { %v3168_v31 = vrot.slane %v3160_v4, %v6088_v6  ;;  %v3175_v19 = vrot.slane %v3161_v62, %v6088_v6 }
 0x850   :  { %v3176_v20 = vcombine.low %v3168_v31, %v3175_v19 }
 0x852   :  { %v3178_v57 = vadd.f32 %v3176_v20, %v3010_v26 }
 0x854   :  { %v3487_v38 = vmul.f32 -1.442695, %v3178_v57  ;;  %v3186_v10 = vrot.slane %v3178_v57, 2  ;;  %v3197_v52 = vrot.slane %v3178_v57, 6  ;;  %v3194_v15 = vrot.slane %v3178_v57, 4 }
 0x856   :  { %3730 = vpow2.f32 %v3487_v38  ;;  %v3488_v8 = vmul.f32 -1.442695, %v3186_v10  ;;  %v3489_v22 = vmul.f32 -1.442695, %v3197_v52 }
 0x858   :  { %3732 = vpow2.f32 %v3488_v8 }
 0x859   :  { %3734 = vpow2.f32 %v3489_v22 }
 0x863   :  { %v3731_v14 = vpop.eup %3730 }
 0x864   :  { %v3182_v17 = vadd.f32 1.0, %v3731_v14 }
 0x865   :  { %v3733_v18 = vpop.eup %3732 }
 0x866   :  { %3736 = vrcp.f32 %v3182_v17  ;;  %v3191_v23 = vadd.f32 1.0, %v3733_v18  ;;  %v3735_v32 = vpop.eup %3734 }
 0x867   :  { %3738 = vtanh.f32 %v3194_v15  ;;  %v3202_v41 = vadd.f32 1.0, %v3735_v32 }
 0x868   :  { %3740 = vrcp.f32 %v3191_v23 }
 0x86a   :  { %v3286_v24 = vpop.f32.mrf.mxu0  ;;  %v3357_v27 = vpop.f32.mrf.mxu1 }
 0x86c   :  { %v3288_v28 = vpop.f32.mrf.mxu0  ;;  %v3359_v29 = vpop.f32.mrf.mxu1 }
 0x86d   :  { %v3366_v40 = vcombine.low %v3286_v24, %v3288_v28  ;;  %v3367_v56 = vcombine.low %v3357_v27, %v3359_v29 }
 0x86f   :  { %v3374_v42 = vrot.slane %v3366_v40, %v6088_v6  ;;  %v3381_v58 = vrot.slane %v3367_v56, %v6088_v6 }
 0x871   :  { %v3382_v36 = vcombine.low %v3374_v42, %v3381_v58 }
 0x873   :  { %v3737_v44 = vpop.eup %3736  ;;  %v3384_v39 = vadd.f32 %v3382_v36, %v3010_v26 }
 0x874   :  { %v3739_v33 = vpop.eup %3738 }
 0x875   :  { %v3741_v37 = vpop.eup %3740  ;;  %v3490_v35 = vmul.f32 -1.442695, %v3384_v39  ;;  %v3392_v51 = vrot.slane %v3384_v39, 2  ;;  %v3207_v61 = vmul.f32 %v3739_v33, %v3737_v44  ;;  %v3403_v6 = vrot.slane %v3384_v39, 6 }
 0x876   :  { %v3206_v13 = vmul.f32 %v3741_v37, %v3205_v46  ;;  %v3400_v48 = vrot.slane %v3384_v39, 4 }
 0x877   :  { %3742 = vpow2.f32 %v3490_v35  ;;  %v3491_v43 = vmul.f32 -1.442695, %v3392_v51  ;;  %v3492_v45 = vmul.f32 -1.442695, %v3403_v6 }
 0x878   :  { %3744 = vrcp.f32 %v3202_v41  ;;  %v3208_v54 = vadd.f32 %v3207_v61, %v3206_v13 }
 0x879   :  { %3746 = vpow2.f32 %v3491_v43 }
 0x87a   :  { %3748 = vtanh.f32 %v3208_v54  ;;  %3211 = vst [vmem:[#allocation3] sm:$0x3] %v3208_v54 }
 0x87b   :  { %3750 = vpow2.f32 %v3492_v45 }
 0x884   :  { %v3743_v21 = vpop.eup %3742 }
 0x885   :  { %v3745_v49 = vpop.eup %3744  ;;  %v3388_v1 = vadd.f32 1.0, %v3743_v21 }
 0x886   :  { %v3747_v60 = vpop.eup %3746 }
 0x887   :  { %v3749_v50 = vpop.eup %3748  ;;  %3752 = vrcp.f32 %v3388_v1  ;;  %v3397_v0 = vadd.f32 1.0, %v3747_v60 }
 0x888   :  { %v3210_v47 = vmul.f32 %v3749_v50, %v3745_v49  ;;  %3754 = vtanh.f32 %v3400_v48  ;;  %v3751_v34 = vpop.eup %3750 }
 0x889   :  { %3756 = vrcp.f32 %v3397_v0  ;;  %v3408_v9 = vadd.f32 1.0, %v3751_v34 }
 0x88a   :  { %v3217_v3 = vsel %vm3216_vm15, %v3210_v47, %v5612_v53 }
 0x88b   :  { %3218 = vst [vmem:[#allocation2] sm:$0x3] %v3217_v3  ;;  %3758 = vrcp.f32 %v3408_v9 }
 0x894   :  { %v3753_v30 = vpop.eup %3752 }
 0x895   :  { %v3755_v55 = vpop.eup %3754 }
 0x896   :  { %v3757_v16 = vpop.eup %3756  ;;  %v3413_v5 = vmul.f32 %v3755_v55, %v3753_v30 }
 0x897   :  { %v3412_v12 = vmul.f32 %v3757_v16, %v3411_v11 }
 0x898   :  { %v3759_v63 = vpop.eup %3758 }
 0x899   :  { %v3414_v7 = vadd.f32 %v3413_v5, %v3412_v12 }
 0x89b   :  { %3760 = vtanh.f32 %v3414_v7  ;;  %3417 = vst [vmem:[#allocation3 + $0x2] sm:$0x3] %v3414_v7 }
 0x8a8   :  { %v3761_v2 = vpop.eup %3760 }
 0x8a9   :  { %v3416_v4 = vmul.f32 %v3761_v2, %v3759_v63 }
 0x8ab   :  { %v3418_v62 = vsel %vm3216_vm15, %v3416_v4, %v5621_v25 }
 0x8ac   :  { %3419 = vst [vmem:[#allocation2 + $0x2] sm:$0x3] %v3418_v62 }
 0x8b3   :  { %v3423_v53 = vld [vmem:[#allocation2] sm:$0xf]  }
 0x8b4   :  { %3425 = vst [vmem:[#allocation9] sm:$0xf] %v3423_v53  }
 0x8b5   :  { %4005 = shalt.err (!%p4002_p0)
}
 0x8b6   :  { %s4030_s8 = smov 2  }
 0x8b7   :  { %3438 = dma.vmem_to_hbm [thread:$0]  %s3433_s6, 64, %s5642_s4, [#allocation6], %s4025_s26, %s4025_s26, %s4030_s8  }
 0x8b8   :  { %4018 = dma.done.wait [#allocation6], 64  }
 0x8b9   :  { %4019 = vsyncadd [#allocation6], 4294967232 }
 0x8ba   :  { %3442 = vsyncpa [#allocation5], 1 }
 0x8bb   :  { %3443 = vsyncpa [#allocation8], 1 }
 0x8bc   :  { %3444 = vsyncpa [#allocation6], 1 }

</bundles_post_ra>
